<compile_context>
chip_gen: v5e
topology: v5e:2x2
jax: 0.10.0
libtpu: 0.0.40
codegen_flags: <defaults>
</compile_context>

<pallas_src>
import functools

import jax
import jax.numpy as jnp
from jax.experimental import pallas as pl
from jax.experimental.pallas import tpu as pltpu


def _round_up(x, m):
    return ((x + m - 1) // m) * m


def _pad2(a, rows, cols):
    r, c = a.shape
    return jnp.pad(a, ((0, rows - r), (0, cols - c)))


def _euler_hidden(x, w_emb, b_emb, w_conv, b_conv, *, delta_t, epsilon):
    """h = x@W_emb + b_emb; delta_t Euler steps of h += eps*tanh(h@W_conv + b_conv)."""
    mxu_dtype = w_conv.dtype  # bf16 (or f32 if compute_dtype=f32)

    # Biases are (1, hp): the broadcasting add is a cheap sublane splat, so we
    # do NOT materialize full-tile broadcasts (saves tile_n*128*4 B of live VMEM
    # per bias at large tiles).
    h = jnp.dot(x, w_emb, preferred_element_type=jnp.float32) + b_emb

    def body(_, h):
        z = jnp.dot(h.astype(mxu_dtype), w_conv,
                    preferred_element_type=jnp.float32) + b_conv
        # Elementwise update stays f32 (v5e has no bf16 VPU/EUP).
        return h + epsilon * jnp.tanh(z)

    # Unroll only short loops to keep vreg pressure bounded at large delta_t.
    return jax.lax.fori_loop(0, delta_t, body, h, unroll=(delta_t <= 8))


def _neural_ode_packed_kernel(x_ref, w_emb_ref, b_emb_ref, w_conv_ref,
                              b_conv_ref, w_ro_ref, b_ro_ref, out_ref, *,
                              delta_t, epsilon):
    """Single packed output: h in lanes [0:hidden], y added into [hidden:hidden+d_out]."""
    h = _euler_hidden(x_ref[...], w_emb_ref[...], b_emb_ref[...],
                      w_conv_ref[...], b_conv_ref[...],
                      delta_t=delta_t, epsilon=epsilon)
    # W_ro is pre-shifted in the wrapper so the readout lands in the zero
    # padded columns of h; one add, ONE unmasked lane-dense store.
    y_shift = jnp.dot(h.astype(w_conv_ref.dtype), w_ro_ref[...],
                      preferred_element_type=jnp.float32) + b_ro_ref[...]
    out_ref[...] = (h + y_shift).astype(out_ref.dtype)


def _neural_ode_split_kernel(x_ref, w_emb_ref, b_emb_ref, w_conv_ref,
                             b_conv_ref, w_ro_ref, b_ro_ref, y_ref, h_ref, *,
                             delta_t, epsilon):
    """Fallback (hidden + d_out > padded hidden width): two lane-dense outputs."""
    h = _euler_hidden(x_ref[...], w_emb_ref[...], b_emb_ref[...],
                      w_conv_ref[...], b_conv_ref[...],
                      delta_t=delta_t, epsilon=epsilon)
    h_ref[...] = h.astype(h_ref.dtype)
    y_ref[...] = (jnp.dot(h.astype(w_conv_ref.dtype), w_ro_ref[...],
                          preferred_element_type=jnp.float32)
                  + b_ro_ref[...]).astype(y_ref.dtype)


def neural_ode_forward(x, params, *, delta_t, epsilon, tile_n=None,
                       compute_dtype=jnp.bfloat16, out_dtype=jnp.bfloat16,
                       return_packed=False):
    """Runs the NeuralODE forward pass. Returns (y, h) (or the packed tensor)."""
    w_emb, b_emb, w_conv, b_conv, w_ro, b_ro = params
    n, d_in = x.shape
    hidden = w_emb.shape[1]
    d_out = w_ro.shape[1]

    # Lane-dense padded hidden width (multiple of 128).
    hp = _round_up(hidden, 128)
    packed = (hidden + d_out) <= hp  # y fits into h's zero padded lanes

    # Row tile: multiple of 8. Small/medium N -> one tile (no per-step overhead
    # on 1-TC v5e/v6e); large N -> 4096-row tiles (double-buffered working set
    # stays a few MiB, safe for v7x's 64 MiB VMEM, good pipelining on all gens).
    if tile_n is None:
        tile_n = min(4096, _round_up(n, 8))
    tile_n = max(8, _round_up(int(tile_n), 8))

    n_pad = _round_up(n, tile_n)
    x_p = jnp.pad(x, ((0, n_pad - n), (0, 0))) if n_pad != n else x
    x_c = x_p.astype(compute_dtype)

    # Zero-pad weights/biases. Padded hidden columns stay exactly 0 through the
    # Euler loop (zero W rows/cols, zero bias), so slicing the result recovers
    # the exact unpadded math -- and makes the packed add exact.
    w_emb_p = _pad2(w_emb, d_in, hp).astype(compute_dtype)
    b_emb_p = _pad2(b_emb, 1, hp).astype(jnp.float32)
    w_conv_p = _pad2(w_conv, hp, hp).astype(compute_dtype)
    b_conv_p = _pad2(b_conv, 1, hp).astype(jnp.float32)

    if packed:
        p_out = hp
        # Column-shifted readout weights: output lanes [hidden : hidden+d_out].
        w_ro_p = jnp.zeros((hp, p_out), jnp.float32)
        w_ro_p = w_ro_p.at[:hidden, hidden:hidden + d_out].set(w_ro)
        w_ro_p = w_ro_p.astype(compute_dtype)
        b_ro_p = jnp.zeros((1, p_out), jnp.float32)
        b_ro_p = b_ro_p.at[:, hidden:hidden + d_out].set(b_ro)
        kernel = functools.partial(_neural_ode_packed_kernel,
                                   delta_t=int(delta_t), epsilon=float(epsilon))
        out_shape = jax.ShapeDtypeStruct((n_pad, p_out), out_dtype)
        out_specs = pl.BlockSpec((tile_n, p_out), lambda i: (i, 0))
        out_elems = p_out
    else:
        dp = _round_up(d_out, 128)
        p_out = dp
        w_ro_p = _pad2(w_ro, hp, dp).astype(compute_dtype)
        b_ro_p = _pad2(b_ro, 1, dp).astype(jnp.float32)
        kernel = functools.partial(_neural_ode_split_kernel,
                                   delta_t=int(delta_t), epsilon=float(epsilon))
        out_shape = (jax.ShapeDtypeStruct((n_pad, dp), out_dtype),
                     jax.ShapeDtypeStruct((n_pad, hp), out_dtype))
        out_specs = [pl.BlockSpec((tile_n, dp), lambda i: (i, 0)),
                     pl.BlockSpec((tile_n, hp), lambda i: (i, 0))]
        out_elems = dp + hp

    grid = (n_pad // tile_n,)
    const = lambda i: (0, 0)   # weights/biases: same block every grid step

    # Explicit VMEM budget: double-buffered I/O tiles + resident weights + live
    # f32 intermediates (h, z, y_shift) + headroom, clipped to 48 MiB so it
    # fits v7x's 64 MiB physical VMEM with margin.
    elt_c = jnp.dtype(compute_dtype).itemsize
    elt_o = jnp.dtype(out_dtype).itemsize
    io_per_step = (tile_n * d_in * elt_c
                   + tile_n * out_elems * elt_o
                   + (d_in * hp + hp * hp + hp * p_out) * elt_c
                   + (2 * hp + p_out) * 4)
    live = 3 * tile_n * hp * 4
    vmem_limit = int(min(48 * 1024 * 1024,
                         max(32 * 1024 * 1024, 2 * io_per_step + live + (8 << 20))))

    out = pl.pallas_call(
        kernel,
        out_shape=out_shape,
        grid_spec=pltpu.PrefetchScalarGridSpec(
            num_scalar_prefetch=0,
            grid=grid,
            in_specs=[
                pl.BlockSpec((tile_n, d_in), lambda i: (i, 0)),   # x
                pl.BlockSpec((d_in, hp), const),                  # W_emb
                pl.BlockSpec((1, hp), const),                     # b_emb
                pl.BlockSpec((hp, hp), const),                    # W_conv
                pl.BlockSpec((1, hp), const),                     # b_conv
                pl.BlockSpec((hp, p_out), const),                 # W_ro (shifted if packed)
                pl.BlockSpec((1, p_out), const),                  # b_ro
            ],
            out_specs=out_specs,
        ),
        compiler_params=pltpu.CompilerParams(
            dimension_semantics=("parallel",),   # row axis; shards on v7x megacore
            vmem_limit_bytes=vmem_limit),
    )(x_c, w_emb_p, b_emb_p, w_conv_p, b_conv_p, w_ro_p, b_ro_p)

    if packed:
        if return_packed:
            # Hand the packed tensor straight to a fused consumer to avoid the
            # slice-copy of the output stream (see performance notes).
            return out, (hidden, d_out, n)
        y = out[:n, hidden:hidden + d_out]
        h = out[:n, :hidden]
        return y, h
    else:
        y_p, h_p = out
        return y_p[:n, :d_out], h_p[:n, :hidden]


def init_params(key, input_dim, hidden_dim, output_dim):
    """Deterministic Linear-layer-style init (uniform in +/- 1/sqrt(fan_in))."""
    ks = jax.random.split(key, 6)

    def linear(kw, kb, fan_in, fan_out):
        bound = 1.0 / jnp.sqrt(float(fan_in))
        w = jax.random.uniform(kw, (fan_in, fan_out), jnp.float32, -bound, bound)
        b = jax.random.uniform(kb, (1, fan_out), jnp.float32, -bound, bound)
        return w, b

    w_emb, b_emb = linear(ks[0], ks[1], input_dim, hidden_dim)
    w_conv, b_conv = linear(ks[2], ks[3], hidden_dim, hidden_dim)
    w_ro, b_ro = linear(ks[4], ks[5], hidden_dim, output_dim)
    return (w_emb, b_emb, w_conv, b_conv, w_ro, b_ro)


def neural_ode_reference(x, params, *, delta_t, epsilon,
                         compute_dtype=jnp.float32):
    """Pure-JAX reference mirroring the PyTorch forward.

    With compute_dtype=bf16 it mirrors the kernel's matmul-input casts
    (f32 accumulation, f32 elementwise), for a tight numerical comparison.
    """
    w_emb, b_emb, w_conv, b_conv, w_ro, b_ro = params

    def mm(a, w):
        return jnp.dot(a.astype(compute_dtype), w.astype(compute_dtype),
                       preferred_element_type=jnp.float32)

    h = mm(x, w_emb) + b_emb
    for _ in range(delta_t):
        h = h + epsilon * jnp.tanh(mm(h, w_conv) + b_conv)
    y = mm(h, w_ro) + b_ro
    return y, h


if __name__ == "__main__":
    # Small shapes consistent with the module:
    #   x: [num_nodes, input_dim]; NeuralODE(input_dim=16, hidden_dim=32, output_dim=8)
    # NUM_NODES deliberately not a multiple of 8 to exercise row padding; with
    # the recalibrated tiling this runs as a single grid step (no per-step
    # overhead on 1-TC chips).
    NUM_NODES = 1000
    INPUT_DIM = 16
    HIDDEN_DIM = 32
    OUTPUT_DIM = 8
    DELTA_T = 3
    EPSILON = 0.1

    key = jax.random.PRNGKey(0)
    kx, kp = jax.random.split(key)
    x = jax.random.normal(kx, (NUM_NODES, INPUT_DIM), jnp.float32)
    params = init_params(kp, INPUT_DIM, HIDDEN_DIM, OUTPUT_DIM)

    y, h = neural_ode_forward(x, params, delta_t=DELTA_T, epsilon=EPSILON)
    y = jax.block_until_ready(y)
    h = jax.block_until_ready(h)

    assert y.shape == (NUM_NODES, OUTPUT_DIM)
    assert h.shape == (NUM_NODES, HIDDEN_DIM)

    y_f32 = jnp.asarray(y, jnp.float32)
    h_f32 = jnp.asarray(h, jnp.float32)

    # Strict check against a reference that mirrors the kernel's bf16 matmul
    # inputs (tolerance includes the final bf16 output-store rounding).
    y_bf, h_bf = neural_ode_reference(x, params, delta_t=DELTA_T, epsilon=EPSILON,
                                      compute_dtype=jnp.bfloat16)
    assert jnp.allclose(y_f32, y_bf, atol=2e-2, rtol=2e-2), "y mismatch vs bf16 reference"
    assert jnp.allclose(h_f32, h_bf, atol=2e-2, rtol=2e-2), "h mismatch vs bf16 reference"

    # Loose check against the pure-f32 reference (bf16 input/weight/output
    # rounding only; tolerance is delta_t-dependent in general).
    y32, h32 = neural_ode_reference(x, params, delta_t=DELTA_T, epsilon=EPSILON)
    assert jnp.allclose(y_f32, y32, atol=6e-2, rtol=6e-2), "y drift vs f32 reference"
    assert jnp.allclose(h_f32, h32, atol=6e-2, rtol=6e-2), "h drift vs f32 reference"

    print("KERNEL_OK")
</pallas_src>

<mosaic_0001>
module attributes {stable_mosaic.version = 11 : i64} {
  func.func @_neural_ode_packed_kernel(%arg0: i32, %arg1: memref<1000x16xbf16, #tpu.memory_space<vmem>>, %arg2: memref<16x128xbf16, #tpu.memory_space<vmem>>, %arg3: memref<1x128xf32, #tpu.memory_space<vmem>>, %arg4: memref<128x128xbf16, #tpu.memory_space<vmem>>, %arg5: memref<1x128xf32, #tpu.memory_space<vmem>>, %arg6: memref<128x128xbf16, #tpu.memory_space<vmem>>, %arg7: memref<1x128xf32, #tpu.memory_space<vmem>>, %arg8: memref<1000x128xbf16, #tpu.memory_space<vmem>>) attributes {dimension_semantics = [#tpu.dimension_semantics<parallel>], iteration_bounds = array<i64: 1>, scalar_prefetch = 0 : i64, scratch_operands = 0 : i64, tpu.core_type = #tpu.core_type<tc>, window_params = [{transform_indices = @transform_0, window_bounds = array<i64: 1000, 16>}, {pipeline_mode = #tpu.pipeline_mode<synchronous>, transform_indices = @transform_1, window_bounds = array<i64: 16, 128>}, {pipeline_mode = #tpu.pipeline_mode<synchronous>, transform_indices = @transform_2, window_bounds = array<i64: 1, 128>}, {pipeline_mode = #tpu.pipeline_mode<synchronous>, transform_indices = @transform_3, window_bounds = array<i64: 128, 128>}, {pipeline_mode = #tpu.pipeline_mode<synchronous>, transform_indices = @transform_4, window_bounds = array<i64: 1, 128>}, {pipeline_mode = #tpu.pipeline_mode<synchronous>, transform_indices = @transform_5, window_bounds = array<i64: 128, 128>}, {pipeline_mode = #tpu.pipeline_mode<synchronous>, transform_indices = @transform_6, window_bounds = array<i64: 1, 128>}, {transform_indices = @transform_7, window_bounds = array<i64: 1000, 128>}]} {
    %c0 = arith.constant 0 : index
    %c0_0 = arith.constant 0 : index
    %0 = vector.load %arg1[%c0, %c0_0] : memref<1000x16xbf16, #tpu.memory_space<vmem>>, vector<1000x16xbf16>
    %c0_1 = arith.constant 0 : index
    %c0_2 = arith.constant 0 : index
    %1 = vector.load %arg2[%c0_1, %c0_2] : memref<16x128xbf16, #tpu.memory_space<vmem>>, vector<16x128xbf16>
    %c0_3 = arith.constant 0 : index
    %c0_4 = arith.constant 0 : index
    %2 = vector.load %arg3[%c0_3, %c0_4] : memref<1x128xf32, #tpu.memory_space<vmem>>, vector<1x128xf32>
    %c0_5 = arith.constant 0 : index
    %c0_6 = arith.constant 0 : index
    %3 = vector.load %arg4[%c0_5, %c0_6] : memref<128x128xbf16, #tpu.memory_space<vmem>>, vector<128x128xbf16>
    %c0_7 = arith.constant 0 : index
    %c0_8 = arith.constant 0 : index
    %4 = vector.load %arg5[%c0_7, %c0_8] : memref<1x128xf32, #tpu.memory_space<vmem>>, vector<1x128xf32>
    %cst = arith.constant dense<0.000000e+00> : vector<1000x128xf32>
    %5 = tpu.matmul %0, %1, %cst {dimension_numbers = #tpu.dot_dimension_numbers<[1], [0], [0], [1], [0, 0, 1, 1], [], []>} : vector<1000x16xbf16>, vector<16x128xbf16>, vector<1000x128xf32> -> vector<1000x128xf32>
    %6 = vector.broadcast %2 : vector<1x128xf32> to vector<1000x128xf32>
    %7 = arith.addf %5, %6 : vector<1000x128xf32>
    %c0_i32 = arith.constant 0 : i32
    %8 = arith.truncf %7 : vector<1000x128xf32> to vector<1000x128xbf16>
    %cst_9 = arith.constant dense<0.000000e+00> : vector<1000x128xf32>
    %9 = tpu.matmul %8, %3, %cst_9 {dimension_numbers = #tpu.dot_dimension_numbers<[1], [0], [0], [1], [0, 0, 1, 1], [], []>} : vector<1000x128xbf16>, vector<128x128xbf16>, vector<1000x128xf32> -> vector<1000x128xf32>
    %10 = vector.broadcast %4 : vector<1x128xf32> to vector<1000x128xf32>
    %11 = arith.addf %9, %10 : vector<1000x128xf32>
    %12 = math.tanh %11 : vector<1000x128xf32>
    %cst_10 = arith.constant 1.000000e-01 : f32
    %13 = vector.broadcast %cst_10 : f32 to vector<1000x128xf32>
    %14 = arith.mulf %13, %12 : vector<1000x128xf32>
    %15 = arith.addf %7, %14 : vector<1000x128xf32>
    %c1_i32 = arith.constant 1 : i32
    %16 = arith.truncf %15 : vector<1000x128xf32> to vector<1000x128xbf16>
    %cst_11 = arith.constant dense<0.000000e+00> : vector<1000x128xf32>
    %17 = tpu.matmul %16, %3, %cst_11 {dimension_numbers = #tpu.dot_dimension_numbers<[1], [0], [0], [1], [0, 0, 1, 1], [], []>} : vector<1000x128xbf16>, vector<128x128xbf16>, vector<1000x128xf32> -> vector<1000x128xf32>
    %18 = vector.broadcast %4 : vector<1x128xf32> to vector<1000x128xf32>
    %19 = arith.addf %17, %18 : vector<1000x128xf32>
    %20 = math.tanh %19 : vector<1000x128xf32>
    %cst_12 = arith.constant 1.000000e-01 : f32
    %21 = vector.broadcast %cst_12 : f32 to vector<1000x128xf32>
    %22 = arith.mulf %21, %20 : vector<1000x128xf32>
    %23 = arith.addf %15, %22 : vector<1000x128xf32>
    %c2_i32 = arith.constant 2 : i32
    %24 = arith.truncf %23 : vector<1000x128xf32> to vector<1000x128xbf16>
    %cst_13 = arith.constant dense<0.000000e+00> : vector<1000x128xf32>
    %25 = tpu.matmul %24, %3, %cst_13 {dimension_numbers = #tpu.dot_dimension_numbers<[1], [0], [0], [1], [0, 0, 1, 1], [], []>} : vector<1000x128xbf16>, vector<128x128xbf16>, vector<1000x128xf32> -> vector<1000x128xf32>
    %26 = vector.broadcast %4 : vector<1x128xf32> to vector<1000x128xf32>
    %27 = arith.addf %25, %26 : vector<1000x128xf32>
    %28 = math.tanh %27 : vector<1000x128xf32>
    %cst_14 = arith.constant 1.000000e-01 : f32
    %29 = vector.broadcast %cst_14 : f32 to vector<1000x128xf32>
    %30 = arith.mulf %29, %28 : vector<1000x128xf32>
    %31 = arith.addf %23, %30 : vector<1000x128xf32>
    %32 = arith.truncf %31 : vector<1000x128xf32> to vector<1000x128xbf16>
    %c0_15 = arith.constant 0 : index
    %c0_16 = arith.constant 0 : index
    %33 = vector.load %arg6[%c0_15, %c0_16] : memref<128x128xbf16, #tpu.memory_space<vmem>>, vector<128x128xbf16>
    %cst_17 = arith.constant dense<0.000000e+00> : vector<1000x128xf32>
    %34 = tpu.matmul %32, %33, %cst_17 {dimension_numbers = #tpu.dot_dimension_numbers<[1], [0], [0], [1], [0, 0, 1, 1], [], []>} : vector<1000x128xbf16>, vector<128x128xbf16>, vector<1000x128xf32> -> vector<1000x128xf32>
    %c0_18 = arith.constant 0 : index
    %c0_19 = arith.constant 0 : index
    %35 = vector.load %arg7[%c0_18, %c0_19] : memref<1x128xf32, #tpu.memory_space<vmem>>, vector<1x128xf32>
    %36 = vector.broadcast %35 : vector<1x128xf32> to vector<1000x128xf32>
    %37 = arith.addf %34, %36 : vector<1000x128xf32>
    %38 = arith.addf %31, %37 : vector<1000x128xf32>
    %39 = arith.truncf %38 : vector<1000x128xf32> to vector<1000x128xbf16>
    %c0_20 = arith.constant 0 : index
    %c0_21 = arith.constant 0 : index
    %40 = vector.load %arg8[%c0_20, %c0_21] : memref<1000x128xbf16, #tpu.memory_space<vmem>>, vector<1000x128xbf16>
    tpu.vector_store %arg8[%c0_20, %c0_21], %39 {strides = array<i32>} : memref<1000x128xbf16, #tpu.memory_space<vmem>>, vector<1000x128xbf16>,
    return
  }
  func.func @transform_0(%arg0: i32) -> (i32, i32) {
    %c0_i32 = arith.constant 0 : i32
    %c0_i32_0 = arith.constant 0 : i32
    return %arg0, %c0_i32 : i32, i32
  }
  func.func @transform_1(%arg0: i32) -> (i32, i32) {
    %c0_i32 = arith.constant 0 : i32
    %c0_i32_0 = arith.constant 0 : i32
    %c0_i32_1 = arith.constant 0 : i32
    return %c0_i32, %c0_i32_0 : i32, i32
  }
  func.func @transform_2(%arg0: i32) -> (i32, i32) {
    %c0_i32 = arith.constant 0 : i32
    %c0_i32_0 = arith.constant 0 : i32
    %c0_i32_1 = arith.constant 0 : i32
    return %c0_i32, %c0_i32_0 : i32, i32
  }
  func.func @transform_3(%arg0: i32) -> (i32, i32) {
    %c0_i32 = arith.constant 0 : i32
    %c0_i32_0 = arith.constant 0 : i32
    %c0_i32_1 = arith.constant 0 : i32
    return %c0_i32, %c0_i32_0 : i32, i32
  }
  func.func @transform_4(%arg0: i32) -> (i32, i32) {
    %c0_i32 = arith.constant 0 : i32
    %c0_i32_0 = arith.constant 0 : i32
    %c0_i32_1 = arith.constant 0 : i32
    return %c0_i32, %c0_i32_0 : i32, i32
  }
  func.func @transform_5(%arg0: i32) -> (i32, i32) {
    %c0_i32 = arith.constant 0 : i32
    %c0_i32_0 = arith.constant 0 : i32
    %c0_i32_1 = arith.constant 0 : i32
    return %c0_i32, %c0_i32_0 : i32, i32
  }
  func.func @transform_6(%arg0: i32) -> (i32, i32) {
    %c0_i32 = arith.constant 0 : i32
    %c0_i32_0 = arith.constant 0 : i32
    %c0_i32_1 = arith.constant 0 : i32
    return %c0_i32, %c0_i32_0 : i32, i32
  }
  func.func @transform_7(%arg0: i32) -> (i32, i32) {
    %c0_i32 = arith.constant 0 : i32
    %c0_i32_0 = arith.constant 0 : i32
    return %arg0, %c0_i32 : i32, i32
  }
}

</mosaic_0001>

<bundles_post_ra>
// kernel: tpu_custom_call.1
= control target key start
LH: loop header
LB: loop body
LE: loop exit
PB: predicated region body
PF: predicated region fallthrough
CT: control target
= control target key end

     0   :  { %vm495_vm0 = vcmask 130048   ;;  %s9161_s0 = inlined_call_operand.vmem [shape: bf16[1000,16], index: 0, kind: input, shape index: {}]   ;;  %s9162_s1 = inlined_call_operand.vmem [shape: bf16[16,128], index: 1, kind: input, shape index: {}]   ;;  %s9163_s2 = inlined_call_operand.vmem [shape: f32[1,128], index: 2, kind: input, shape index: {}]   ;;  %s9164_s3 = inlined_call_operand.vmem [shape: bf16[128,128], index: 3, kind: input, shape index: {}]   ;;  %s9165_s4 = inlined_call_operand.vmem [shape: f32[1,128], index: 4, kind: input, shape index: {}]   ;;  %s9166_s5 = inlined_call_operand.vmem [shape: bf16[128,128], index: 5, kind: input, shape index: {}]   ;;  %s9167_s6 = inlined_call_operand.vmem [shape: f32[1,128], index: 6, kind: input, shape index: {}]   ;;  %s9168_s7 = inlined_call_operand.hbm [shape: bf16[1000,128], index: 7, kind: output, shape index: {}]  }
   0x1   :  { %v4630_v0 = vld [vmem:[%s9162_s1] sm:$0xff]  ;;  %v4638_v1 = vld [vmem:[%s9164_s3 + $0x38] sm:$0xff]  ;;  %v4585_v2 = vld [vmem:[%s9161_s0 + $0x88] sm:$0xff] }
   0x2   :  { %5018 = vmatpush.bf16.msra.mxu1 %v4630_v0  ;;  %692 = vmatpush.bf16.msra.mxu0 %v4630_v0 }
   0x3   :  { %12 = vsyncpa [#allocation3], 0  ;;  %5019 = vmatpush.bf16.msra.mxu2 %v4630_v0  ;;  %5020 = vmatpush.bf16.msra.mxu3 %v4630_v0  ;;  %v4637_v3 = vld [vmem:[%s9164_s3 + $0x30] sm:$0xff]  ;;  %v4587_v5 = vld [vmem:[%s9161_s0 + $0x98] sm:$0xff]  ;;  %s5826_s19 = smov 64   ;;  %s5827_s20 = smov 4  }
   0x4   :  { %v4586_v4 = vld [vmem:[%s9161_s0 + $0x90] sm:$0xff]  ;;  %v4636_v6 = vld [vmem:[%s9164_s3 + $0x28] sm:$0xff]  ;;  %v4588_v7 = vld [vmem:[%s9161_s0 + $0xa0] sm:$0xff] }
   0x5   :  { %4458 = vmatmul.msk.bf16.vlgmr.msra.gmra.mxu1 %vm495_vm0, %v4585_v2  ;;  %v4589_v8 = vld [vmem:[%s9161_s0 + $0xa8] sm:$0xff]  ;;  %v4635_v9 = vld [vmem:[%s9164_s3 + $0x20] sm:$0xff]  ;;  %v4590_v10 = vld [vmem:[%s9161_s0 + $0xb0] sm:$0xff] }
   0x6   :  { %1122 = vmatpush.bf16.msrb.mxu1 %v4638_v1  ;;  %v4591_v11 = vld [vmem:[%s9161_s0 + $0xb8] sm:$0xff]  ;;  %v4568_v12 = vld [vmem:[%s9161_s0] sm:$0xff]  ;;  %v4569_v15 = vld [vmem:[%s9161_s0 + $0x8] sm:$0xff] }
   0x7   :  { %1883 = vmatpush.bf16.msrb.mxu2 %v4638_v1  ;;  %2644 = vmatpush.bf16.msrb.mxu3 %v4638_v1  ;;  %v4634_v13 = vld [vmem:[%s9164_s3 + $0x18] sm:$0xff]  ;;  %v4592_v14 = vld [vmem:[%s9161_s0 + $0xc0] sm:$0xff]  ;;  %v4602_v16 = vld [vmem:[%s9161_s0 + $0x110] sm:$0xff] }
   0x8   :  { %4441 = vmatmul.msk.bf16.vlgmr.msra.gmra.mxu0 %vm495_vm0, %v4568_v12  ;;  %v4593_v17 = vld [vmem:[%s9161_s0 + $0xc8] sm:$0xff]  ;;  %v4570_v18 = vld [vmem:[%s9161_s0 + $0x10] sm:$0xff]  ;;  %4475 = vmatmul.msk.bf16.vlgmr.msra.gmra.mxu2 %vm495_vm0, %v4602_v16  ;;  %v4603_v22 = vld [vmem:[%s9161_s0 + $0x118] sm:$0xff] }
   0x9   :  { %v4633_v21 = vld [vmem:[%s9164_s3 + $0x10] sm:$0xff]  ;;  %v4571_v24 = vld [vmem:[%s9161_s0 + $0x18] sm:$0xff]  ;;  %v4604_v27 = vld [vmem:[%s9161_s0 + $0x120] sm:$0xff] }
   0xa   :  { %1123 = vmatpush.bf16.msrb.mxu1 %v4637_v3  ;;  %v4594_v23 = vld [vmem:[%s9161_s0 + $0xd0] sm:$0xff]  ;;  %v4595_v28 = vld [vmem:[%s9161_s0 + $0xd8] sm:$0xff]  ;;  %v4572_v29 = vld [vmem:[%s9161_s0 + $0x20] sm:$0xff] }
   0xb   :  { %1884 = vmatpush.bf16.msrb.mxu2 %v4637_v3  ;;  %2645 = vmatpush.bf16.msrb.mxu3 %v4637_v3  ;;  %v4632_v32 = vld [vmem:[%s9164_s3 + $0x8] sm:$0xff]  ;;  %v4596_v34 = vld [vmem:[%s9161_s0 + $0xe0] sm:$0xff]  ;;  %v4606_v38 = vld [vmem:[%s9161_s0 + $0x130] sm:$0xff] }
   0xc   :  { %v4605_v33 = vld [vmem:[%s9161_s0 + $0x128] sm:$0xff]  ;;  %v4574_v40 = vld [vmem:[%s9161_s0 + $0x30] sm:$0xff]  ;;  %v4607_v43 = vld [vmem:[%s9161_s0 + $0x138] sm:$0xff] }
   0xd   :  { %v4573_v35 = vld [vmem:[%s9161_s0 + $0x28] sm:$0xff]  ;;  %v4598_v44 = vld [vmem:[%s9161_s0 + $0xf0] sm:$0xff]  ;;  %v4575_v45 = vld [vmem:[%s9161_s0 + $0x38] sm:$0xff] }
   0xe   :  { %1124 = vmatpush.bf16.msrb.mxu1 %v4636_v6  ;;  %v4597_v39 = vld [vmem:[%s9161_s0 + $0xe8] sm:$0xff]  ;;  %v4631_v47 = vld [vmem:[%s9164_s3] sm:$0xff]  ;;  %v4599_v51 = vld [vmem:[%s9161_s0 + $0xf8] sm:$0xff] }
   0xf   :  { %1885 = vmatpush.bf16.msrb.mxu2 %v4636_v6  ;;  %2646 = vmatpush.bf16.msrb.mxu3 %v4636_v6  ;;  %v4608_v50 = vld [vmem:[%s9161_s0 + $0x140] sm:$0xff]  ;;  %v4609_v57 = vld [vmem:[%s9161_s0 + $0x148] sm:$0xff]  ;;  %v4610_v0 = vld [vmem:[%s9161_s0 + $0x150] sm:$0xff] }
  0x10   :  { %v4576_v52 = vld [vmem:[%s9161_s0 + $0x40] sm:$0xff]  ;;  %v4577_v59 = vld [vmem:[%s9161_s0 + $0x48] sm:$0xff]  ;;  %v4578_v2 = vld [vmem:[%s9161_s0 + $0x50] sm:$0xff] }
  0x11   :  { %v4600_v58 = vld [vmem:[%s9161_s0 + $0x100] sm:$0xff]  ;;  %v4601_v1 = vld [vmem:[%s9161_s0 + $0x108] sm:$0xff]  ;;  %v4611_v12 = vld [vmem:[%s9161_s0 + $0x158] sm:$0xff] }
  0x12   :  { %1125 = vmatpush.bf16.msrb.mxu1 %v4635_v9 }
  0x13   :  { %1886 = vmatpush.bf16.msrb.mxu2 %v4635_v9  ;;  %2647 = vmatpush.bf16.msrb.mxu3 %v4635_v9 }
  0x15   :  { %4459 = vmatmul.msk.bf16.gmra.mxu1 %vm495_vm0, %v4586_v4 }
  0x16   :  { %1126 = vmatpush.bf16.msrb.mxu1 %v4634_v13 }
  0x17   :  { %1887 = vmatpush.bf16.msrb.mxu2 %v4634_v13  ;;  %2648 = vmatpush.bf16.msrb.mxu3 %v4634_v13  ;;  %v4579_v13 = vld [vmem:[%s9161_s0 + $0x58] sm:$0xff] }
  0x18   :  { %4442 = vmatmul.msk.bf16.gmra.mxu0 %vm495_vm0, %v4569_v15  ;;  %4476 = vmatmul.msk.bf16.gmra.mxu2 %vm495_vm0, %v4603_v22 }
  0x1a   :  { %1127 = vmatpush.bf16.msrb.mxu1 %v4633_v21 }
  0x1b   :  { %1888 = vmatpush.bf16.msrb.mxu2 %v4633_v21  ;;  %2649 = vmatpush.bf16.msrb.mxu3 %v4633_v21 }
  0x1e   :  { %1128 = vmatpush.bf16.msrb.mxu1 %v4632_v32 }
  0x1f   :  { %1889 = vmatpush.bf16.msrb.mxu2 %v4632_v32  ;;  %2650 = vmatpush.bf16.msrb.mxu3 %v4632_v32 }
  0x22   :  { %1129 = vmatpush.bf16.msrb.mxu1 %v4631_v47 }
  0x23   :  { %1890 = vmatpush.bf16.msrb.mxu2 %v4631_v47  ;;  %2651 = vmatpush.bf16.msrb.mxu3 %v4631_v47 }
  0x25   :  { %4460 = vmatmul.msk.bf16.gmra.mxu1 %vm495_vm0, %v4587_v5 }
  0x28   :  { %4443 = vmatmul.msk.bf16.gmra.mxu0 %vm495_vm0, %v4570_v18  ;;  %4477 = vmatmul.msk.bf16.gmra.mxu2 %vm495_vm0, %v4604_v27  ;;  %v4612_v27 = vld [vmem:[%s9161_s0 + $0x160] sm:$0xff] }
  0x35   :  { %4461 = vmatmul.msk.bf16.gmra.mxu1 %vm495_vm0, %v4588_v7  ;;  %v6084_v7 = vld [vmem:[%s9163_s2] ss:$0 sm:$0xff] }
  0x38   :  { %4444 = vmatmul.msk.bf16.gmra.mxu0 %vm495_vm0, %v4571_v24  ;;  %4478 = vmatmul.msk.bf16.gmra.mxu2 %vm495_vm0, %v4605_v33 }
  0x45   :  { %4462 = vmatmul.msk.bf16.gmra.mxu1 %vm495_vm0, %v4589_v8 }
  0x48   :  { %4445 = vmatmul.msk.bf16.gmra.mxu0 %vm495_vm0, %v4572_v29  ;;  %4479 = vmatmul.msk.bf16.gmra.mxu2 %vm495_vm0, %v4606_v38 }
  0x55   :  { %4463 = vmatmul.msk.bf16.gmra.mxu1 %vm495_vm0, %v4590_v10 }
  0x58   :  { %4446 = vmatmul.msk.bf16.gmra.mxu0 %vm495_vm0, %v4573_v35  ;;  %4480 = vmatmul.msk.bf16.gmra.mxu2 %vm495_vm0, %v4607_v43 }
  0x65   :  { %4464 = vmatmul.msk.bf16.gmra.mxu1 %vm495_vm0, %v4591_v11 }
  0x68   :  { %4447 = vmatmul.msk.bf16.gmra.mxu0 %vm495_vm0, %v4574_v40  ;;  %4481 = vmatmul.msk.bf16.gmra.mxu2 %vm495_vm0, %v4608_v50 }
  0x75   :  { %4465 = vmatmul.msk.bf16.gmra.mxu1 %vm495_vm0, %v4592_v14 }
  0x78   :  { %4448 = vmatmul.msk.bf16.gmra.mxu0 %vm495_vm0, %v4575_v45  ;;  %4482 = vmatmul.msk.bf16.gmra.mxu2 %vm495_vm0, %v4609_v57  ;;  %v4581_v45 = vld [vmem:[%s9161_s0 + $0x68] sm:$0xff] }
  0x82   :  { %v5935_v19 = vpop.f32.mrf.mxu1 }
  0x85   :  { %4466 = vmatmul.msk.bf16.gmra.mxu1 %vm495_vm0, %v4593_v17  ;;  %v694_v49 = vpop.f32.mrf.mxu0 }
  0x86   :  { %v6089_v9 = vadd.f32 %v6084_v7, %v694_v49 }
  0x88   :  { %4449 = vmatmul.msk.bf16.gmra.mxu0 %vm495_vm0, %v4576_v52  ;;  %4483 = vmatmul.msk.bf16.gmra.mxu2 %vm495_vm0, %v4610_v0 }
  0x8a   :  { %v5940_v20 = vpop.f32.mrf.mxu1 }
  0x8b   :  { %v6077_v4 = vpop.f32.mrf.mxu2 }
  0x8c   :  { %9312 = vst [vmem:[#allocation5_spill] sm:$0xff] %v6077_v4 }
  0x8d   :  { %v696_v54 = vpop.f32.mrf.mxu0 }
  0x8e   :  { %v6092_v10 = vadd.f32 %v6084_v7, %v696_v54 }
  0x90   :  { %v1008_v15 = vpack.c.bf16 %v6092_v10, %v6089_v9 }
  0x92   :  { %v5954_v25 = vpop.f32.mrf.mxu1 }
  0x93   :  { %v6086_v8 = vpop.f32.mrf.mxu2 }
  0x94   :  { %9313 = vst [vmem:[#allocation6_spill] sm:$0xff] %v6086_v8 }
  0x95   :  { %4467 = vmatmul.msk.bf16.gmra.mxu1 %vm495_vm0, %v4594_v23  ;;  %v699_v56 = vpop.f32.mrf.mxu0 }
  0x96   :  { %v6113_v22 = vadd.f32 %v6084_v7, %v699_v56 }
  0x98   :  { %4450 = vmatmul.msk.bf16.gmra.mxu0 %vm495_vm0, %v4577_v59  ;;  %4484 = vmatmul.msk.bf16.gmra.mxu2 %vm495_vm0, %v4611_v12  ;;  %v4614_v59 = vld [vmem:[%s9161_s0 + $0x170] sm:$0xff] }
  0x9a   :  { %v5959_v26 = vpop.f32.mrf.mxu1 }
  0x9b   :  { %v6106_v16 = vpop.f32.mrf.mxu2 }
  0x9c   :  { %9315 = vst [vmem:[#allocation8_spill] sm:$0xff] %v6106_v16 }
  0x9d   :  { %v701_v61 = vpop.f32.mrf.mxu0 }
  0x9e   :  { %v6116_v23 = vadd.f32 %v6084_v7, %v701_v61  ;;  %v4582_v61 = vld [vmem:[%s9161_s0 + $0x70] sm:$0xff] }
  0xa0   :  { %v1009_v32 = vpack.c.bf16 %v6116_v23, %v6113_v22 }
  0xa2   :  { %v5970_v30 = vpop.f32.mrf.mxu1 }
  0xa3   :  { %v6110_v21 = vpop.f32.mrf.mxu2 }
  0xa4   :  { %9317 = vst [vmem:[#allocation10_spill] sm:$0xff] %v6110_v21 }
  0xa5   :  { %4468 = vmatmul.msk.bf16.gmra.mxu1 %vm495_vm0, %v4595_v28  ;;  %v704_v63 = vpop.f32.mrf.mxu0  ;;  %v4580_v28 = vld [vmem:[%s9161_s0 + $0x60] sm:$0xff] }
  0xa8   :  { %4451 = vmatmul.msk.bf16.gmra.mxu0 %vm495_vm0, %v4578_v2  ;;  %4485 = vmatmul.msk.bf16.gmra.mxu2 %vm495_vm0, %v4612_v27  ;;  %v4615_v27 = vld [vmem:[%s9161_s0 + $0x178] sm:$0xff] }
  0xaa   :  { %v5975_v31 = vpop.f32.mrf.mxu1 }
  0xab   :  { %v6130_v33 = vpop.f32.mrf.mxu2 }
  0xac   :  { %9319 = vst [vmem:[#allocation12_spill] sm:$0xff] %v6130_v33 }
  0xad   :  { %v706_v5 = vpop.f32.mrf.mxu0 }
  0xae   :  { %v6140_v40 = vadd.f32 %v6084_v7, %v706_v5 }
  0xb2   :  { %v5989_v36 = vpop.f32.mrf.mxu1 }
  0xb3   :  { %v6134_v38 = vpop.f32.mrf.mxu2 }
  0xb4   :  { %9321 = vst [vmem:[#allocation14_spill] sm:$0xff] %v6134_v38 }
  0xb5   :  { %4469 = vmatmul.msk.bf16.gmra.mxu1 %vm495_vm0, %v4596_v34  ;;  %v709_v11 = vpop.f32.mrf.mxu0 }
  0xb6   :  { %v6161_v56 = vadd.f32 %v6084_v7, %v709_v11  ;;  %v4618_v11 = vld [vmem:[%s9161_s0 + $0x190] sm:$0xff] }
  0xb7   :  { %4491 = vmatmul.msk.bf16.vlgmr.msra.gmra.mxu3 %vm495_vm0, %v4618_v11  ;;  %v4616_v11 = vld [vmem:[%s9161_s0 + $0x180] sm:$0xff] }
  0xb8   :  { %4452 = vmatmul.msk.bf16.gmra.mxu0 %vm495_vm0, %v4579_v13 }
  0xba   :  { %v5994_v37 = vpop.f32.mrf.mxu1 }
  0xbb   :  { %v6154_v50 = vpop.f32.mrf.mxu2 }
  0xbc   :  { %9323 = vst [vmem:[#allocation16_spill] sm:$0xff] %v6154_v50 }
  0xbd   :  { %v711_v17 = vpop.f32.mrf.mxu0 }
  0xbe   :  { %v6164_v57 = vadd.f32 %v6084_v7, %v711_v17 }
  0xc0   :  { %v1011_v0 = vpack.c.bf16 %v6164_v57, %v6161_v56 }
  0xc2   :  { %v6005_v41 = vpop.f32.mrf.mxu1 }
  0xc3   :  { %v6158_v54 = vpop.f32.mrf.mxu2 }
  0xc4   :  { %9325 = vst [vmem:[#allocation18_spill] sm:$0xff] %v6158_v54 }
  0xc5   :  { %4470 = vmatmul.msk.bf16.gmra.mxu1 %vm495_vm0, %v4597_v39  ;;  %v714_v24 = vpop.f32.mrf.mxu0  ;;  %v6137_v39 = vadd.f32 %v6084_v7, %v704_v63 }
  0xc6   :  { %v6189_v13 = vadd.f32 %v6084_v7, %v714_v24 }
  0xc7   :  { %v1010_v49 = vpack.c.bf16 %v6140_v40, %v6137_v39 }
  0xc8   :  { %4453 = vmatmul.msk.bf16.gmra.mxu0 %vm495_vm0, %v4580_v28  ;;  %v4583_v28 = vld [vmem:[%s9161_s0 + $0x78] sm:$0xff] }
  0xca   :  { %v6010_v42 = vpop.f32.mrf.mxu1 }
  0xcd   :  { %v716_v34 = vpop.f32.mrf.mxu0 }
  0xd2   :  { %v6021_v46 = vpop.f32.mrf.mxu1 }
  0xd5   :  { %4471 = vmatmul.msk.bf16.gmra.mxu1 %vm495_vm0, %v4598_v44  ;;  %v719_v43 = vpop.f32.mrf.mxu0  ;;  %v4613_v44 = vld [vmem:[%s9161_s0 + $0x168] sm:$0xff] }
  0xd6   :  { %4486 = vmatmul.msk.bf16.gmra.mxu2 %vm495_vm0, %v4613_v44 }
  0xd8   :  { %4454 = vmatmul.msk.bf16.gmra.mxu0 %vm495_vm0, %v4581_v45 }
  0xda   :  { %v6029_v48 = vpop.f32.mrf.mxu1 }
  0xe2   :  { %v6040_v53 = vpop.f32.mrf.mxu1 }
  0xe5   :  { %4472 = vmatmul.msk.bf16.gmra.mxu1 %vm495_vm0, %v4599_v51  ;;  %v721_v51 = vpop.f32.mrf.mxu0 }
  0xe6   :  { %4487 = vmatmul.msk.bf16.gmra.mxu2 %vm495_vm0, %v4614_v59 }
  0xe8   :  { %4455 = vmatmul.msk.bf16.gmra.mxu0 %vm495_vm0, %v4582_v61  ;;  %v6217_v61 = vadd.f32 %v6084_v7, %v719_v43 }
  0xea   :  { %v6045_v55 = vpop.f32.mrf.mxu1 }
  0xf2   :  { %v6056_v60 = vpop.f32.mrf.mxu1 }
  0xf5   :  { %4473 = vmatmul.msk.bf16.gmra.mxu1 %vm495_vm0, %v4600_v58  ;;  %v724_v58 = vpop.f32.mrf.mxu0 }
  0xf6   :  { %4488 = vmatmul.msk.bf16.gmra.mxu2 %vm495_vm0, %v4615_v27  ;;  %v4584_v27 = vld [vmem:[%s9161_s0 + $0x80] sm:$0xff] }
  0xf8   :  { %4456 = vmatmul.msk.bf16.gmra.mxu0 %vm495_vm0, %v4583_v28 }
  0xfa   :  { %v6061_v62 = vpop.f32.mrf.mxu1 }
  0xfd   :  { %v726_v2 = vpop.f32.mrf.mxu0 }
 0x102   :  { %v6072_v3 = vpop.f32.mrf.mxu1 }
 0x105   :  { %4474 = vmatmul.msk.bf16.gmra.mxu1 %vm495_vm0, %v4601_v1  ;;  %v6178_v1 = vpop.f32.mrf.mxu2  ;;  %v729_v17 = vpop.f32.mrf.mxu0 }
 0x106   :  { %9327 = vst [vmem:[#allocation20_spill] sm:$0xff] %v6178_v1  ;;  %4489 = vmatmul.msk.bf16.gmra.mxu2 %vm495_vm0, %v4616_v11  ;;  %v4617_v11 = vld [vmem:[%s9161_s0 + $0x188] sm:$0xff] }
 0x108   :  { %4457 = vmatmul.msk.bf16.gmra.mxu0 %vm495_vm0, %v4584_v27  ;;  %v6249_v27 = vadd.f32 %v6084_v7, %v726_v2  ;;  %v6267_v2 = vadd.f32 %v6084_v7, %v729_v17  ;;  %v4622_v17 = vld [vmem:[%s9161_s0 + $0x1b0] sm:$0xff] }
 0x10a   :  { %v6079_v6 = vpop.f32.mrf.mxu1 }
 0x10d   :  { %v6185_v12 = vpop.f32.mrf.mxu2  ;;  %v731_v44 = vpop.f32.mrf.mxu0 }
 0x10e   :  { %9329 = vst [vmem:[#allocation22_spill] sm:$0xff] %v6185_v12  ;;  %v6246_v12 = vadd.f32 %v6084_v7, %v724_v58  ;;  %v4621_v58 = vld [vmem:[%s9161_s0 + $0x1a8] sm:$0xff] }
 0x110   :  { %v1014_v1 = vpack.c.bf16 %v6249_v27, %v6246_v12 }
 0x112   :  { %v6100_v14 = vpop.f32.mrf.mxu1 }
 0x113   :  { %9314 = vst [vmem:[#allocation7_spill] sm:$0xff] %v6100_v14 }
 0x115   :  { %1130 = vmatmul.bf16.vlgmr.msrb.gmra.mxu1 %v1008_v15  ;;  %v6192_v15 = vadd.f32 %v6084_v7, %v716_v34  ;;  %v6206_v34 = vpop.f32.mrf.mxu2 }
 0x116   :  { %9331 = vst [vmem:[#allocation24_spill] sm:$0xff] %v6206_v34  ;;  %4490 = vmatmul.msk.bf16.gmra.mxu2 %vm495_vm0, %v4617_v11  ;;  %v6270_v11 = vadd.f32 %v6084_v7, %v731_v44 }
 0x117   :  { %v1012_v24 = vpack.c.bf16 %v6192_v15, %v6189_v13 }
 0x11a   :  { %v6108_v18 = vpop.f32.mrf.mxu1 }
 0x11b   :  { %9316 = vst [vmem:[#allocation9_spill] sm:$0xff] %v6108_v18 }
 0x11d   :  { %v6213_v59 = vpop.f32.mrf.mxu2 }
 0x11e   :  { %9333 = vst [vmem:[#allocation26_spill] sm:$0xff] %v6213_v59  ;;  %v4620_v59 = vld [vmem:[%s9161_s0 + $0x1a0] sm:$0xff] }
 0x122   :  { %v6124_v29 = vpop.f32.mrf.mxu1 }
 0x123   :  { %9318 = vst [vmem:[#allocation11_spill] sm:$0xff] %v6124_v29 }
 0x125   :  { %1135 = vmatmul.bf16.gmra.mxu1 %v1009_v32 }
 0x12a   :  { %v6132_v35 = vpop.f32.mrf.mxu1 }
 0x12b   :  { %9320 = vst [vmem:[#allocation13_spill] sm:$0xff] %v6132_v35 }
 0x132   :  { %v6148_v47 = vpop.f32.mrf.mxu1 }
 0x133   :  { %9322 = vst [vmem:[#allocation15_spill] sm:$0xff] %v6148_v47 }
 0x135   :  { %1140 = vmatmul.bf16.gmra.mxu1 %v1010_v49  ;;  %v4619_v49 = vld [vmem:[%s9161_s0 + $0x198] sm:$0xff] }
 0x136   :  { %4492 = vmatmul.msk.bf16.gmra.mxu3 %vm495_vm0, %v4619_v49 }
 0x13a   :  { %v6156_v52 = vpop.f32.mrf.mxu1 }
 0x13b   :  { %9324 = vst [vmem:[#allocation17_spill] sm:$0xff] %v6156_v52 }
 0x142   :  { %v6172_v63 = vpop.f32.mrf.mxu1 }
 0x143   :  { %9326 = vst [vmem:[#allocation19_spill] sm:$0xff] %v6172_v63 }
 0x145   :  { %1145 = vmatmul.bf16.gmra.mxu1 %v1011_v0  ;;  %v6220_v0 = vadd.f32 %v6084_v7, %v721_v51  ;;  %v6234_v51 = vpop.f32.mrf.mxu2 }
 0x146   :  { %9335 = vst [vmem:[#allocation28_spill] sm:$0xff] %v6234_v51  ;;  %4493 = vmatmul.msk.bf16.gmra.mxu3 %vm495_vm0, %v4620_v59 }
 0x147   :  { %v1013_v43 = vpack.c.bf16 %v6220_v0, %v6217_v61 }
 0x14a   :  { %v6180_v5 = vpop.f32.mrf.mxu1 }
 0x14b   :  { %9328 = vst [vmem:[#allocation21_spill] sm:$0xff] %v6180_v5 }
 0x152   :  { %v6200_v32 = vpop.f32.mrf.mxu1 }
 0x153   :  { %9330 = vst [vmem:[#allocation23_spill] sm:$0xff] %v6200_v32 }
 0x155   :  { %1150 = vmatmul.bf16.gmra.mxu1 %v1012_v24  ;;  %v734_v24 = vpop.f32.mrf.mxu0 }
 0x156   :  { %4494 = vmatmul.msk.bf16.gmra.mxu3 %vm495_vm0, %v4621_v58  ;;  %v6285_v44 = vadd.f32 %v6084_v7, %v734_v24 }
 0x15a   :  { %v6208_v45 = vpop.f32.mrf.mxu1 }
 0x15b   :  { %9332 = vst [vmem:[#allocation25_spill] sm:$0xff] %v6208_v45 }
 0x15d   :  { %v736_v34 = vpop.f32.mrf.mxu0 }
 0x15e   :  { %v6288_v58 = vadd.f32 %v6084_v7, %v736_v34 }
 0x160   :  { %v1016_v8 = vpack.c.bf16 %v6288_v58, %v6285_v44 }
 0x162   :  { %v6228_v28 = vpop.f32.mrf.mxu1 }
 0x163   :  { %9334 = vst [vmem:[#allocation27_spill] sm:$0xff] %v6228_v28 }
 0x165   :  { %1155 = vmatmul.bf16.gmra.mxu1 %v1013_v43  ;;  %v6251_v43 = vpop.f32.mrf.mxu2  ;;  %v739_v59 = vpop.f32.mrf.mxu0 }
 0x166   :  { %9337 = vst [vmem:[#allocation30_spill] sm:$0xff] %v6251_v43  ;;  %4495 = vmatmul.msk.bf16.gmra.mxu3 %vm495_vm0, %v4622_v17 }
 0x16a   :  { %v6236_v49 = vpop.f32.mrf.mxu1 }
 0x16b   :  { %9336 = vst [vmem:[#allocation29_spill] sm:$0xff] %v6236_v49 }
 0x16d   :  { %v6260_v50 = vpop.f32.mrf.mxu2  ;;  %v741_v43 = vpop.f32.mrf.mxu0 }
 0x16e   :  { %9340 = vst [vmem:[#allocation33_spill] sm:$0xff] %v6260_v50 }
 0x172   :  { %v6253_v51 = vpop.f32.mrf.mxu1 }
 0x173   :  { %9338 = vst [vmem:[#allocation31_spill] sm:$0xff] %v6253_v51 }
 0x175   :  { %1160 = vmatmul.bf16.gmra.mxu1 %v1014_v1  ;;  %v1015_v1 = vpack.c.bf16 %v6270_v11, %v6267_v2  ;;  %v6276_v50 = vpop.f32.mrf.mxu2  ;;  %v744_v21 = vpop.f32.mrf.mxu0 }
 0x176   :  { %9342 = vst [vmem:[#allocation35_spill] sm:$0xff] %v6276_v50 }
 0x17a   :  { %v6258_v54 = vpop.f32.mrf.mxu1 }
 0x17b   :  { %9339 = vst [vmem:[#allocation32_spill] sm:$0xff] %v6258_v54  ;;  %v6308_v54 = vadd.f32 %v6084_v7, %v739_v59 }
 0x17d   :  { %v6290_v16 = vpop.f32.mrf.mxu2  ;;  %v746_v4 = vpop.f32.mrf.mxu0 }
 0x17e   :  { %9344 = vst [vmem:[#allocation37_spill] sm:$0xff] %v6290_v16  ;;  %v4623_v16 = vld [vmem:[%s9161_s0 + $0x1b8] sm:$0xff] }
 0x17f   :  { %4496 = vmatmul.msk.bf16.gmra.mxu3 %vm495_vm0, %v4623_v16 }
 0x182   :  { %v6272_v38 = vpop.f32.mrf.mxu1 }
 0x183   :  { %9341 = vst [vmem:[#allocation34_spill] sm:$0xff] %v6272_v38 }
 0x185   :  { %1165 = vmatmul.bf16.gmra.mxu1 %v1015_v1  ;;  %v6295_v1 = vld [vmem:[%s9165_s4] ss:$0 sm:$0xff]  ;;  %v6300_v24 = vpop.f32.mrf.mxu2 }
 0x186   :  { %9345 = vst [vmem:[#allocation38_spill] sm:$0xff] %v6300_v24 }
 0x18a   :  { %v6278_v33 = vpop.f32.mrf.mxu1 }
 0x18b   :  { %9343 = vst [vmem:[#allocation36_spill] sm:$0xff] %v6278_v33  ;;  %v749_v33 = vpop.f32.mrf.mxu0 }
 0x18d   :  { %v6315_v28 = vpop.f32.mrf.mxu2 }
 0x18e   :  { %9346 = vst [vmem:[#allocation39_spill] sm:$0xff] %v6315_v28 }
 0x192   :  { %v1131_v50 = vpop.f32.mrf.mxu1 }
 0x193   :  { %v1132_v17 = vadd.f32 %v6295_v1, %v1131_v50 }
 0x195   :  { %1170 = vmatmul.bf16.gmra.mxu1 %v1016_v8  ;;  %5035 = vtanh.f32 %v1132_v17  ;;  %v6311_v8 = vadd.f32 %v6084_v7, %v741_v43  ;;  %v751_v43 = vpop.f32.mrf.mxu0 }
 0x19a   :  { %v1133_v34 = vpop.f32.mrf.mxu1 }
 0x19b   :  { %v1134_v38 = vadd.f32 %v6295_v1, %v1133_v34  ;;  %v5036_v51 = vpop.eup %5035  ;;  %v1017_v34 = vpack.c.bf16 %v6311_v8, %v6308_v54 }
 0x19c   :  { %v1570_v50 = vmul.f32 0.1, %v5036_v51 }
 0x19d   :  { %5037 = vtanh.f32 %v1134_v38 }
 0x19e   :  { %v6319_v16 = vadd.f32 %v1570_v50, %v6089_v9 }
 0x1a2   :  { %v1136_v17 = vpop.f32.mrf.mxu1 }
 0x1a3   :  { %v5038_v24 = vpop.eup %5037  ;;  %v1137_v38 = vadd.f32 %v6295_v1, %v1136_v17  ;;  %v6330_v17 = vpop.f32.mrf.mxu2 }
 0x1a4   :  { %v1571_v49 = vmul.f32 0.1, %v5038_v24  ;;  %v4624_v24 = vld [vmem:[%s9161_s0 + $0x1c0] sm:$0xff]  ;;  %9347 = vst [vmem:[#allocation40_spill] sm:$0xff] %v6330_v17 }
 0x1a5   :  { %1175 = vmatmul.bf16.gmra.mxu1 %v1017_v34  ;;  %5039 = vtanh.f32 %v1137_v38  ;;  %4497 = vmatmul.msk.bf16.gmra.mxu3 %vm495_vm0, %v4624_v24  ;;  %v754_v38 = vpop.f32.mrf.mxu0 }
 0x1a6   :  { %v6322_v59 = vadd.f32 %v1571_v49, %v6092_v10  ;;  %v6334_v10 = vadd.f32 %v6084_v7, %v744_v21  ;;  %v6337_v49 = vadd.f32 %v6084_v7, %v746_v4 }
 0x1a8   :  { %v1820_v51 = vpack.c.bf16 %v6322_v59, %v6319_v16 }
 0x1aa   :  { %v1138_v32 = vpop.f32.mrf.mxu1  ;;  %1891 = vmatmul.bf16.vlgmr.msrb.gmra.mxu2 %v1820_v51  ;;  %v1018_v51 = vpack.c.bf16 %v6337_v49, %v6334_v10 }
 0x1ab   :  { %v1139_v45 = vadd.f32 %v6295_v1, %v1138_v32  ;;  %v5040_v9 = vpop.eup %5039  ;;  %v6348_v17 = vpop.f32.mrf.mxu2 }
 0x1ac   :  { %v1572_v50 = vmul.f32 0.1, %v5040_v9  ;;  %9348 = vst [vmem:[#allocation41_spill] sm:$0xff] %v6348_v17 }
 0x1ad   :  { %5041 = vtanh.f32 %v1139_v45 }
 0x1ae   :  { %v6343_v24 = vadd.f32 %v1572_v50, %v6113_v22  ;;  %v4646_v22 = vld [vmem:[%s9166_s5 + $0x38] sm:$0xff]  ;;  %v6364_v50 = vadd.f32 %v6084_v7, %v751_v43 }
 0x1af   :  { %3473 = vmatpush.bf16.msrb.mxu0 %v4646_v22  ;;  %5021 = vmatpush.bf16.msra.mxu3 %v4646_v22 }
 0x1b2   :  { %v1141_v34 = vpop.f32.mrf.mxu1 }
 0x1b3   :  { %v5042_v32 = vpop.eup %5041  ;;  %v1142_v45 = vadd.f32 %v6295_v1, %v1141_v34  ;;  %v4625_v34 = vld [vmem:[%s9161_s0 + $0x1c8] sm:$0xff] }
 0x1b4   :  { %v1573_v28 = vmul.f32 0.1, %v5042_v32  ;;  %v756_v32 = vpop.f32.mrf.mxu0 }
 0x1b5   :  { %1180 = vmatmul.bf16.gmra.mxu1 %v1018_v51  ;;  %5043 = vtanh.f32 %v1142_v45  ;;  %4498 = vmatmul.msk.bf16.gmra.mxu3 %vm495_vm0, %v4625_v34  ;;  %v6366_v51 = vpop.f32.mrf.mxu2 }
 0x1b6   :  { %v6346_v21 = vadd.f32 %v1573_v28, %v6116_v23  ;;  %v6361_v28 = vadd.f32 %v6084_v7, %v749_v33  ;;  %9349 = vst [vmem:[#allocation42_spill] sm:$0xff] %v6366_v51 }
 0x1b8   :  { %v1821_v4 = vpack.c.bf16 %v6346_v21, %v6343_v24 }
 0x1ba   :  { %v1143_v9 = vpop.f32.mrf.mxu1  ;;  %1896 = vmatmul.bf16.gmra.mxu2 %v1821_v4 }
 0x1bb   :  { %v1144_v63 = vadd.f32 %v6295_v1, %v1143_v9  ;;  %v5044_v23 = vpop.eup %5043  ;;  %v1019_v9 = vpack.c.bf16 %v6364_v50, %v6361_v28 }
 0x1bc   :  { %v1574_v45 = vmul.f32 0.1, %v5044_v23  ;;  %v759_v5 = vpop.f32.mrf.mxu0 }
 0x1bd   :  { %5045 = vtanh.f32 %v1144_v63  ;;  %v6380_v47 = vpop.f32.mrf.mxu2 }
 0x1be   :  { %v6372_v33 = vadd.f32 %v1574_v45, %v6137_v39  ;;  %9350 = vst [vmem:[#allocation43_spill] sm:$0xff] %v6380_v47  ;;  %v6390_v45 = vadd.f32 %v6084_v7, %v756_v32 }
 0x1c2   :  { %v1146_v4 = vpop.f32.mrf.mxu1 }
 0x1c3   :  { %v5046_v63 = vpop.eup %5045  ;;  %v1147_v17 = vadd.f32 %v6295_v1, %v1146_v4  ;;  %v4626_v4 = vld [vmem:[%s9161_s0 + $0x1d0] sm:$0xff] }
 0x1c4   :  { %v1575_v34 = vmul.f32 0.1, %v5046_v63  ;;  %v6392_v63 = vpop.f32.mrf.mxu3 }
 0x1c5   :  { %1185 = vmatmul.bf16.gmra.mxu1 %v1019_v9  ;;  %5047 = vtanh.f32 %v1147_v17  ;;  %4499 = vmatmul.msk.bf16.gmra.mxu3 %vm495_vm0, %v4626_v4  ;;  %v761_v17 = vpop.f32.mrf.mxu0  ;;  %9351 = vst [vmem:[#allocation44_spill] sm:$0xff] %v6392_v63  ;;  %v6397_v4 = vpop.f32.mrf.mxu2 }
 0x1c6   :  { %v6375_v43 = vadd.f32 %v1575_v34, %v6140_v40  ;;  %v6387_v40 = vadd.f32 %v6084_v7, %v754_v38  ;;  %9352 = vst [vmem:[#allocation45_spill] sm:$0xff] %v6397_v4 }
 0x1c8   :  { %v1822_v22 = vpack.c.bf16 %v6375_v43, %v6372_v33 }
 0x1ca   :  { %v1148_v23 = vpop.f32.mrf.mxu1  ;;  %1901 = vmatmul.bf16.gmra.mxu2 %v1822_v22 }
 0x1cb   :  { %v1149_v51 = vadd.f32 %v6295_v1, %v1148_v23  ;;  %v5048_v39 = vpop.eup %5047  ;;  %v1020_v23 = vpack.c.bf16 %v6390_v45, %v6387_v40 }
 0x1cc   :  { %v1576_v9 = vmul.f32 0.1, %v5048_v39  ;;  %v6407_v63 = vpop.f32.mrf.mxu3 }
 0x1cd   :  { %5049 = vtanh.f32 %v1149_v51  ;;  %9353 = vst [vmem:[#allocation46_spill] sm:$0xff] %v6407_v63 }
 0x1ce   :  { %v6400_v38 = vadd.f32 %v1576_v9, %v6161_v56  ;;  %v6421_v9 = vadd.f32 %v6084_v7, %v761_v17 }
 0x1d2   :  { %v1151_v34 = vpop.f32.mrf.mxu1 }
 0x1d3   :  { %v5050_v22 = vpop.eup %5049  ;;  %v1152_v51 = vadd.f32 %v6295_v1, %v1151_v34 }
 0x1d4   :  { %v1577_v47 = vmul.f32 0.1, %v5050_v22  ;;  %v764_v22 = vpop.f32.mrf.mxu0 }
 0x1d5   :  { %1190 = vmatmul.bf16.gmra.mxu1 %v1020_v23  ;;  %5051 = vtanh.f32 %v1152_v51  ;;  %v4627_v23 = vld [vmem:[%s9161_s0 + $0x1d8] sm:$0xff]  ;;  %v6423_v51 = vpop.f32.mrf.mxu2 }
 0x1d6   :  { %v6403_v32 = vadd.f32 %v1577_v47, %v6164_v57  ;;  %4500 = vmatmul.msk.bf16.gmra.mxu3 %vm495_vm0, %v4627_v23  ;;  %v4645_v47 = vld [vmem:[%s9166_s5 + $0x30] sm:$0xff]  ;;  %v6418_v57 = vadd.f32 %v6084_v7, %v759_v5  ;;  %9354 = vst [vmem:[#allocation47_spill] sm:$0xff] %v6423_v51 }
 0x1d7   :  { %3474 = vmatpush.bf16.msrb.mxu0 %v4645_v47  ;;  %5022 = vmatpush.bf16.msra.mxu3 %v4645_v47 }
 0x1d8   :  { %v1823_v39 = vpack.c.bf16 %v6403_v32, %v6400_v38  ;;  %v1021_v63 = vpack.c.bf16 %v6421_v9, %v6418_v57 }
 0x1da   :  { %v1153_v52 = vpop.f32.mrf.mxu1  ;;  %1906 = vmatmul.bf16.gmra.mxu2 %v1823_v39 }
 0x1db   :  { %v1154_v34 = vadd.f32 %v6295_v1, %v1153_v52  ;;  %v5052_v56 = vpop.eup %5051  ;;  %v6425_v52 = vpop.f32.mrf.mxu3 }
 0x1dc   :  { %9355 = vst [vmem:[#allocation48_spill] sm:$0xff] %v6425_v52  ;;  %v1578_v39 = vmul.f32 0.1, %v5052_v56  ;;  %v766_v29 = vpop.f32.mrf.mxu0 }
 0x1dd   :  { %5053 = vtanh.f32 %v1154_v34  ;;  %v6440_v52 = vpop.f32.mrf.mxu2 }
 0x1de   :  { %v6431_v17 = vadd.f32 %v1578_v39, %v6189_v13  ;;  %9357 = vst [vmem:[#allocation50_spill] sm:$0xff] %v6440_v52  ;;  %v4628_v13 = vld [vmem:[%s9161_s0 + $0x1e0] sm:$0xff]  ;;  %v6451_v39 = vadd.f32 %v6084_v7, %v766_v29 }
 0x1e2   :  { %v1156_v34 = vpop.f32.mrf.mxu1 }
 0x1e3   :  { %v5054_v23 = vpop.eup %5053  ;;  %v1157_v5 = vadd.f32 %v6295_v1, %v1156_v34  ;;  %v6438_v56 = vpop.f32.mrf.mxu3 }
 0x1e4   :  { %v1579_v4 = vmul.f32 0.1, %v5054_v23  ;;  %9356 = vst [vmem:[#allocation49_spill] sm:$0xff] %v6438_v56 }
 0x1e5   :  { %1195 = vmatmul.bf16.gmra.mxu1 %v1021_v63  ;;  %5055 = vtanh.f32 %v1157_v5  ;;  %v6457_v52 = vpop.f32.mrf.mxu2 }
 0x1e6   :  { %v6434_v51 = vadd.f32 %v1579_v4, %v6192_v15  ;;  %4501 = vmatmul.msk.bf16.gmra.mxu3 %vm495_vm0, %v4628_v13  ;;  %v769_v15 = vpop.f32.mrf.mxu0  ;;  %v6448_v4 = vadd.f32 %v6084_v7, %v764_v22  ;;  %9359 = vst [vmem:[#allocation52_spill] sm:$0xff] %v6457_v52 }
 0x1e8   :  { %v1824_v47 = vpack.c.bf16 %v6434_v51, %v6431_v17  ;;  %v1022_v56 = vpack.c.bf16 %v6451_v39, %v6448_v4 }
 0x1ea   :  { %v1158_v35 = vpop.f32.mrf.mxu1  ;;  %1911 = vmatmul.bf16.gmra.mxu2 %v1824_v47 }
 0x1eb   :  { %v1159_v23 = vadd.f32 %v6295_v1, %v1158_v35  ;;  %v5056_v63 = vpop.eup %5055  ;;  %v6453_v34 = vpop.f32.mrf.mxu3 }
 0x1ec   :  { %9358 = vst [vmem:[#allocation51_spill] sm:$0xff] %v6453_v34  ;;  %v1580_v5 = vmul.f32 0.1, %v5056_v63 }
 0x1ed   :  { %5057 = vtanh.f32 %v1159_v23 }
 0x1ee   :  { %v6461_v22 = vadd.f32 %v1580_v5, %v6217_v61  ;;  %v771_v14 = vpop.f32.mrf.mxu0  ;;  %v6474_v61 = vpop.f32.mrf.mxu2  ;;  %v6478_v5 = vadd.f32 %v6084_v7, %v769_v15 }
 0x1ef   :  { %9361 = vst [vmem:[#allocation54_spill] sm:$0xff] %v6474_v61 }
 0x1f2   :  { %v1161_v47 = vpop.f32.mrf.mxu1 }
 0x1f3   :  { %v5058_v35 = vpop.eup %5057  ;;  %v1162_v13 = vadd.f32 %v6295_v1, %v1161_v47  ;;  %v6468_v34 = vpop.f32.mrf.mxu3  ;;  %v6481_v47 = vadd.f32 %v6084_v7, %v771_v14 }
 0x1f4   :  { %v1581_v23 = vmul.f32 0.1, %v5058_v35  ;;  %9360 = vst [vmem:[#allocation53_spill] sm:$0xff] %v6468_v34 }
 0x1f5   :  { %1200 = vmatmul.bf16.gmra.mxu1 %v1022_v56  ;;  %5059 = vtanh.f32 %v1162_v13  ;;  %v4629_v56 = vld [vmem:[%s9161_s0 + $0x1e8] sm:$0xff] }
 0x1f6   :  { %v6464_v29 = vadd.f32 %v1581_v23, %v6220_v0  ;;  %4502 = vmatmul.msk.bf16.gmra.mxu3 %vm495_vm0, %v4629_v56  ;;  %v4644_v56 = vld [vmem:[%s9166_s5 + $0x28] sm:$0xff] }
 0x1f7   :  { %3475 = vmatpush.bf16.msrb.mxu0 %v4644_v56  ;;  %5023 = vmatpush.bf16.msra.mxu3 %v4644_v56 }
 0x1f8   :  { %v1825_v63 = vpack.c.bf16 %v6464_v29, %v6461_v22 }
 0x1fa   :  { %v1163_v18 = vpop.f32.mrf.mxu1  ;;  %1916 = vmatmul.bf16.gmra.mxu2 %v1825_v63 }
 0x1fb   :  { %v1164_v35 = vadd.f32 %v6295_v1, %v1163_v18  ;;  %v5060_v0 = vpop.eup %5059  ;;  %v6483_v23 = vpop.f32.mrf.mxu3 }
 0x1fc   :  { %9362 = vst [vmem:[#allocation55_spill] sm:$0xff] %v6483_v23  ;;  %v1582_v13 = vmul.f32 0.1, %v5060_v0  ;;  %v774_v18 = vpop.f32.mrf.mxu0  ;;  %v6497_v0 = vpop.f32.mrf.mxu2 }
 0x1fd   :  { %5061 = vtanh.f32 %v1164_v35  ;;  %v1023_v35 = vpack.c.bf16 %v6481_v47, %v6478_v5  ;;  %9365 = vst [vmem:[#allocation58_spill] sm:$0xff] %v6497_v0  ;;  %v6509_v0 = vadd.f32 %v6084_v7, %v774_v18 }
 0x1fe   :  { %v6492_v14 = vadd.f32 %v1582_v13, %v6246_v12 }
 0x200   :  { %9363 = vst [vmem:[#allocation56_spill] sm:$0xff] %v6492_v14 }
 0x202   :  { %v1166_v63 = vpop.f32.mrf.mxu1 }
 0x203   :  { %v5062_v34 = vpop.eup %5061  ;;  %v1167_v15 = vadd.f32 %v6295_v1, %v1166_v63  ;;  %v6501_v61 = vpop.f32.mrf.mxu3  ;;  %v152_v63 = vld [vmem:[%s9161_s0 + $0x1f0] sm:$0xf] }
 0x204   :  { %v1583_v52 = vmul.f32 0.1, %v5062_v34  ;;  %9366 = vst [vmem:[#allocation59_spill] sm:$0xff] %v6501_v61  ;;  %v776_v13 = vpop.f32.mrf.mxu0 }
 0x205   :  { %1205 = vmatmul.bf16.gmra.mxu1 %v1023_v35  ;;  %5063 = vtanh.f32 %v1167_v15  ;;  %v425_v35 = vunpack.c.l.b16 %v152_v63  ;;  %v6512_v61 = vadd.f32 %v6084_v7, %v776_v13  ;;  %v6516_v15 = vpop.f32.mrf.mxu2 }
 0x206   :  { %v6495_v23 = vadd.f32 %v1583_v52, %v6249_v27  ;;  %9368 = vst [vmem:[#allocation61_spill] sm:$0xff] %v6516_v15 }
 0x207   :  { %v488_v52 = vpack.c.b16 %v425_v35, %v425_v35  ;;  %v1024_v35 = vpack.c.bf16 %v6512_v61, %v6509_v0 }
 0x208   :  { %9364 = vst [vmem:[#allocation57_spill] sm:$0xff] %v6495_v23  ;;  %v1826_v34 = vpack.c.bf16 %v6495_v23, %v6492_v14 }
 0x209   :  { %4503 = vmatmul.msk.bf16.gmra.mxu3 %vm495_vm0, %v488_v52 }
 0x20a   :  { %v1168_v12 = vpop.f32.mrf.mxu1  ;;  %1921 = vmatmul.bf16.gmra.mxu2 %v1826_v34 }
 0x20b   :  { %v1169_v27 = vadd.f32 %v6295_v1, %v1168_v12  ;;  %v5064_v56 = vpop.eup %5063  ;;  %v6514_v23 = vpop.f32.mrf.mxu3 }
 0x20c   :  { %9367 = vst [vmem:[#allocation60_spill] sm:$0xff] %v6514_v23  ;;  %v1584_v63 = vmul.f32 0.1, %v5064_v56 }
 0x20d   :  { %5065 = vtanh.f32 %v1169_v27  ;;  %v6531_v15 = vpop.f32.mrf.mxu2 }
 0x20e   :  { %v6522_v18 = vadd.f32 %v1584_v63, %v6267_v2  ;;  %9370 = vst [vmem:[#allocation63_spill] sm:$0xff] %v6531_v15  ;;  %v6536_v2 = vadd.f32 %v6084_v7, %v5940_v20  ;;  %v6542_v63 = vadd.f32 %v6084_v7, %v5935_v19 }
 0x212   :  { %v1171_v34 = vpop.f32.mrf.mxu1 }
 0x213   :  { %v5066_v14 = vpop.eup %5065  ;;  %v1172_v27 = vadd.f32 %v6295_v1, %v1171_v34  ;;  %v6529_v23 = vpop.f32.mrf.mxu3 }
 0x214   :  { %v1585_v12 = vmul.f32 0.1, %v5066_v14  ;;  %9369 = vst [vmem:[#allocation62_spill] sm:$0xff] %v6529_v23 }
 0x215   :  { %1210 = vmatmul.bf16.gmra.mxu1 %v1024_v35  ;;  %5067 = vtanh.f32 %v1172_v27 }
 0x216   :  { %v6525_v52 = vadd.f32 %v1585_v12, %v6270_v11 }
 0x218   :  { %v1827_v13 = vpack.c.bf16 %v6525_v52, %v6522_v18 }
 0x21a   :  { %v1173_v56 = vpop.f32.mrf.mxu1  ;;  %1926 = vmatmul.bf16.gmra.mxu2 %v1827_v13  ;;  %v1025_v13 = vpack.c.bf16 %v6536_v2, %v6542_v63 }
 0x21b   :  { %v1174_v14 = vadd.f32 %v6295_v1, %v1173_v56  ;;  %v5068_v34 = vpop.eup %5067  ;;  %v6538_v11 = vpop.f32.mrf.mxu3  ;;  %v4643_v56 = vld [vmem:[%s9166_s5 + $0x20] sm:$0xff] }
 0x21c   :  { %9371 = vst [vmem:[#allocation64_spill] sm:$0xff] %v6538_v11  ;;  %v1586_v35 = vmul.f32 0.1, %v5068_v34  ;;  %3476 = vmatpush.bf16.msrb.mxu0 %v4643_v56  ;;  %5024 = vmatpush.bf16.msra.mxu3 %v4643_v56 }
 0x21d   :  { %5069 = vtanh.f32 %v1174_v14  ;;  %v6549_v14 = vpop.f32.mrf.mxu2 }
 0x21e   :  { %9372 = vst [vmem:[#allocation65_spill] sm:$0xff] %v6549_v14  ;;  %v6553_v11 = vadd.f32 %v1586_v35, %v6285_v44  ;;  %v6565_v44 = vadd.f32 %v6084_v7, %v5959_v26  ;;  %v6572_v35 = vadd.f32 %v6084_v7, %v5954_v25 }
 0x222   :  { %v1176_v12 = vpop.f32.mrf.mxu1 }
 0x223   :  { %v5070_v27 = vpop.eup %5069  ;;  %v1177_v20 = vadd.f32 %v6295_v1, %v1176_v12 }
 0x224   :  { %v1587_v23 = vmul.f32 0.1, %v5070_v27  ;;  %v6560_v27 = vpop.f32.mrf.mxu3 }
 0x225   :  { %1215 = vmatmul.bf16.gmra.mxu1 %v1025_v13  ;;  %9374 = vst [vmem:[#allocation67_spill] sm:$0xff] %v6560_v27  ;;  %5071 = vtanh.f32 %v1177_v20 }
 0x226   :  { %v6556_v19 = vadd.f32 %v1587_v23, %v6288_v58 }
 0x228   :  { %9373 = vst [vmem:[#allocation66_spill] sm:$0xff] %v6556_v19  ;;  %v1828_v34 = vpack.c.bf16 %v6556_v19, %v6553_v11 }
 0x22a   :  { %v1178_v15 = vpop.f32.mrf.mxu1  ;;  %1931 = vmatmul.bf16.gmra.mxu2 %v1828_v34 }
 0x22b   :  { %v1179_v14 = vadd.f32 %v6295_v1, %v1178_v15  ;;  %v5072_v13 = vpop.eup %5071  ;;  %v1026_v15 = vpack.c.bf16 %v6565_v44, %v6572_v35 }
 0x22c   :  { %v6568_v23 = vpop.f32.mrf.mxu3  ;;  %v1588_v56 = vmul.f32 0.1, %v5072_v13 }
 0x22d   :  { %5073 = vtanh.f32 %v1179_v14  ;;  %v1892_v12 = vpop.f32.mrf.mxu2  ;;  %9375 = vst [vmem:[#allocation68_spill] sm:$0xff] %v6568_v23 }
 0x22e   :  { %v1893_v58 = vadd.f32 %v6295_v1, %v1892_v12  ;;  %v6578_v12 = vadd.f32 %v1588_v56, %v6308_v54 }
 0x230   :  { %5075 = vtanh.f32 %v1893_v58 }
 0x232   :  { %v1181_v20 = vpop.f32.mrf.mxu1 }
 0x233   :  { %v5074_v34 = vpop.eup %5073  ;;  %v1182_v27 = vadd.f32 %v6295_v1, %v1181_v20 }
 0x234   :  { %v1589_v14 = vmul.f32 0.1, %v5074_v34  ;;  %v6586_v19 = vpop.f32.mrf.mxu3 }
 0x235   :  { %1220 = vmatmul.bf16.gmra.mxu1 %v1026_v15  ;;  %v1894_v26 = vpop.f32.mrf.mxu2  ;;  %9377 = vst [vmem:[#allocation70_spill] sm:$0xff] %v6586_v19 }
 0x236   :  { %v1895_v23 = vadd.f32 %v6295_v1, %v1894_v26  ;;  %v6582_v25 = vadd.f32 %v1589_v14, %v6311_v8  ;;  %v5076_v58 = vpop.eup %5075  ;;  %v6591_v8 = vadd.f32 %v6084_v7, %v5975_v31 }
 0x237   :  { %v2331_v15 = vmul.f32 0.1, %v5076_v58 }
 0x238   :  { %9376 = vst [vmem:[#allocation69_spill] sm:$0xff] %v6582_v25  ;;  %5077 = vtanh.f32 %v1895_v23  ;;  %v1829_v13 = vpack.c.bf16 %v6582_v25, %v6578_v12 }
 0x239   :  { %5079 = vtanh.f32 %v1182_v27  ;;  %v6598_v27 = vadd.f32 %v6084_v7, %v5970_v30 }
 0x23a   :  { %v1183_v34 = vpop.f32.mrf.mxu1  ;;  %1936 = vmatmul.bf16.gmra.mxu2 %v1829_v13  ;;  %v6601_v13 = vadd.f32 %v2331_v15, %v6319_v16 }
 0x23b   :  { %v1184_v20 = vadd.f32 %v6295_v1, %v1183_v34  ;;  %v1027_v31 = vpack.c.bf16 %v6591_v8, %v6598_v27 }
 0x23c   :  { %v6594_v25 = vpop.f32.mrf.mxu3 }
 0x23d   :  { %5081 = vtanh.f32 %v1184_v20  ;;  %v1897_v54 = vpop.f32.mrf.mxu2  ;;  %9378 = vst [vmem:[#allocation71_spill] sm:$0xff] %v6594_v25 }
 0x23e   :  { %v5078_v56 = vpop.eup %5077  ;;  %v1898_v14 = vadd.f32 %v6295_v1, %v1897_v54 }
 0x23f   :  { %v5080_v26 = vpop.eup %5079  ;;  %v2332_v23 = vmul.f32 0.1, %v5078_v56 }
 0x240   :  { %v1590_v34 = vmul.f32 0.1, %v5080_v26  ;;  %5083 = vtanh.f32 %v1898_v14 }
 0x241   :  { %v6604_v58 = vadd.f32 %v2332_v23, %v6322_v59 }
 0x242   :  { %v1186_v20 = vpop.f32.mrf.mxu1  ;;  %v6612_v16 = vadd.f32 %v1590_v34, %v6334_v10 }
 0x243   :  { %v5082_v19 = vpop.eup %5081  ;;  %v2581_v54 = vpack.c.bf16 %v6604_v58, %v6601_v13  ;;  %v1187_v30 = vadd.f32 %v6295_v1, %v1186_v20 }
 0x244   :  { %v1591_v56 = vmul.f32 0.1, %v5082_v19  ;;  %v6620_v23 = vpop.f32.mrf.mxu3  ;;  %v4642_v19 = vld [vmem:[%s9166_s5 + $0x18] sm:$0xff] }
 0x245   :  { %1225 = vmatmul.bf16.gmra.mxu1 %v1027_v31  ;;  %v1899_v25 = vpop.f32.mrf.mxu2  ;;  %2652 = vmatmul.bf16.vlgmr.msrb.gmra.mxu3 %v2581_v54  ;;  %9379 = vst [vmem:[#allocation72_spill] sm:$0xff] %v6620_v23  ;;  %v6628_v54 = vadd.f32 %v6084_v7, %v5994_v37 }
 0x246   :  { %v1900_v59 = vadd.f32 %v6295_v1, %v1899_v25  ;;  %v6616_v15 = vadd.f32 %v1591_v56, %v6337_v49  ;;  %v5084_v14 = vpop.eup %5083  ;;  %3477 = vmatpush.bf16.msrb.mxu0 %v4642_v19  ;;  %5025 = vmatpush.bf16.msra.mxu3 %v4642_v19 }
 0x247   :  { %v2333_v49 = vmul.f32 0.1, %v5084_v14 }
 0x248   :  { %5085 = vtanh.f32 %v1900_v59  ;;  %v1830_v26 = vpack.c.bf16 %v6616_v15, %v6612_v16 }
 0x249   :  { %5087 = vtanh.f32 %v1187_v30  ;;  %v6638_v19 = vadd.f32 %v2333_v49, %v6343_v24 }
 0x24a   :  { %v1188_v20 = vpop.f32.mrf.mxu1  ;;  %1941 = vmatmul.bf16.gmra.mxu2 %v1830_v26  ;;  %v6635_v26 = vadd.f32 %v6084_v7, %v5989_v36 }
 0x24b   :  { %v1189_v10 = vadd.f32 %v6295_v1, %v1188_v20 }
 0x24c   :  { %v6631_v59 = vpop.f32.mrf.mxu3  ;;  %v1028_v37 = vpack.c.bf16 %v6628_v54, %v6635_v26 }
 0x24d   :  { %5089 = vtanh.f32 %v1189_v10  ;;  %v1902_v25 = vpop.f32.mrf.mxu2  ;;  %9380 = vst [vmem:[#allocation73_spill] sm:$0xff] %v6631_v59 }
 0x24e   :  { %v5086_v34 = vpop.eup %5085  ;;  %v1903_v30 = vadd.f32 %v6295_v1, %v1902_v25 }
 0x24f   :  { %v5088_v31 = vpop.eup %5087  ;;  %v2334_v56 = vmul.f32 0.1, %v5086_v34 }
 0x250   :  { %v1592_v20 = vmul.f32 0.1, %v5088_v31  ;;  %5091 = vtanh.f32 %v1903_v30 }
 0x251   :  { %v6641_v14 = vadd.f32 %v2334_v56, %v6346_v21 }
 0x252   :  { %v1191_v10 = vpop.f32.mrf.mxu1  ;;  %v6649_v24 = vadd.f32 %v1592_v20, %v6361_v28 }
 0x253   :  { %v5090_v23 = vpop.eup %5089  ;;  %v2582_v25 = vpack.c.bf16 %v6641_v14, %v6638_v19  ;;  %v1192_v36 = vadd.f32 %v6295_v1, %v1191_v10 }
 0x254   :  { %v1593_v34 = vmul.f32 0.1, %v5090_v23  ;;  %v6657_v56 = vpop.f32.mrf.mxu3 }
 0x255   :  { %1230 = vmatmul.bf16.gmra.mxu1 %v1028_v37  ;;  %v1904_v59 = vpop.f32.mrf.mxu2  ;;  %2657 = vmatmul.bf16.gmra.mxu3 %v2582_v25  ;;  %9381 = vst [vmem:[#allocation74_spill] sm:$0xff] %v6657_v56 }
 0x256   :  { %v1905_v21 = vadd.f32 %v6295_v1, %v1904_v59  ;;  %v6653_v49 = vadd.f32 %v1593_v34, %v6364_v50  ;;  %v5092_v23 = vpop.eup %5091  ;;  %v6662_v50 = vadd.f32 %v6084_v7, %v6010_v42 }
 0x257   :  { %v2335_v37 = vmul.f32 0.1, %v5092_v23 }
 0x258   :  { %5093 = vtanh.f32 %v1905_v21  ;;  %v1831_v31 = vpack.c.bf16 %v6653_v49, %v6649_v24 }
 0x259   :  { %5095 = vtanh.f32 %v1192_v36  ;;  %v6669_v36 = vadd.f32 %v6084_v7, %v6005_v41 }
 0x25a   :  { %v1193_v30 = vpop.f32.mrf.mxu1  ;;  %1946 = vmatmul.bf16.gmra.mxu2 %v1831_v31  ;;  %v6672_v31 = vadd.f32 %v2335_v37, %v6372_v33 }
 0x25b   :  { %v1194_v10 = vadd.f32 %v6295_v1, %v1193_v30  ;;  %v1029_v42 = vpack.c.bf16 %v6662_v50, %v6669_v36 }
 0x25c   :  { %v6665_v21 = vpop.f32.mrf.mxu3 }
 0x25d   :  { %5097 = vtanh.f32 %v1194_v10  ;;  %v1907_v28 = vpop.f32.mrf.mxu2  ;;  %9382 = vst [vmem:[#allocation75_spill] sm:$0xff] %v6665_v21 }
 0x25e   :  { %v5094_v20 = vpop.eup %5093  ;;  %v1908_v34 = vadd.f32 %v6295_v1, %v1907_v28 }
 0x25f   :  { %v5096_v59 = vpop.eup %5095  ;;  %v2336_v25 = vmul.f32 0.1, %v5094_v20 }
 0x260   :  { %v1594_v30 = vmul.f32 0.1, %v5096_v59  ;;  %5099 = vtanh.f32 %v1908_v34 }
 0x261   :  { %v6675_v23 = vadd.f32 %v2336_v25, %v6375_v43 }
 0x262   :  { %v1196_v10 = vpop.f32.mrf.mxu1  ;;  %v6683_v33 = vadd.f32 %v1594_v30, %v6387_v40 }
 0x263   :  { %v5098_v56 = vpop.eup %5097  ;;  %v2583_v28 = vpack.c.bf16 %v6675_v23, %v6672_v31  ;;  %v1197_v41 = vadd.f32 %v6295_v1, %v1196_v10 }
 0x264   :  { %v1595_v20 = vmul.f32 0.1, %v5098_v56  ;;  %v6691_v25 = vpop.f32.mrf.mxu3  ;;  %v4641_v56 = vld [vmem:[%s9166_s5 + $0x10] sm:$0xff] }
 0x265   :  { %1235 = vmatmul.bf16.gmra.mxu1 %v1029_v42  ;;  %v1909_v21 = vpop.f32.mrf.mxu2  ;;  %2662 = vmatmul.bf16.gmra.mxu3 %v2583_v28  ;;  %9383 = vst [vmem:[#allocation76_spill] sm:$0xff] %v6691_v25  ;;  %v6699_v28 = vadd.f32 %v6084_v7, %v6029_v48 }
 0x266   :  { %v1910_v43 = vadd.f32 %v6295_v1, %v1909_v21  ;;  %v6687_v37 = vadd.f32 %v1595_v20, %v6390_v45  ;;  %v5100_v34 = vpop.eup %5099  ;;  %3478 = vmatpush.bf16.msrb.mxu0 %v4641_v56  ;;  %5026 = vmatpush.bf16.msra.mxu3 %v4641_v56 }
 0x267   :  { %v2337_v45 = vmul.f32 0.1, %v5100_v34 }
 0x268   :  { %5101 = vtanh.f32 %v1910_v43  ;;  %v1832_v59 = vpack.c.bf16 %v6687_v37, %v6683_v33 }
 0x269   :  { %5103 = vtanh.f32 %v1197_v41  ;;  %v6709_v56 = vadd.f32 %v2337_v45, %v6400_v38 }
 0x26a   :  { %v1198_v10 = vpop.f32.mrf.mxu1  ;;  %1951 = vmatmul.bf16.gmra.mxu2 %v1832_v59  ;;  %v6706_v59 = vadd.f32 %v6084_v7, %v6021_v46 }
 0x26b   :  { %v1199_v40 = vadd.f32 %v6295_v1, %v1198_v10 }
 0x26c   :  { %v6702_v43 = vpop.f32.mrf.mxu3  ;;  %v1030_v48 = vpack.c.bf16 %v6699_v28, %v6706_v59 }
 0x26d   :  { %5105 = vtanh.f32 %v1199_v40  ;;  %v1912_v21 = vpop.f32.mrf.mxu2  ;;  %9384 = vst [vmem:[#allocation77_spill] sm:$0xff] %v6702_v43 }
 0x26e   :  { %v5102_v30 = vpop.eup %5101  ;;  %v1913_v41 = vadd.f32 %v6295_v1, %v1912_v21 }
 0x26f   :  { %v5104_v42 = vpop.eup %5103  ;;  %v2338_v20 = vmul.f32 0.1, %v5102_v30 }
 0x270   :  { %v1596_v10 = vmul.f32 0.1, %v5104_v42  ;;  %5107 = vtanh.f32 %v1913_v41 }
 0x271   :  { %v6712_v34 = vadd.f32 %v2338_v20, %v6403_v32 }
 0x272   :  { %v1201_v40 = vpop.f32.mrf.mxu1  ;;  %v6720_v38 = vadd.f32 %v1596_v10, %v6418_v57 }
 0x273   :  { %v5106_v25 = vpop.eup %5105  ;;  %v2584_v21 = vpack.c.bf16 %v6712_v34, %v6709_v56  ;;  %v1202_v46 = vadd.f32 %v6295_v1, %v1201_v40 }
 0x274   :  { %v1597_v30 = vmul.f32 0.1, %v5106_v25  ;;  %v6728_v20 = vpop.f32.mrf.mxu3 }
 0x275   :  { %1240 = vmatmul.bf16.gmra.mxu1 %v1030_v48  ;;  %v1914_v7 = vpop.f32.mrf.mxu2  ;;  %2667 = vmatmul.bf16.gmra.mxu3 %v2584_v21  ;;  %9385 = vst [vmem:[#allocation78_spill] sm:$0xff] %v6728_v20 }
 0x276   :  { %v1915_v32 = vadd.f32 %v6295_v1, %v1914_v7  ;;  %v6724_v45 = vadd.f32 %v1597_v30, %v6421_v9  ;;  %v5108_v25 = vpop.eup %5107  ;;  %v6734_v9 = vld [vmem:[%s9163_s2] ss:$0 sm:$0xff] }
 0x277   :  { %v2339_v48 = vmul.f32 0.1, %v5108_v25  ;;  %v6738_v30 = vadd.f32 %v6734_v9, %v6045_v55 }
 0x278   :  { %5109 = vtanh.f32 %v1915_v32  ;;  %v1833_v42 = vpack.c.bf16 %v6724_v45, %v6720_v38 }
 0x279   :  { %5111 = vtanh.f32 %v1202_v46  ;;  %v6748_v25 = vadd.f32 %v2339_v48, %v6431_v17 }
 0x27a   :  { %v1203_v41 = vpop.f32.mrf.mxu1  ;;  %1956 = vmatmul.bf16.gmra.mxu2 %v1833_v42  ;;  %v6745_v42 = vadd.f32 %v6734_v9, %v6040_v53 }
 0x27b   :  { %v1204_v40 = vadd.f32 %v6295_v1, %v1203_v41 }
 0x27c   :  { %v6741_v32 = vpop.f32.mrf.mxu3  ;;  %v1031_v55 = vpack.c.bf16 %v6738_v30, %v6745_v42 }
 0x27d   :  { %5113 = vtanh.f32 %v1204_v40  ;;  %v1917_v57 = vpop.f32.mrf.mxu2  ;;  %9386 = vst [vmem:[#allocation79_spill] sm:$0xff] %v6741_v32 }
 0x27e   :  { %v5110_v10 = vpop.eup %5109  ;;  %v1918_v7 = vadd.f32 %v6295_v1, %v1917_v57 }
 0x27f   :  { %v5112_v21 = vpop.eup %5111  ;;  %v2340_v46 = vmul.f32 0.1, %v5110_v10 }
 0x280   :  { %v1598_v40 = vmul.f32 0.1, %v5112_v21  ;;  %5115 = vtanh.f32 %v1918_v7 }
 0x281   :  { %v6751_v41 = vadd.f32 %v2340_v46, %v6434_v51 }
 0x282   :  { %v1206_v20 = vpop.f32.mrf.mxu1  ;;  %v6759_v17 = vadd.f32 %v1598_v40, %v6448_v4 }
 0x283   :  { %v5114_v43 = vpop.eup %5113  ;;  %v2585_v57 = vpack.c.bf16 %v6751_v41, %v6748_v25  ;;  %v1207_v53 = vadd.f32 %v6295_v1, %v1206_v20 }
 0x284   :  { %v1599_v10 = vmul.f32 0.1, %v5114_v43  ;;  %v6767_v46 = vpop.f32.mrf.mxu3 }
 0x285   :  { %1245 = vmatmul.bf16.gmra.mxu1 %v1031_v55  ;;  %v1919_v32 = vpop.f32.mrf.mxu2  ;;  %2672 = vmatmul.bf16.gmra.mxu3 %v2585_v57  ;;  %9387 = vst [vmem:[#allocation80_spill] sm:$0xff] %v6767_v46  ;;  %v6775_v57 = vadd.f32 %v6734_v9, %v6061_v62 }
 0x286   :  { %v1920_v51 = vadd.f32 %v6295_v1, %v1919_v32  ;;  %v6763_v48 = vadd.f32 %v1599_v10, %v6451_v39  ;;  %v5116_v43 = vpop.eup %5115  ;;  %v4640_v39 = vld [vmem:[%s9166_s5 + $0x8] sm:$0xff] }
 0x287   :  { %v2341_v55 = vmul.f32 0.1, %v5116_v43  ;;  %3479 = vmatpush.bf16.msrb.mxu0 %v4640_v39  ;;  %5027 = vmatpush.bf16.msra.mxu3 %v4640_v39 }
 0x288   :  { %5117 = vtanh.f32 %v1920_v51  ;;  %v1834_v21 = vpack.c.bf16 %v6763_v48, %v6759_v17 }
 0x289   :  { %5119 = vtanh.f32 %v1207_v53  ;;  %v6785_v43 = vadd.f32 %v2341_v55, %v6461_v22 }
 0x28a   :  { %v1208_v20 = vpop.f32.mrf.mxu1  ;;  %1961 = vmatmul.bf16.gmra.mxu2 %v1834_v21  ;;  %v6782_v21 = vadd.f32 %v6734_v9, %v6056_v60 }
 0x28b   :  { %v1209_v7 = vadd.f32 %v6295_v1, %v1208_v20 }
 0x28c   :  { %v6778_v51 = vpop.f32.mrf.mxu3 }
 0x28d   :  { %5121 = vtanh.f32 %v1209_v7  ;;  %v1922_v4 = vpop.f32.mrf.mxu2  ;;  %9388 = vst [vmem:[#allocation81_spill] sm:$0xff] %v6778_v51 }
 0x28e   :  { %v5118_v40 = vpop.eup %5117  ;;  %v1923_v53 = vadd.f32 %v6295_v1, %v1922_v4  ;;  %v1032_v4 = vpack.c.bf16 %v6775_v57, %v6782_v21 }
 0x28f   :  { %v5120_v32 = vpop.eup %5119  ;;  %v2342_v10 = vmul.f32 0.1, %v5118_v40 }
 0x290   :  { %v1600_v7 = vmul.f32 0.1, %v5120_v32  ;;  %5123 = vtanh.f32 %v1923_v53 }
 0x291   :  { %v6788_v20 = vadd.f32 %v2342_v10, %v6464_v29 }
 0x292   :  { %v1211_v62 = vpop.f32.mrf.mxu1  ;;  %v6796_v22 = vadd.f32 %v1600_v7, %v6478_v5 }
 0x293   :  { %v5122_v46 = vpop.eup %5121  ;;  %v2586_v40 = vpack.c.bf16 %v6788_v20, %v6785_v43  ;;  %v1212_v60 = vadd.f32 %v6295_v1, %v1211_v62 }
 0x294   :  { %v1601_v39 = vmul.f32 0.1, %v5122_v46  ;;  %9389 = vst [vmem:[#allocation82_spill] sm:$0xff] %v6796_v22  ;;  %v1006_v10 = vpop.f32.mrf.mxu3 }
 0x295   :  { %1250 = vmatmul.bf16.gmra.mxu1 %v1032_v4  ;;  %v1924_v51 = vpop.f32.mrf.mxu2  ;;  %2677 = vmatmul.bf16.gmra.mxu3 %v2586_v40  ;;  %v9392_v10 = vld [vmem:[#allocation57_spill] sm:$0xff] }
 0x296   :  { %v1925_v29 = vadd.f32 %v6295_v1, %v1924_v51  ;;  %v6800_v55 = vadd.f32 %v1601_v39, %v6481_v47  ;;  %v5124_v46 = vpop.eup %5123  ;;  %v6807_v47 = vadd.f32 %v6734_v9, %v6079_v6 }
 0x297   :  { %v2343_v4 = vmul.f32 0.1, %v5124_v46 }
 0x298   :  { %9390 = vst [vmem:[#allocation83_spill] sm:$0xff] %v6800_v55  ;;  %5125 = vtanh.f32 %v1925_v29  ;;  %v1835_v32 = vpack.c.bf16 %v6800_v55, %v6796_v22  ;;  %v9391_v29 = vld [vmem:[#allocation56_spill] sm:$0xff] }
 0x299   :  { %5127 = vtanh.f32 %v1212_v60  ;;  %v6812_v60 = vadd.f32 %v6734_v9, %v6072_v3 }
 0x29a   :  { %v1213_v53 = vpop.f32.mrf.mxu1  ;;  %1966 = vmatmul.bf16.gmra.mxu2 %v1835_v32  ;;  %v6815_v32 = vadd.f32 %v2343_v4, %v9391_v29 }
 0x29b   :  { %v1214_v62 = vadd.f32 %v6295_v1, %v1213_v53  ;;  %v1033_v6 = vpack.c.bf16 %v6807_v47, %v6812_v60 }
 0x29d   :  { %5129 = vtanh.f32 %v1214_v62  ;;  %v1927_v5 = vpop.f32.mrf.mxu2 }
 0x29e   :  { %v5126_v7 = vpop.eup %5125  ;;  %v1928_v39 = vadd.f32 %v6295_v1, %v1927_v5 }
 0x29f   :  { %v5128_v40 = vpop.eup %5127  ;;  %v2344_v51 = vmul.f32 0.1, %v5126_v7 }
 0x2a0   :  { %v1602_v53 = vmul.f32 0.1, %v5128_v40  ;;  %5131 = vtanh.f32 %v1928_v39 }
 0x2a1   :  { %v6818_v46 = vadd.f32 %v2344_v51, %v9392_v10 }
 0x2a2   :  { %v1216_v62 = vpop.f32.mrf.mxu1  ;;  %v6826_v4 = vadd.f32 %v1602_v53, %v6509_v0  ;;  %v9395_v53 = vld [vmem:[#allocation9_spill] sm:$0xff] }
 0x2a3   :  { %v5130_v55 = vpop.eup %5129  ;;  %v2587_v7 = vpack.c.bf16 %v6818_v46, %v6815_v32  ;;  %v1217_v3 = vadd.f32 %v6295_v1, %v1216_v62 }
 0x2a4   :  { %v1603_v5 = vmul.f32 0.1, %v5130_v55  ;;  %9393 = vst [vmem:[#allocation56_spill] sm:$0xff] %v6826_v4 }
 0x2a5   :  { %1255 = vmatmul.bf16.gmra.mxu1 %v1033_v6  ;;  %v1929_v22 = vpop.f32.mrf.mxu2  ;;  %2682 = vmatmul.bf16.gmra.mxu3 %v2587_v7  ;;  %v6840_v7 = vadd.f32 %v6734_v9, %v9395_v53 }
 0x2a6   :  { %v1930_v40 = vadd.f32 %v6295_v1, %v1929_v22  ;;  %v6830_v51 = vadd.f32 %v1603_v5, %v6512_v61  ;;  %v5132_v55 = vpop.eup %5131  ;;  %v4639_v22 = vld [vmem:[%s9166_s5] sm:$0xff]  ;;  %s4177_s5 = sshll.u32 %s9168_s7, 4  ;;  %s4178_s5 = int_to_ptr.hbm [resolvable:$true] %s4177_s5 }
 0x2a7   :  { %v2345_v62 = vmul.f32 0.1, %v5132_v55  ;;  %3480 = vmatpush.bf16.msrb.mxu0 %v4639_v22  ;;  %5028 = vmatpush.bf16.msra.mxu3 %v4639_v22 }
 0x2a8   :  { %9394 = vst [vmem:[#allocation57_spill] sm:$0xff] %v6830_v51  ;;  %5133 = vtanh.f32 %v1930_v40  ;;  %v1836_v29 = vpack.c.bf16 %v6830_v51, %v6826_v4  ;;  %v9396_v40 = vld [vmem:[#allocation7_spill] sm:$0xff] }
 0x2a9   :  { %5135 = vtanh.f32 %v1217_v3  ;;  %v6845_v3 = vld [vmem:[%s9165_s4] ss:$0 sm:$0xff]  ;;  %v6853_v55 = vadd.f32 %v2345_v62, %v6522_v18 }
 0x2aa   :  { %v1218_v39 = vpop.f32.mrf.mxu1  ;;  %1971 = vmatmul.bf16.gmra.mxu2 %v1836_v29  ;;  %v6850_v29 = vadd.f32 %v6734_v9, %v9396_v40 }
 0x2ab   :  { %v1219_v10 = vadd.f32 %v6295_v1, %v1218_v39 }
 0x2ac   :  { %v1034_v51 = vpack.c.bf16 %v6840_v7, %v6850_v29 }
 0x2ad   :  { %5137 = vtanh.f32 %v1219_v10  ;;  %v1932_v6 = vpop.f32.mrf.mxu2 }
 0x2ae   :  { %v5134_v0 = vpop.eup %5133  ;;  %v1933_v1 = vadd.f32 %v6845_v3, %v1932_v6 }
 0x2af   :  { %v5136_v61 = vpop.eup %5135  ;;  %v2346_v5 = vmul.f32 0.1, %v5134_v0 }
 0x2b0   :  { %v1604_v10 = vmul.f32 0.1, %v5136_v61  ;;  %5139 = vtanh.f32 %v1933_v1 }
 0x2b1   :  { %v6856_v39 = vadd.f32 %v2346_v5, %v6525_v52 }
 0x2b2   :  { %v1221_v0 = vpop.f32.mrf.mxu1  ;;  %v6864_v18 = vadd.f32 %v1604_v10, %v6542_v63 }
 0x2b3   :  { %9397 = vst [vmem:[#allocation9_spill] sm:$0xff] %v6856_v39  ;;  %v5138_v53 = vpop.eup %5137  ;;  %v2588_v6 = vpack.c.bf16 %v6856_v39, %v6853_v55  ;;  %v1222_v40 = vadd.f32 %v6845_v3, %v1221_v0 }
 0x2b4   :  { %v1605_v22 = vmul.f32 0.1, %v5138_v53  ;;  %9398 = vst [vmem:[#allocation7_spill] sm:$0xff] %v6864_v18 }
 0x2b5   :  { %1260 = vmatmul.bf16.gmra.mxu1 %v1034_v51  ;;  %v1934_v4 = vpop.f32.mrf.mxu2  ;;  %2687 = vmatmul.bf16.gmra.mxu3 %v2588_v6  ;;  %v9400_v6 = vld [vmem:[#allocation13_spill] sm:$0xff] }
 0x2b6   :  { %v1935_v52 = vadd.f32 %v6845_v3, %v1934_v4  ;;  %v6868_v62 = vadd.f32 %v1605_v22, %v6536_v2  ;;  %v5140_v5 = vpop.eup %5139  ;;  %v6875_v4 = vadd.f32 %v6734_v9, %v9400_v6 }
 0x2b7   :  { %v2347_v0 = vmul.f32 0.1, %v5140_v5 }
 0x2b8   :  { %9399 = vst [vmem:[#allocation84_spill] sm:$0xff] %v6868_v62  ;;  %5141 = vtanh.f32 %v1935_v52  ;;  %v1837_v61 = vpack.c.bf16 %v6868_v62, %v6864_v18  ;;  %v9401_v52 = vld [vmem:[#allocation11_spill] sm:$0xff] }
 0x2b9   :  { %5143 = vtanh.f32 %v1222_v40  ;;  %v6880_v40 = vadd.f32 %v6734_v9, %v9401_v52 }
 0x2ba   :  { %v1223_v1 = vpop.f32.mrf.mxu1  ;;  %1976 = vmatmul.bf16.gmra.mxu2 %v1837_v61  ;;  %v6883_v61 = vadd.f32 %v2347_v0, %v6553_v11 }
 0x2bb   :  { %v1224_v51 = vadd.f32 %v6845_v3, %v1223_v1  ;;  %v9403_v1 = vld [vmem:[#allocation66_spill] sm:$0xff]  ;;  %v1035_v6 = vpack.c.bf16 %v6875_v4, %v6880_v40 }
 0x2bc   :  { %9402 = vst [vmem:[#allocation13_spill] sm:$0xff] %v6883_v61 }
 0x2bd   :  { %5145 = vtanh.f32 %v1224_v51  ;;  %v1937_v53 = vpop.f32.mrf.mxu2 }
 0x2be   :  { %v5142_v63 = vpop.eup %5141  ;;  %v1938_v22 = vadd.f32 %v6845_v3, %v1937_v53 }
 0x2bf   :  { %v5144_v10 = vpop.eup %5143  ;;  %v2348_v2 = vmul.f32 0.1, %v5142_v63 }
 0x2c0   :  { %v1606_v51 = vmul.f32 0.1, %v5144_v10  ;;  %5147 = vtanh.f32 %v1938_v22 }
 0x2c1   :  { %v6886_v5 = vadd.f32 %v2348_v2, %v9403_v1 }
 0x2c2   :  { %v1226_v62 = vpop.f32.mrf.mxu1  ;;  %v6894_v11 = vadd.f32 %v1606_v51, %v6572_v35 }
 0x2c3   :  { %9404 = vst [vmem:[#allocation11_spill] sm:$0xff] %v6886_v5  ;;  %v5146_v18 = vpop.eup %5145  ;;  %v2589_v63 = vpack.c.bf16 %v6886_v5, %v6883_v61  ;;  %v1227_v52 = vadd.f32 %v6845_v3, %v1226_v62 }
 0x2c4   :  { %v1607_v53 = vmul.f32 0.1, %v5146_v18  ;;  %9405 = vst [vmem:[#allocation66_spill] sm:$0xff] %v6894_v11 }
 0x2c5   :  { %1265 = vmatmul.bf16.gmra.mxu1 %v1035_v6  ;;  %v1939_v39 = vpop.f32.mrf.mxu2  ;;  %2692 = vmatmul.bf16.gmra.mxu3 %v2589_v63 }
 0x2c6   :  { %v1940_v0 = vadd.f32 %v6845_v3, %v1939_v39  ;;  %v6898_v10 = vadd.f32 %v1607_v53, %v6565_v44  ;;  %v5148_v18 = vpop.eup %5147  ;;  %v9407_v44 = vld [vmem:[#allocation17_spill] sm:$0xff] }
 0x2c7   :  { %v2349_v35 = vmul.f32 0.1, %v5148_v18  ;;  %v6906_v53 = vadd.f32 %v6734_v9, %v9407_v44 }
 0x2c8   :  { %9406 = vst [vmem:[#allocation85_spill] sm:$0xff] %v6898_v10  ;;  %5149 = vtanh.f32 %v1940_v0  ;;  %v2653_v2 = vpop.f32.mrf.mxu3  ;;  %v1838_v1 = vpack.c.bf16 %v6898_v10, %v6894_v11  ;;  %v9408_v11 = vld [vmem:[#allocation15_spill] sm:$0xff] }
 0x2c9   :  { %5151 = vtanh.f32 %v1227_v52  ;;  %v2654_v62 = vadd.f32 %v6845_v3, %v2653_v2  ;;  %v6914_v2 = vadd.f32 %v2349_v35, %v6578_v12 }
 0x2ca   :  { %v1228_v22 = vpop.f32.mrf.mxu1  ;;  %1981 = vmatmul.bf16.gmra.mxu2 %v1838_v1  ;;  %v6911_v1 = vadd.f32 %v6734_v9, %v9408_v11 }
 0x2cb   :  { %v1229_v6 = vadd.f32 %v6845_v3, %v1228_v22  ;;  %v9409_v22 = vld [vmem:[#allocation69_spill] sm:$0xff] }
 0x2cd   :  { %5153 = vtanh.f32 %v1229_v6  ;;  %v1942_v51 = vpop.f32.mrf.mxu2 }
 0x2ce   :  { %v5150_v39 = vpop.eup %5149  ;;  %5155 = vtanh.f32 %v2654_v62  ;;  %v1943_v52 = vadd.f32 %v6845_v3, %v1942_v51  ;;  %v1036_v62 = vpack.c.bf16 %v6906_v53, %v6911_v1 }
 0x2cf   :  { %v5152_v63 = vpop.eup %5151  ;;  %v2350_v0 = vmul.f32 0.1, %v5150_v39 }
 0x2d0   :  { %v2655_v10 = vpop.f32.mrf.mxu3  ;;  %v1608_v5 = vmul.f32 0.1, %v5152_v63 }
 0x2d1   :  { %v2656_v18 = vadd.f32 %v6845_v3, %v2655_v10  ;;  %v6918_v6 = vadd.f32 %v2350_v0, %v9409_v22 }
 0x2d2   :  { %v1231_v44 = vpop.f32.mrf.mxu1  ;;  %v6926_v35 = vadd.f32 %v1608_v5, %v6598_v27 }
 0x2d3   :  { %9410 = vst [vmem:[#allocation17_spill] sm:$0xff] %v6918_v6  ;;  %v5154_v61 = vpop.eup %5153  ;;  %5157 = vtanh.f32 %v2656_v18  ;;  %v2590_v51 = vpack.c.bf16 %v6918_v6, %v6914_v2  ;;  %v1232_v12 = vadd.f32 %v6845_v3, %v1231_v44 }
 0x2d4   :  { %v1609_v11 = vmul.f32 0.1, %v5154_v61  ;;  %5159 = vtanh.f32 %v1943_v52  ;;  %v5156_v39 = vpop.eup %5155 }
 0x2d5   :  { %1270 = vmatmul.bf16.gmra.mxu1 %v1036_v62  ;;  %v1944_v10 = vpop.f32.mrf.mxu2  ;;  %2697 = vmatmul.bf16.gmra.mxu3 %v2590_v51  ;;  %v3092_v18 = vmul.f32 0.1, %v5156_v39 }
 0x2d6   :  { %v1945_v63 = vadd.f32 %v6845_v3, %v1944_v10  ;;  %v6930_v0 = vadd.f32 %v1609_v11, %v6591_v8 }
 0x2d7   :  { %v6937_v51 = vadd.f32 %v3092_v18, %v6601_v13 }
 0x2d8   :  { %9411 = vst [vmem:[#allocation15_spill] sm:$0xff] %v6930_v0  ;;  %5161 = vtanh.f32 %v1945_v63  ;;  %v2658_v22 = vpop.f32.mrf.mxu3  ;;  %v1839_v61 = vpack.c.bf16 %v6930_v0, %v6926_v35 }
 0x2d9   :  { %v5158_v52 = vpop.eup %5157  ;;  %5163 = vtanh.f32 %v1232_v12  ;;  %v2659_v27 = vadd.f32 %v6845_v3, %v2658_v22 }
 0x2da   :  { %v5160_v44 = vpop.eup %5159  ;;  %v3093_v62 = vmul.f32 0.1, %v5158_v52  ;;  %v1233_v6 = vpop.f32.mrf.mxu1  ;;  %1986 = vmatmul.bf16.gmra.mxu2 %v1839_v61  ;;  %v9412_v52 = vld [vmem:[#allocation21_spill] sm:$0xff] }
 0x2db   :  { %v1234_v5 = vadd.f32 %v6845_v3, %v1233_v6  ;;  %v2351_v11 = vmul.f32 0.1, %v5160_v44  ;;  %v6946_v61 = vadd.f32 %v6734_v9, %v9412_v52 }
 0x2dc   :  { %v6940_v8 = vadd.f32 %v3093_v62, %v6604_v58  ;;  %v9413_v58 = vld [vmem:[#allocation19_spill] sm:$0xff] }
 0x2dd   :  { %5165 = vtanh.f32 %v1234_v5  ;;  %v1947_v39 = vpop.f32.mrf.mxu2  ;;  %v6951_v18 = vadd.f32 %v6734_v9, %v9413_v58  ;;  %v6954_v44 = vadd.f32 %v2351_v11, %v6612_v16 }
 0x2de   :  { %v5162_v10 = vpop.eup %5161  ;;  %v3342_v12 = vpack.c.bf16 %v6940_v8, %v6937_v51  ;;  %5167 = vtanh.f32 %v2659_v27  ;;  %v1948_v13 = vadd.f32 %v6845_v3, %v1947_v39 }
 0x2df   :  { %v5164_v63 = vpop.eup %5163  ;;  %v2352_v22 = vmul.f32 0.1, %v5162_v10  ;;  %v1037_v27 = vpack.c.bf16 %v6946_v61, %v6951_v18 }
 0x2e0   :  { %v2660_v6 = vpop.f32.mrf.mxu3  ;;  %3481 = vmatmul.bf16.vlgmr.msrb.gmra.mxu0 %v3342_v12  ;;  %v1610_v52 = vmul.f32 0.1, %v5164_v63 }
 0x2e1   :  { %v2661_v62 = vadd.f32 %v6845_v3, %v2660_v6  ;;  %v6958_v5 = vadd.f32 %v2352_v22, %v6616_v15 }
 0x2e2   :  { %v1236_v0 = vpop.f32.mrf.mxu1  ;;  %v6966_v15 = vadd.f32 %v1610_v52, %v6635_v26 }
 0x2e3   :  { %9414 = vst [vmem:[#allocation69_spill] sm:$0xff] %v6958_v5  ;;  %v5166_v10 = vpop.eup %5165  ;;  %5169 = vtanh.f32 %v2661_v62  ;;  %v2591_v39 = vpack.c.bf16 %v6958_v5, %v6954_v44  ;;  %v1237_v16 = vadd.f32 %v6845_v3, %v1236_v0 }
 0x2e4   :  { %v1611_v12 = vmul.f32 0.1, %v5166_v10  ;;  %5171 = vtanh.f32 %v1948_v13  ;;  %v5168_v58 = vpop.eup %5167 }
 0x2e5   :  { %1275 = vmatmul.bf16.gmra.mxu1 %v1037_v27  ;;  %v1949_v11 = vpop.f32.mrf.mxu2  ;;  %2702 = vmatmul.bf16.gmra.mxu3 %v2591_v39  ;;  %v3094_v6 = vmul.f32 0.1, %v5168_v58 }
 0x2e6   :  { %v1950_v63 = vadd.f32 %v6845_v3, %v1949_v11  ;;  %v6970_v22 = vadd.f32 %v1611_v12, %v6628_v54 }
 0x2e7   :  { %v6977_v39 = vadd.f32 %v3094_v6, %v6638_v19 }
 0x2e8   :  { %9415 = vst [vmem:[#allocation21_spill] sm:$0xff] %v6970_v22  ;;  %5173 = vtanh.f32 %v1950_v63  ;;  %v2663_v62 = vpop.f32.mrf.mxu3  ;;  %v1840_v13 = vpack.c.bf16 %v6970_v22, %v6966_v15 }
 0x2e9   :  { %v5170_v10 = vpop.eup %5169  ;;  %5175 = vtanh.f32 %v1237_v16  ;;  %v2664_v26 = vadd.f32 %v6845_v3, %v2663_v62 }
 0x2ea   :  { %v5172_v0 = vpop.eup %5171  ;;  %v3095_v27 = vmul.f32 0.1, %v5170_v10  ;;  %v1238_v5 = vpop.f32.mrf.mxu1  ;;  %1991 = vmatmul.bf16.gmra.mxu2 %v1840_v13  ;;  %v9416_v10 = vld [vmem:[#allocation25_spill] sm:$0xff] }
 0x2eb   :  { %v1239_v52 = vadd.f32 %v6845_v3, %v1238_v5  ;;  %v2353_v12 = vmul.f32 0.1, %v5172_v0  ;;  %v6986_v13 = vadd.f32 %v6734_v9, %v9416_v10 }
 0x2ec   :  { %v6980_v54 = vadd.f32 %v3095_v27, %v6641_v14  ;;  %v9417_v14 = vld [vmem:[#allocation23_spill] sm:$0xff] }
 0x2ed   :  { %5177 = vtanh.f32 %v1239_v52  ;;  %v1952_v58 = vpop.f32.mrf.mxu2  ;;  %v6991_v6 = vadd.f32 %v6734_v9, %v9417_v14  ;;  %v6994_v0 = vadd.f32 %v2353_v12, %v6649_v24 }
 0x2ee   :  { %v5174_v11 = vpop.eup %5173  ;;  %v3343_v16 = vpack.c.bf16 %v6980_v54, %v6977_v39  ;;  %5179 = vtanh.f32 %v2664_v26  ;;  %v1953_v19 = vadd.f32 %v6845_v3, %v1952_v58 }
 0x2ef   :  { %v5176_v63 = vpop.eup %5175  ;;  %v2354_v62 = vmul.f32 0.1, %v5174_v11  ;;  %v1038_v26 = vpack.c.bf16 %v6986_v13, %v6991_v6 }
 0x2f0   :  { %v2665_v5 = vpop.f32.mrf.mxu3  ;;  %3486 = vmatmul.bf16.gmra.mxu0 %v3343_v16  ;;  %v1612_v10 = vmul.f32 0.1, %v5176_v63 }
 0x2f1   :  { %v2666_v27 = vadd.f32 %v6845_v3, %v2665_v5  ;;  %v6998_v52 = vadd.f32 %v2354_v62, %v6653_v49 }
 0x2f2   :  { %v1241_v22 = vpop.f32.mrf.mxu1  ;;  %v7006_v49 = vadd.f32 %v1612_v10, %v6669_v36 }
 0x2f3   :  { %9418 = vst [vmem:[#allocation19_spill] sm:$0xff] %v6998_v52  ;;  %v5178_v11 = vpop.eup %5177  ;;  %5181 = vtanh.f32 %v2666_v27  ;;  %v2592_v58 = vpack.c.bf16 %v6998_v52, %v6994_v0  ;;  %v1242_v24 = vadd.f32 %v6845_v3, %v1241_v22 }
 0x2f4   :  { %v1613_v16 = vmul.f32 0.1, %v5178_v11  ;;  %5183 = vtanh.f32 %v1953_v19  ;;  %v5180_v14 = vpop.eup %5179 }
 0x2f5   :  { %1280 = vmatmul.bf16.gmra.mxu1 %v1038_v26  ;;  %v1954_v12 = vpop.f32.mrf.mxu2  ;;  %2707 = vmatmul.bf16.gmra.mxu3 %v2592_v58  ;;  %v3096_v5 = vmul.f32 0.1, %v5180_v14 }
 0x2f6   :  { %v1955_v63 = vadd.f32 %v6845_v3, %v1954_v12  ;;  %v7010_v62 = vadd.f32 %v1613_v16, %v6662_v50 }
 0x2f7   :  { %v7017_v58 = vadd.f32 %v3096_v5, %v6672_v31 }
 0x2f8   :  { %9419 = vst [vmem:[#allocation25_spill] sm:$0xff] %v7010_v62  ;;  %5185 = vtanh.f32 %v1955_v63  ;;  %v2668_v27 = vpop.f32.mrf.mxu3  ;;  %v1841_v19 = vpack.c.bf16 %v7010_v62, %v7006_v49 }
 0x2f9   :  { %v5182_v11 = vpop.eup %5181  ;;  %5187 = vtanh.f32 %v1242_v24  ;;  %v2669_v36 = vadd.f32 %v6845_v3, %v2668_v27 }
 0x2fa   :  { %v5184_v22 = vpop.eup %5183  ;;  %v3097_v26 = vmul.f32 0.1, %v5182_v11  ;;  %v1243_v52 = vpop.f32.mrf.mxu1  ;;  %1996 = vmatmul.bf16.gmra.mxu2 %v1841_v19  ;;  %v9420_v11 = vld [vmem:[#allocation29_spill] sm:$0xff] }
 0x2fb   :  { %v1244_v10 = vadd.f32 %v6845_v3, %v1243_v52  ;;  %v2355_v16 = vmul.f32 0.1, %v5184_v22  ;;  %v7026_v19 = vadd.f32 %v6734_v9, %v9420_v11 }
 0x2fc   :  { %v7020_v50 = vadd.f32 %v3097_v26, %v6675_v23  ;;  %v9421_v23 = vld [vmem:[#allocation27_spill] sm:$0xff] }
 0x2fd   :  { %5189 = vtanh.f32 %v1244_v10  ;;  %v1957_v14 = vpop.f32.mrf.mxu2  ;;  %v7031_v5 = vadd.f32 %v6734_v9, %v9421_v23  ;;  %v7034_v22 = vadd.f32 %v2355_v16, %v6683_v33 }
 0x2fe   :  { %v5186_v12 = vpop.eup %5185  ;;  %v3344_v24 = vpack.c.bf16 %v7020_v50, %v7017_v58  ;;  %5191 = vtanh.f32 %v2669_v36  ;;  %v1958_v31 = vadd.f32 %v6845_v3, %v1957_v14 }
 0x2ff   :  { %v5188_v63 = vpop.eup %5187  ;;  %v2356_v27 = vmul.f32 0.1, %v5186_v12  ;;  %v1039_v36 = vpack.c.bf16 %v7026_v19, %v7031_v5 }
 0x300   :  { %v2670_v52 = vpop.f32.mrf.mxu3  ;;  %3491 = vmatmul.bf16.gmra.mxu0 %v3344_v24  ;;  %v1614_v11 = vmul.f32 0.1, %v5188_v63 }
 0x301   :  { %v2671_v26 = vadd.f32 %v6845_v3, %v2670_v52  ;;  %v7038_v10 = vadd.f32 %v2356_v27, %v6687_v37 }
 0x302   :  { %v1246_v62 = vpop.f32.mrf.mxu1  ;;  %v7046_v37 = vadd.f32 %v1614_v11, %v6706_v59 }
 0x303   :  { %9422 = vst [vmem:[#allocation23_spill] sm:$0xff] %v7038_v10  ;;  %v5190_v12 = vpop.eup %5189  ;;  %5193 = vtanh.f32 %v2671_v26  ;;  %v2593_v14 = vpack.c.bf16 %v7038_v10, %v7034_v22  ;;  %v1247_v33 = vadd.f32 %v6845_v3, %v1246_v62 }
 0x304   :  { %v1615_v24 = vmul.f32 0.1, %v5190_v12  ;;  %5195 = vtanh.f32 %v1958_v31  ;;  %v5192_v23 = vpop.eup %5191 }
 0x305   :  { %1285 = vmatmul.bf16.gmra.mxu1 %v1039_v36  ;;  %v1959_v16 = vpop.f32.mrf.mxu2  ;;  %2712 = vmatmul.bf16.gmra.mxu3 %v2593_v14  ;;  %v3098_v52 = vmul.f32 0.1, %v5192_v23 }
 0x306   :  { %v1960_v63 = vadd.f32 %v6845_v3, %v1959_v16  ;;  %v7050_v27 = vadd.f32 %v1615_v24, %v6699_v28 }
 0x307   :  { %v7057_v14 = vadd.f32 %v3098_v52, %v6709_v56 }
 0x308   :  { %9423 = vst [vmem:[#allocation29_spill] sm:$0xff] %v7050_v27  ;;  %5197 = vtanh.f32 %v1960_v63  ;;  %v2673_v26 = vpop.f32.mrf.mxu3  ;;  %v1842_v31 = vpack.c.bf16 %v7050_v27, %v7046_v37 }
 0x309   :  { %v5194_v12 = vpop.eup %5193  ;;  %5199 = vtanh.f32 %v1247_v33  ;;  %v2674_v59 = vadd.f32 %v6845_v3, %v2673_v26 }
 0x30a   :  { %v5196_v62 = vpop.eup %5195  ;;  %v3099_v36 = vmul.f32 0.1, %v5194_v12  ;;  %v1248_v10 = vpop.f32.mrf.mxu1  ;;  %2001 = vmatmul.bf16.gmra.mxu2 %v1842_v31  ;;  %v9424_v12 = vld [vmem:[#allocation32_spill] sm:$0xff] }
 0x30b   :  { %v1249_v11 = vadd.f32 %v6845_v3, %v1248_v10  ;;  %v2357_v24 = vmul.f32 0.1, %v5196_v62  ;;  %v7066_v31 = vadd.f32 %v6734_v9, %v9424_v12 }
 0x30c   :  { %v7060_v28 = vadd.f32 %v3099_v36, %v6712_v34  ;;  %v9425_v34 = vld [vmem:[#allocation31_spill] sm:$0xff] }
 0x30d   :  { %5201 = vtanh.f32 %v1249_v11  ;;  %v1962_v23 = vpop.f32.mrf.mxu2  ;;  %v7071_v52 = vadd.f32 %v6734_v9, %v9425_v34  ;;  %v7074_v62 = vadd.f32 %v2357_v24, %v6720_v38 }
 0x30e   :  { %v5198_v16 = vpop.eup %5197  ;;  %v3345_v33 = vpack.c.bf16 %v7060_v28, %v7057_v14  ;;  %5203 = vtanh.f32 %v2674_v59  ;;  %v1963_v56 = vadd.f32 %v6845_v3, %v1962_v23 }
 0x30f   :  { %v5200_v63 = vpop.eup %5199  ;;  %v2358_v26 = vmul.f32 0.1, %v5198_v16  ;;  %v1040_v59 = vpack.c.bf16 %v7066_v31, %v7071_v52 }
 0x310   :  { %v2675_v10 = vpop.f32.mrf.mxu3  ;;  %3496 = vmatmul.bf16.gmra.mxu0 %v3345_v33  ;;  %v1616_v12 = vmul.f32 0.1, %v5200_v63 }
 0x311   :  { %v2676_v36 = vadd.f32 %v6845_v3, %v2675_v10  ;;  %v7078_v11 = vadd.f32 %v2358_v26, %v6724_v45 }
 0x312   :  { %v1251_v27 = vpop.f32.mrf.mxu1  ;;  %v7086_v45 = vadd.f32 %v1616_v12, %v6745_v42 }
 0x313   :  { %9426 = vst [vmem:[#allocation27_spill] sm:$0xff] %v7078_v11  ;;  %v5202_v16 = vpop.eup %5201  ;;  %5205 = vtanh.f32 %v2676_v36  ;;  %v2594_v23 = vpack.c.bf16 %v7078_v11, %v7074_v62  ;;  %v1252_v38 = vadd.f32 %v6845_v3, %v1251_v27 }
 0x314   :  { %v1617_v33 = vmul.f32 0.1, %v5202_v16  ;;  %5207 = vtanh.f32 %v1963_v56  ;;  %v5204_v34 = vpop.eup %5203 }
 0x315   :  { %1290 = vmatmul.bf16.gmra.mxu1 %v1040_v59  ;;  %v1964_v24 = vpop.f32.mrf.mxu2  ;;  %2717 = vmatmul.bf16.gmra.mxu3 %v2594_v23  ;;  %v3100_v10 = vmul.f32 0.1, %v5204_v34 }
 0x316   :  { %v1965_v63 = vadd.f32 %v6845_v3, %v1964_v24  ;;  %v7090_v26 = vadd.f32 %v1617_v33, %v6738_v30 }
 0x317   :  { %v7097_v23 = vadd.f32 %v3100_v10, %v6748_v25 }
 0x318   :  { %9427 = vst [vmem:[#allocation32_spill] sm:$0xff] %v7090_v26  ;;  %5209 = vtanh.f32 %v1965_v63  ;;  %v2678_v36 = vpop.f32.mrf.mxu3  ;;  %v1843_v56 = vpack.c.bf16 %v7090_v26, %v7086_v45 }
 0x319   :  { %v5206_v16 = vpop.eup %5205  ;;  %5211 = vtanh.f32 %v1252_v38  ;;  %v2679_v42 = vadd.f32 %v6845_v3, %v2678_v36 }
 0x31a   :  { %v5208_v27 = vpop.eup %5207  ;;  %v3101_v59 = vmul.f32 0.1, %v5206_v16  ;;  %v1253_v11 = vpop.f32.mrf.mxu1  ;;  %2006 = vmatmul.bf16.gmra.mxu2 %v1843_v56  ;;  %v9428_v16 = vld [vmem:[#allocation36_spill] sm:$0xff] }
 0x31b   :  { %v1254_v12 = vadd.f32 %v6845_v3, %v1253_v11  ;;  %v2359_v33 = vmul.f32 0.1, %v5208_v27  ;;  %v7106_v56 = vadd.f32 %v6734_v9, %v9428_v16 }
 0x31c   :  { %v7100_v30 = vadd.f32 %v3101_v59, %v6751_v41  ;;  %v9429_v41 = vld [vmem:[#allocation34_spill] sm:$0xff] }
 0x31d   :  { %5213 = vtanh.f32 %v1254_v12  ;;  %v1967_v34 = vpop.f32.mrf.mxu2  ;;  %v7111_v10 = vadd.f32 %v6734_v9, %v9429_v41  ;;  %v7114_v27 = vadd.f32 %v2359_v33, %v6759_v17 }
 0x31e   :  { %v5210_v24 = vpop.eup %5209  ;;  %v3346_v38 = vpack.c.bf16 %v7100_v30, %v7097_v23  ;;  %5215 = vtanh.f32 %v2679_v42  ;;  %v1968_v25 = vadd.f32 %v6845_v3, %v1967_v34 }
 0x31f   :  { %v5212_v63 = vpop.eup %5211  ;;  %v2360_v36 = vmul.f32 0.1, %v5210_v24  ;;  %9430 = vst [vmem:[#allocation31_spill] sm:$0xff] %v7114_v27  ;;  %v1041_v42 = vpack.c.bf16 %v7106_v56, %v7111_v10 }
 0x320   :  { %v2680_v11 = vpop.f32.mrf.mxu3  ;;  %3501 = vmatmul.bf16.gmra.mxu0 %v3346_v38  ;;  %v1618_v16 = vmul.f32 0.1, %v5212_v63 }
 0x321   :  { %v2681_v59 = vadd.f32 %v6845_v3, %v2680_v11  ;;  %v7118_v12 = vadd.f32 %v2360_v36, %v6763_v48 }
 0x322   :  { %v1256_v26 = vpop.f32.mrf.mxu1  ;;  %v7126_v48 = vadd.f32 %v1618_v16, %v6782_v21 }
 0x323   :  { %9431 = vst [vmem:[#allocation36_spill] sm:$0xff] %v7118_v12  ;;  %v5214_v24 = vpop.eup %5213  ;;  %5217 = vtanh.f32 %v2681_v59  ;;  %v2595_v34 = vpack.c.bf16 %v7118_v12, %v7114_v27  ;;  %v1257_v17 = vadd.f32 %v6845_v3, %v1256_v26 }
 0x324   :  { %v1619_v38 = vmul.f32 0.1, %v5214_v24  ;;  %5219 = vtanh.f32 %v1968_v25  ;;  %v5216_v41 = vpop.eup %5215  ;;  %9432 = vst [vmem:[#allocation34_spill] sm:$0xff] %v7126_v48 }
 0x325   :  { %1295 = vmatmul.bf16.gmra.mxu1 %v1041_v42  ;;  %v1969_v33 = vpop.f32.mrf.mxu2  ;;  %2722 = vmatmul.bf16.gmra.mxu3 %v2595_v34  ;;  %v3102_v11 = vmul.f32 0.1, %v5216_v41 }
 0x326   :  { %v1970_v63 = vadd.f32 %v6845_v3, %v1969_v33  ;;  %v7130_v36 = vadd.f32 %v1619_v38, %v6775_v57 }
 0x327   :  { %v7137_v34 = vadd.f32 %v3102_v11, %v6785_v43 }
 0x328   :  { %9433 = vst [vmem:[#allocation86_spill] sm:$0xff] %v7130_v36  ;;  %5221 = vtanh.f32 %v1970_v63  ;;  %v2683_v59 = vpop.f32.mrf.mxu3  ;;  %v1844_v25 = vpack.c.bf16 %v7130_v36, %v7126_v48  ;;  %v9439_v36 = vld [vmem:[#allocation83_spill] sm:$0xff] }
 0x329   :  { %v5218_v24 = vpop.eup %5217  ;;  %5223 = vtanh.f32 %v1257_v17  ;;  %v2684_v21 = vadd.f32 %v6845_v3, %v2683_v59  ;;  %v9436_v59 = vld [vmem:[#allocation6_spill] sm:$0xff] }
 0x32a   :  { %v5220_v26 = vpop.eup %5219  ;;  %v3103_v42 = vmul.f32 0.1, %v5218_v24  ;;  %v1258_v12 = vpop.f32.mrf.mxu1  ;;  %2011 = vmatmul.bf16.gmra.mxu2 %v1844_v25  ;;  %v9435_v24 = vld [vmem:[#allocation5_spill] sm:$0xff] }
 0x32b   :  { %v1259_v16 = vadd.f32 %v6845_v3, %v1258_v12  ;;  %v2361_v38 = vmul.f32 0.1, %v5220_v26  ;;  %v7146_v25 = vadd.f32 %v6734_v9, %v9435_v24  ;;  %v7150_v12 = vadd.f32 %v6734_v9, %v9436_v59  ;;  %v9437_v26 = vld [vmem:[#allocation82_spill] sm:$0xff] }
 0x32c   :  { %v7140_v57 = vadd.f32 %v3103_v42, %v6788_v20 }
 0x32d   :  { %5225 = vtanh.f32 %v1259_v16  ;;  %v1972_v41 = vpop.f32.mrf.mxu2  ;;  %v7154_v42 = vadd.f32 %v2361_v38, %v9437_v26  ;;  %v1042_v59 = vpack.c.bf16 %v7150_v12, %v7146_v25 }
 0x32e   :  { %9434 = vst [vmem:[#allocation87_spill] sm:$0xff] %v7140_v57  ;;  %v5222_v33 = vpop.eup %5221  ;;  %v3347_v17 = vpack.c.bf16 %v7140_v57, %v7137_v34  ;;  %5227 = vtanh.f32 %v2684_v21  ;;  %v1973_v20 = vadd.f32 %v6845_v3, %v1972_v41 }
 0x32f   :  { %v5224_v63 = vpop.eup %5223  ;;  %v2362_v43 = vmul.f32 0.1, %v5222_v33  ;;  %9438 = vst [vmem:[#allocation5_spill] sm:$0xff] %v7154_v42 }
 0x330   :  { %v2685_v11 = vpop.f32.mrf.mxu3  ;;  %3506 = vmatmul.bf16.gmra.mxu0 %v3347_v17  ;;  %v1620_v24 = vmul.f32 0.1, %v5224_v63 }
 0x331   :  { %v2686_v16 = vadd.f32 %v6845_v3, %v2685_v11  ;;  %v7158_v48 = vadd.f32 %v2362_v43, %v9439_v36 }
 0x332   :  { %v1261_v27 = vpop.f32.mrf.mxu1  ;;  %v7166_v36 = vadd.f32 %v1620_v24, %v6812_v60 }
 0x333   :  { %9440 = vst [vmem:[#allocation6_spill] sm:$0xff] %v7158_v48  ;;  %v5226_v57 = vpop.eup %5225  ;;  %5229 = vtanh.f32 %v2686_v16  ;;  %v2596_v21 = vpack.c.bf16 %v7158_v48, %v7154_v42  ;;  %v1262_v38 = vadd.f32 %v6845_v3, %v1261_v27 }
 0x334   :  { %v1621_v41 = vmul.f32 0.1, %v5226_v57  ;;  %5231 = vtanh.f32 %v1973_v20  ;;  %v5228_v33 = vpop.eup %5227  ;;  %9441 = vst [vmem:[#allocation82_spill] sm:$0xff] %v7166_v36 }
 0x335   :  { %1300 = vmatmul.bf16.gmra.mxu1 %v1042_v59  ;;  %v1974_v17 = vpop.f32.mrf.mxu2  ;;  %2727 = vmatmul.bf16.gmra.mxu3 %v2596_v21  ;;  %v3104_v11 = vmul.f32 0.1, %v5228_v33 }
 0x336   :  { %v1975_v63 = vadd.f32 %v6845_v3, %v1974_v17  ;;  %v7170_v43 = vadd.f32 %v1621_v41, %v6807_v47 }
 0x337   :  { %v7177_v21 = vadd.f32 %v3104_v11, %v6815_v32 }
 0x338   :  { %9442 = vst [vmem:[#allocation83_spill] sm:$0xff] %v7170_v43  ;;  %5233 = vtanh.f32 %v1975_v63  ;;  %v2688_v26 = vpop.f32.mrf.mxu3  ;;  %v1845_v57 = vpack.c.bf16 %v7170_v43, %v7166_v36  ;;  %v9447_v43 = vld [vmem:[#allocation57_spill] sm:$0xff] }
 0x339   :  { %v5230_v20 = vpop.eup %5229  ;;  %5235 = vtanh.f32 %v1262_v38  ;;  %v2689_v60 = vadd.f32 %v6845_v3, %v2688_v26  ;;  %v9444_v26 = vld [vmem:[#allocation10_spill] sm:$0xff] }
 0x33a   :  { %v5232_v27 = vpop.eup %5231  ;;  %v3105_v16 = vmul.f32 0.1, %v5230_v20  ;;  %v1263_v59 = vpop.f32.mrf.mxu1  ;;  %2016 = vmatmul.bf16.gmra.mxu2 %v1845_v57  ;;  %v9443_v20 = vld [vmem:[#allocation8_spill] sm:$0xff] }
 0x33b   :  { %v1264_v24 = vadd.f32 %v6845_v3, %v1263_v59  ;;  %v2363_v41 = vmul.f32 0.1, %v5232_v27  ;;  %v7186_v57 = vadd.f32 %v6734_v9, %v9443_v20  ;;  %v7190_v59 = vadd.f32 %v6734_v9, %v9444_v26  ;;  %v9445_v27 = vld [vmem:[#allocation56_spill] sm:$0xff] }
 0x33c   :  { %v7180_v47 = vadd.f32 %v3105_v16, %v6818_v46 }
 0x33d   :  { %5237 = vtanh.f32 %v1264_v24  ;;  %v1977_v33 = vpop.f32.mrf.mxu2  ;;  %v7194_v16 = vadd.f32 %v2363_v41, %v9445_v27  ;;  %v1043_v9 = vpack.c.bf16 %v7190_v59, %v7186_v57 }
 0x33e   :  { %v5234_v17 = vpop.eup %5233  ;;  %v3348_v38 = vpack.c.bf16 %v7180_v47, %v7177_v21  ;;  %5239 = vtanh.f32 %v2689_v60  ;;  %v1978_v46 = vadd.f32 %v6845_v3, %v1977_v33 }
 0x33f   :  { %v5236_v63 = vpop.eup %5235  ;;  %v2364_v32 = vmul.f32 0.1, %v5234_v17  ;;  %9446 = vst [vmem:[#allocation8_spill] sm:$0xff] %v7194_v16 }
 0x340   :  { %v2690_v11 = vpop.f32.mrf.mxu3  ;;  %3511 = vmatmul.bf16.gmra.mxu0 %v3348_v38  ;;  %v1622_v20 = vmul.f32 0.1, %v5236_v63 }
 0x341   :  { %v2691_v24 = vadd.f32 %v6845_v3, %v2690_v11  ;;  %v7198_v36 = vadd.f32 %v2364_v32, %v9447_v43 }
 0x342   :  { %v1266_v48 = vpop.f32.mrf.mxu1  ;;  %v7206_v43 = vadd.f32 %v1622_v20, %v6850_v29 }
 0x343   :  { %9448 = vst [vmem:[#allocation10_spill] sm:$0xff] %v7198_v36  ;;  %v5238_v42 = vpop.eup %5237  ;;  %5241 = vtanh.f32 %v2691_v24  ;;  %v2597_v60 = vpack.c.bf16 %v7198_v36, %v7194_v16  ;;  %v1267_v41 = vadd.f32 %v6845_v3, %v1266_v48 }
 0x344   :  { %v1623_v33 = vmul.f32 0.1, %v5238_v42  ;;  %5243 = vtanh.f32 %v1978_v46  ;;  %v5240_v17 = vpop.eup %5239  ;;  %9449 = vst [vmem:[#allocation56_spill] sm:$0xff] %v7206_v43 }
 0x345   :  { %1305 = vmatmul.bf16.gmra.mxu1 %v1043_v9  ;;  %v1979_v38 = vpop.f32.mrf.mxu2  ;;  %2732 = vmatmul.bf16.gmra.mxu3 %v2597_v60  ;;  %v3106_v32 = vmul.f32 0.1, %v5240_v17 }
 0x346   :  { %v1980_v63 = vadd.f32 %v6845_v3, %v1979_v38  ;;  %v7210_v26 = vadd.f32 %v1623_v33, %v6840_v7  ;;  %v9451_v7 = vld [vmem:[#allocation9_spill] sm:$0xff] }
 0x347   :  { %v7217_v9 = vadd.f32 %v3106_v32, %v6853_v55  ;;  %v9454_v32 = vld [vmem:[#allocation14_spill] sm:$0xff] }
 0x348   :  { %9450 = vst [vmem:[#allocation57_spill] sm:$0xff] %v7210_v26  ;;  %5245 = vtanh.f32 %v1980_v63  ;;  %v2693_v11 = vpop.f32.mrf.mxu3  ;;  %v1846_v42 = vpack.c.bf16 %v7210_v26, %v7206_v43  ;;  %v9458_v43 = vld [vmem:[#allocation84_spill] sm:$0xff] }
 0x349   :  { %v5242_v46 = vpop.eup %5241  ;;  %5247 = vtanh.f32 %v1267_v41  ;;  %v2694_v29 = vadd.f32 %v6845_v3, %v2693_v11  ;;  %v7227_v11 = vld [vmem:[%s9163_s2] ss:$0 sm:$0xff] }
 0x34a   :  { %v5244_v48 = vpop.eup %5243  ;;  %v3107_v27 = vmul.f32 0.1, %v5242_v46  ;;  %v1268_v24 = vpop.f32.mrf.mxu1  ;;  %2021 = vmatmul.bf16.gmra.mxu2 %v1846_v42  ;;  %v9453_v42 = vld [vmem:[#allocation12_spill] sm:$0xff]  ;;  %v7235_v46 = vadd.f32 %v7227_v11, %v9454_v32 }
 0x34b   :  { %v1269_v20 = vadd.f32 %v6845_v3, %v1268_v24  ;;  %v2365_v33 = vmul.f32 0.1, %v5244_v48  ;;  %v7231_v55 = vadd.f32 %v7227_v11, %v9453_v42 }
 0x34c   :  { %v7220_v60 = vadd.f32 %v3107_v27, %v9451_v7  ;;  %9455 = vst [vmem:[#allocation12_spill] sm:$0xff] %v7235_v46 }
 0x34d   :  { %5249 = vtanh.f32 %v1269_v20  ;;  %v1982_v17 = vpop.f32.mrf.mxu2  ;;  %v9456_v20 = vld [vmem:[#allocation7_spill] sm:$0xff]  ;;  %v1044_v32 = vpack.c.bf16 %v7235_v46, %v7231_v55 }
 0x34e   :  { %9452 = vst [vmem:[#allocation9_spill] sm:$0xff] %v7220_v60  ;;  %v5246_v38 = vpop.eup %5245  ;;  %v3349_v41 = vpack.c.bf16 %v7220_v60, %v7217_v9  ;;  %5251 = vtanh.f32 %v2694_v29  ;;  %v1983_v27 = vadd.f32 %v6845_v3, %v1982_v17  ;;  %v7239_v7 = vadd.f32 %v2365_v33, %v9456_v20 }
 0x34f   :  { %v5248_v63 = vpop.eup %5247  ;;  %v2366_v48 = vmul.f32 0.1, %v5246_v38 }
 0x350   :  { %v2695_v24 = vpop.f32.mrf.mxu3  ;;  %3516 = vmatmul.bf16.gmra.mxu0 %v3349_v41  ;;  %9457 = vst [vmem:[#allocation14_spill] sm:$0xff] %v7239_v7  ;;  %v1624_v42 = vmul.f32 0.1, %v5248_v63 }
 0x351   :  { %v2696_v26 = vadd.f32 %v6845_v3, %v2695_v24  ;;  %v7243_v36 = vadd.f32 %v2366_v48, %v9458_v43 }
 0x352   :  { %v1271_v16 = vpop.f32.mrf.mxu1  ;;  %v7251_v43 = vadd.f32 %v1624_v42, %v6880_v40 }
 0x353   :  { %9459 = vst [vmem:[#allocation7_spill] sm:$0xff] %v7243_v36  ;;  %v5250_v60 = vpop.eup %5249  ;;  %5253 = vtanh.f32 %v2696_v26  ;;  %v2598_v29 = vpack.c.bf16 %v7243_v36, %v7239_v7  ;;  %v1272_v33 = vadd.f32 %v6845_v3, %v1271_v16  ;;  %v9469_v7 = vld [vmem:[#allocation85_spill] sm:$0xff] }
 0x354   :  { %v1625_v17 = vmul.f32 0.1, %v5250_v60  ;;  %5255 = vtanh.f32 %v1983_v27  ;;  %v5252_v38 = vpop.eup %5251  ;;  %9460 = vst [vmem:[#allocation84_spill] sm:$0xff] %v7251_v43 }
 0x355   :  { %1310 = vmatmul.bf16.gmra.mxu1 %v1044_v32  ;;  %v1984_v41 = vpop.f32.mrf.mxu2  ;;  %2737 = vmatmul.bf16.gmra.mxu3 %v2598_v29  ;;  %v3108_v26 = vmul.f32 0.1, %v5252_v38  ;;  %v9462_v29 = vld [vmem:[#allocation13_spill] sm:$0xff] }
 0x356   :  { %v1985_v63 = vadd.f32 %v6845_v3, %v1984_v41  ;;  %v7255_v48 = vadd.f32 %v1625_v17, %v6875_v4  ;;  %v9464_v4 = vld [vmem:[#allocation11_spill] sm:$0xff] }
 0x357   :  { %v7262_v41 = vadd.f32 %v3108_v26, %v9462_v29 }
 0x358   :  { %9461 = vst [vmem:[#allocation88_spill] sm:$0xff] %v7255_v48  ;;  %5257 = vtanh.f32 %v1985_v63  ;;  %v2698_v24 = vpop.f32.mrf.mxu3  ;;  %v1847_v60 = vpack.c.bf16 %v7255_v48, %v7251_v43 }
 0x359   :  { %v5254_v27 = vpop.eup %5253  ;;  %5259 = vtanh.f32 %v1272_v33  ;;  %v2699_v40 = vadd.f32 %v6845_v3, %v2698_v24  ;;  %9463 = vst [vmem:[#allocation13_spill] sm:$0xff] %v7262_v41 }
 0x35a   :  { %v5256_v16 = vpop.eup %5255  ;;  %v3109_v20 = vmul.f32 0.1, %v5254_v27  ;;  %v1273_v32 = vpop.f32.mrf.mxu1  ;;  %2026 = vmatmul.bf16.gmra.mxu2 %v1847_v60  ;;  %v9466_v60 = vld [vmem:[#allocation16_spill] sm:$0xff] }
 0x35b   :  { %v1274_v42 = vadd.f32 %v6845_v3, %v1273_v32  ;;  %v2367_v38 = vmul.f32 0.1, %v5256_v16  ;;  %v7271_v24 = vadd.f32 %v7227_v11, %v9466_v60  ;;  %v9467_v32 = vld [vmem:[#allocation18_spill] sm:$0xff] }
 0x35c   :  { %v7265_v17 = vadd.f32 %v3109_v20, %v9464_v4  ;;  %v7275_v26 = vadd.f32 %v7227_v11, %v9467_v32  ;;  %v7280_v16 = vld [vmem:[%s9167_s6] ss:$0 sm:$0xff] }
 0x35d   :  { %5261 = vtanh.f32 %v1274_v42  ;;  %v1987_v63 = vpop.f32.mrf.mxu2  ;;  %v3482_v48 = vpop.f32.mrf.mxu0  ;;  %v9468_v4 = vld [vmem:[#allocation66_spill] sm:$0xff] }
 0x35e   :  { %9465 = vst [vmem:[#allocation11_spill] sm:$0xff] %v7265_v17  ;;  %v5258_v43 = vpop.eup %5257  ;;  %v3350_v33 = vpack.c.bf16 %v7265_v17, %v7262_v41  ;;  %5263 = vtanh.f32 %v2699_v40  ;;  %v1988_v20 = vadd.f32 %v6845_v3, %v1987_v63  ;;  %v7284_v36 = vadd.f32 %v2367_v38, %v9468_v4 }
 0x35f   :  { %v5260_v27 = vpop.eup %5259  ;;  %v2368_v29 = vmul.f32 0.1, %v5258_v43  ;;  %v1045_v41 = vpack.c.bf16 %v7275_v26, %v7271_v24  ;;  %v3483_v46 = vadd.f32 %v7280_v16, %v3482_v48 }
 0x360   :  { %v2700_v42 = vpop.f32.mrf.mxu3  ;;  %3521 = vmatmul.bf16.gmra.mxu0 %v3350_v33  ;;  %v1626_v32 = vmul.f32 0.1, %v5260_v27 }
 0x361   :  { %v2701_v60 = vadd.f32 %v6845_v3, %v2700_v42  ;;  %v7288_v17 = vadd.f32 %v2368_v29, %v9469_v7 }
 0x362   :  { %v1276_v43 = vpop.f32.mrf.mxu1  ;;  %v7297_v29 = vadd.f32 %v1626_v32, %v6911_v1 }
 0x363   :  { %9470 = vst [vmem:[#allocation16_spill] sm:$0xff] %v7288_v17  ;;  %v5262_v40 = vpop.eup %5261  ;;  %5265 = vtanh.f32 %v2701_v60  ;;  %v2599_v63 = vpack.c.bf16 %v7288_v17, %v7284_v36  ;;  %v1277_v42 = vadd.f32 %v6845_v3, %v1276_v43 }
 0x364   :  { %v1627_v33 = vmul.f32 0.1, %v5262_v40  ;;  %5267 = vtanh.f32 %v1988_v20  ;;  %v5264_v38 = vpop.eup %5263  ;;  %9471 = vst [vmem:[#allocation18_spill] sm:$0xff] %v7297_v29  ;;  %v3796_v40 = vadd.f32 %v3483_v46, %v6937_v51 }
 0x365   :  { %1315 = vmatmul.bf16.gmra.mxu1 %v1045_v41  ;;  %v1989_v7 = vpop.f32.mrf.mxu2  ;;  %2742 = vmatmul.bf16.gmra.mxu3 %v2599_v63  ;;  %v3484_v27 = vpop.f32.mrf.mxu0  ;;  %v3110_v20 = vmul.f32 0.1, %v5264_v38 }
 0x366   :  { %v1990_v4 = vadd.f32 %v6845_v3, %v1989_v7  ;;  %v3485_v48 = vadd.f32 %v7280_v16, %v3484_v27  ;;  %v7302_v60 = vadd.f32 %v1627_v33, %v6906_v53  ;;  %v7311_v53 = vld [vmem:[%s9165_s4] ss:$0 sm:$0xff]  ;;  %v9473_v33 = vld [vmem:[#allocation17_spill] sm:$0xff] }
 0x367   :  { %v7316_v46 = vadd.f32 %v3110_v20, %v6914_v2 }
 0x368   :  { %9472 = vst [vmem:[#allocation66_spill] sm:$0xff] %v7302_v60  ;;  %5269 = vtanh.f32 %v1990_v4  ;;  %v3797_v43 = vadd.f32 %v3485_v48, %v6940_v8  ;;  %v2703_v41 = vpop.f32.mrf.mxu3  ;;  %v1848_v63 = vpack.c.bf16 %v7302_v60, %v7297_v29 }
 0x369   :  { %v5266_v17 = vpop.eup %5265  ;;  %5271 = vtanh.f32 %v1277_v42  ;;  %v2704_v51 = vadd.f32 %v7311_v53, %v2703_v41 }
 0x36a   :  { %v5268_v1 = vpop.eup %5267  ;;  %v3111_v32 = vmul.f32 0.1, %v5266_v17  ;;  %v4650_v3 = vpack.c.bf16 %v3797_v43, %v3796_v40  ;;  %v1278_v7 = vpop.f32.mrf.mxu1  ;;  %2031 = vmatmul.bf16.gmra.mxu2 %v1848_v63  ;;  %v9474_v43 = vld [vmem:[#allocation20_spill] sm:$0xff]  ;;  %v9475_v63 = vld [vmem:[#allocation22_spill] sm:$0xff] }
 0x36b   :  { %v1279_v8 = vadd.f32 %v7311_v53, %v1278_v7  ;;  %v2369_v17 = vmul.f32 0.1, %v5268_v1  ;;  %v7325_v41 = vadd.f32 %v7227_v11, %v9474_v43  ;;  %v7329_v2 = vadd.f32 %v7227_v11, %v9475_v63 }
 0x36c   :  { %4651 = vst [vmem:[#allocation2] sm:$0xff] %v4650_v3   ;;  %v7319_v38 = vadd.f32 %v3111_v32, %v9473_v33 }
 0x36d   :  { %5273 = vtanh.f32 %v1279_v8  ;;  %v1992_v42 = vpop.f32.mrf.mxu2  ;;  %v3487_v27 = vpop.f32.mrf.mxu0  ;;  %v7333_v3 = vadd.f32 %v2369_v17, %v6926_v35  ;;  %v9476_v8 = vld [vmem:[#allocation15_spill] sm:$0xff]  ;;  %v1046_v63 = vpack.c.bf16 %v7329_v2, %v7325_v41 }
 0x36e   :  { %v5270_v4 = vpop.eup %5269  ;;  %v3351_v48 = vpack.c.bf16 %v7319_v38, %v7316_v46  ;;  %5275 = vtanh.f32 %v2704_v51  ;;  %v1993_v1 = vadd.f32 %v7311_v53, %v1992_v42  ;;  %v3488_v51 = vadd.f32 %v7280_v16, %v3487_v27 }
 0x36f   :  { %v5272_v40 = vpop.eup %5271  ;;  %v2370_v20 = vmul.f32 0.1, %v5270_v4 }
 0x370   :  { %v2705_v32 = vpop.f32.mrf.mxu3  ;;  %3526 = vmatmul.bf16.gmra.mxu0 %v3351_v48  ;;  %v1628_v43 = vmul.f32 0.1, %v5272_v40 }
 0x371   :  { %v2706_v7 = vadd.f32 %v7311_v53, %v2705_v32  ;;  %v7337_v33 = vadd.f32 %v2370_v20, %v9476_v8 }
 0x372   :  { %v1281_v60 = vpop.f32.mrf.mxu1  ;;  %v7346_v20 = vadd.f32 %v1628_v43, %v6951_v18 }
 0x373   :  { %9477 = vst [vmem:[#allocation85_spill] sm:$0xff] %v7337_v33  ;;  %v5274_v29 = vpop.eup %5273  ;;  %5277 = vtanh.f32 %v2706_v7  ;;  %v2600_v42 = vpack.c.bf16 %v7337_v33, %v7333_v3  ;;  %v1282_v17 = vadd.f32 %v7311_v53, %v1281_v60 }
 0x374   :  { %v1629_v4 = vmul.f32 0.1, %v5274_v29  ;;  %5279 = vtanh.f32 %v1993_v1  ;;  %v5276_v35 = vpop.eup %5275  ;;  %v3798_v29 = vadd.f32 %v3488_v51, %v6977_v39 }
 0x375   :  { %1320 = vmatmul.bf16.gmra.mxu1 %v1046_v63  ;;  %v1994_v48 = vpop.f32.mrf.mxu2  ;;  %2747 = vmatmul.bf16.gmra.mxu3 %v2600_v42  ;;  %v3489_v40 = vpop.f32.mrf.mxu0  ;;  %v3112_v1 = vmul.f32 0.1, %v5276_v35 }
 0x376   :  { %v1995_v32 = vadd.f32 %v7311_v53, %v1994_v48  ;;  %v3490_v27 = vadd.f32 %v7280_v16, %v3489_v40  ;;  %v7351_v7 = vadd.f32 %v1629_v4, %v6946_v61 }
 0x377   :  { %v7360_v39 = vadd.f32 %v3112_v1, %v6954_v44 }
 0x378   :  { %9478 = vst [vmem:[#allocation17_spill] sm:$0xff] %v7351_v7  ;;  %5281 = vtanh.f32 %v1995_v32  ;;  %v3799_v60 = vadd.f32 %v3490_v27, %v6980_v54  ;;  %v2708_v8 = vpop.f32.mrf.mxu3  ;;  %v1849_v63 = vpack.c.bf16 %v7351_v7, %v7346_v20  ;;  %v9479_v54 = vld [vmem:[#allocation69_spill] sm:$0xff] }
 0x379   :  { %v5278_v42 = vpop.eup %5277  ;;  %5283 = vtanh.f32 %v1282_v17  ;;  %v2709_v61 = vadd.f32 %v7311_v53, %v2708_v8 }
 0x37a   :  { %v5280_v18 = vpop.eup %5279  ;;  %v3113_v43 = vmul.f32 0.1, %v5278_v42  ;;  %v4655_v48 = vpack.c.bf16 %v3799_v60, %v3798_v29  ;;  %v1283_v33 = vpop.f32.mrf.mxu1  ;;  %2036 = vmatmul.bf16.gmra.mxu2 %v1849_v63  ;;  %v9480_v60 = vld [vmem:[#allocation24_spill] sm:$0xff] }
 0x37b   :  { %v1284_v4 = vadd.f32 %v7311_v53, %v1283_v33  ;;  %v2371_v35 = vmul.f32 0.1, %v5280_v18  ;;  %v7369_v8 = vadd.f32 %v7227_v11, %v9480_v60  ;;  %v9481_v33 = vld [vmem:[#allocation26_spill] sm:$0xff] }
 0x37c   :  { %4957 = vst [vmem:[#allocation2 + $0x8] sm:$0xff] %v4655_v48   ;;  %v7363_v51 = vadd.f32 %v3113_v43, %v9479_v54  ;;  %v7373_v44 = vadd.f32 %v7227_v11, %v9481_v33  ;;  %v9482_v48 = vld [vmem:[#allocation21_spill] sm:$0xff] }
 0x37d   :  { %5285 = vtanh.f32 %v1284_v4  ;;  %v1997_v40 = vpop.f32.mrf.mxu2  ;;  %v3492_v17 = vpop.f32.mrf.mxu0  ;;  %v7377_v18 = vadd.f32 %v2371_v35, %v6966_v15 }
 0x37e   :  { %v5282_v32 = vpop.eup %5281  ;;  %v3352_v27 = vpack.c.bf16 %v7363_v51, %v7360_v39  ;;  %5287 = vtanh.f32 %v2709_v61  ;;  %v1998_v63 = vadd.f32 %v7311_v53, %v1997_v40  ;;  %v1047_v33 = vpack.c.bf16 %v7373_v44, %v7369_v8 }
 0x37f   :  { %v5284_v29 = vpop.eup %5283  ;;  %v2372_v1 = vmul.f32 0.1, %v5282_v32  ;;  %v3493_v61 = vadd.f32 %v7280_v16, %v3492_v17 }
 0x380   :  { %v2710_v42 = vpop.f32.mrf.mxu3  ;;  %3531 = vmatmul.bf16.gmra.mxu0 %v3352_v27  ;;  %v1630_v54 = vmul.f32 0.1, %v5284_v29 }
 0x381   :  { %v2711_v43 = vadd.f32 %v7311_v53, %v2710_v42  ;;  %v7381_v4 = vadd.f32 %v2372_v1, %v9482_v48 }
 0x382   :  { %v1286_v60 = vpop.f32.mrf.mxu1  ;;  %v7390_v1 = vadd.f32 %v1630_v54, %v6991_v6 }
 0x383   :  { %9483 = vst [vmem:[#allocation20_spill] sm:$0xff] %v7381_v4  ;;  %v5286_v7 = vpop.eup %5285  ;;  %5289 = vtanh.f32 %v2711_v43  ;;  %v2601_v40 = vpack.c.bf16 %v7381_v4, %v7377_v18  ;;  %v1287_v35 = vadd.f32 %v7311_v53, %v1286_v60 }
 0x384   :  { %v1631_v32 = vmul.f32 0.1, %v5286_v7  ;;  %5291 = vtanh.f32 %v1998_v63  ;;  %v5288_v15 = vpop.eup %5287  ;;  %v3800_v7 = vadd.f32 %v3493_v61, %v7017_v58 }
 0x385   :  { %1325 = vmatmul.bf16.gmra.mxu1 %v1047_v33  ;;  %v1999_v27 = vpop.f32.mrf.mxu2  ;;  %2752 = vmatmul.bf16.gmra.mxu3 %v2601_v40  ;;  %v3494_v29 = vpop.f32.mrf.mxu0  ;;  %v3114_v63 = vmul.f32 0.1, %v5288_v15 }
 0x386   :  { %v2000_v42 = vadd.f32 %v7311_v53, %v1999_v27  ;;  %v3495_v17 = vadd.f32 %v7280_v16, %v3494_v29  ;;  %v7395_v43 = vadd.f32 %v1631_v32, %v6986_v13 }
 0x387   :  { %v7404_v58 = vadd.f32 %v3114_v63, %v6994_v0 }
 0x388   :  { %9484 = vst [vmem:[#allocation22_spill] sm:$0xff] %v7395_v43  ;;  %5293 = vtanh.f32 %v2000_v42  ;;  %v3801_v48 = vadd.f32 %v3495_v17, %v7020_v50  ;;  %v2713_v60 = vpop.f32.mrf.mxu3  ;;  %v1850_v33 = vpack.c.bf16 %v7395_v43, %v7390_v1  ;;  %v9485_v50 = vld [vmem:[#allocation19_spill] sm:$0xff] }
 0x389   :  { %v5290_v40 = vpop.eup %5289  ;;  %5295 = vtanh.f32 %v1287_v35  ;;  %v2714_v13 = vadd.f32 %v7311_v53, %v2713_v60 }
 0x38a   :  { %v5292_v6 = vpop.eup %5291  ;;  %v3115_v54 = vmul.f32 0.1, %v5290_v40  ;;  %v4660_v27 = vpack.c.bf16 %v3801_v48, %v3800_v7  ;;  %v1288_v4 = vpop.f32.mrf.mxu1  ;;  %2041 = vmatmul.bf16.gmra.mxu2 %v1850_v33  ;;  %v9486_v48 = vld [vmem:[#allocation28_spill] sm:$0xff] }
 0x38b   :  { %v1289_v32 = vadd.f32 %v7311_v53, %v1288_v4  ;;  %v2373_v15 = vmul.f32 0.1, %v5292_v6  ;;  %v7413_v60 = vadd.f32 %v7227_v11, %v9486_v48  ;;  %v9487_v4 = vld [vmem:[#allocation30_spill] sm:$0xff] }
 0x38c   :  { %4958 = vst [vmem:[#allocation2 + $0x10] sm:$0xff] %v4660_v27   ;;  %v7407_v61 = vadd.f32 %v3115_v54, %v9485_v50  ;;  %v7417_v0 = vadd.f32 %v7227_v11, %v9487_v4  ;;  %v9488_v27 = vld [vmem:[#allocation25_spill] sm:$0xff] }
 0x38d   :  { %5297 = vtanh.f32 %v1289_v32  ;;  %v2002_v29 = vpop.f32.mrf.mxu2  ;;  %v3497_v35 = vpop.f32.mrf.mxu0  ;;  %v7421_v6 = vadd.f32 %v2373_v15, %v7006_v49 }
 0x38e   :  { %v5294_v42 = vpop.eup %5293  ;;  %v3353_v17 = vpack.c.bf16 %v7407_v61, %v7404_v58  ;;  %5299 = vtanh.f32 %v2714_v13  ;;  %v2003_v33 = vadd.f32 %v7311_v53, %v2002_v29  ;;  %v1048_v4 = vpack.c.bf16 %v7417_v0, %v7413_v60 }
 0x38f   :  { %v5296_v7 = vpop.eup %5295  ;;  %v2374_v63 = vmul.f32 0.1, %v5294_v42  ;;  %v3498_v13 = vadd.f32 %v7280_v16, %v3497_v35 }
 0x390   :  { %v2715_v40 = vpop.f32.mrf.mxu3  ;;  %3536 = vmatmul.bf16.gmra.mxu0 %v3353_v17  ;;  %v1632_v50 = vmul.f32 0.1, %v5296_v7 }
 0x391   :  { %v2716_v54 = vadd.f32 %v7311_v53, %v2715_v40  ;;  %v7425_v32 = vadd.f32 %v2374_v63, %v9488_v27 }
 0x392   :  { %v1291_v48 = vpop.f32.mrf.mxu1  ;;  %v7434_v63 = vadd.f32 %v1632_v50, %v7031_v5 }
 0x393   :  { %9489 = vst [vmem:[#allocation15_spill] sm:$0xff] %v7425_v32  ;;  %v5298_v43 = vpop.eup %5297  ;;  %5301 = vtanh.f32 %v2716_v54  ;;  %v2602_v29 = vpack.c.bf16 %v7425_v32, %v7421_v6  ;;  %v1292_v15 = vadd.f32 %v7311_v53, %v1291_v48 }
 0x394   :  { %v1633_v42 = vmul.f32 0.1, %v5298_v43  ;;  %5303 = vtanh.f32 %v2003_v33  ;;  %v5300_v49 = vpop.eup %5299  ;;  %v3802_v43 = vadd.f32 %v3498_v13, %v7057_v14 }
 0x395   :  { %1330 = vmatmul.bf16.gmra.mxu1 %v1048_v4  ;;  %v2004_v17 = vpop.f32.mrf.mxu2  ;;  %2757 = vmatmul.bf16.gmra.mxu3 %v2602_v29  ;;  %v3499_v7 = vpop.f32.mrf.mxu0  ;;  %v3116_v33 = vmul.f32 0.1, %v5300_v49 }
 0x396   :  { %v2005_v40 = vadd.f32 %v7311_v53, %v2004_v17  ;;  %v3500_v35 = vadd.f32 %v7280_v16, %v3499_v7  ;;  %v7439_v54 = vadd.f32 %v1633_v42, %v7026_v19 }
 0x397   :  { %v7448_v14 = vadd.f32 %v3116_v33, %v7034_v22 }
 0x398   :  { %9490 = vst [vmem:[#allocation69_spill] sm:$0xff] %v7439_v54  ;;  %5305 = vtanh.f32 %v2005_v40  ;;  %v3803_v27 = vadd.f32 %v3500_v35, %v7060_v28  ;;  %v2718_v48 = vpop.f32.mrf.mxu3  ;;  %v1851_v4 = vpack.c.bf16 %v7439_v54, %v7434_v63  ;;  %v9491_v28 = vld [vmem:[#allocation23_spill] sm:$0xff] }
 0x399   :  { %v5302_v29 = vpop.eup %5301  ;;  %5307 = vtanh.f32 %v1292_v15  ;;  %v2719_v19 = vadd.f32 %v7311_v53, %v2718_v48 }
 0x39a   :  { %v5304_v5 = vpop.eup %5303  ;;  %v3117_v50 = vmul.f32 0.1, %v5302_v29  ;;  %v4665_v17 = vpack.c.bf16 %v3803_v27, %v3802_v43  ;;  %v1293_v32 = vpop.f32.mrf.mxu1  ;;  %2046 = vmatmul.bf16.gmra.mxu2 %v1851_v4  ;;  %v9492_v27 = vld [vmem:[#allocation33_spill] sm:$0xff] }
 0x39b   :  { %v1294_v42 = vadd.f32 %v7311_v53, %v1293_v32  ;;  %v2375_v49 = vmul.f32 0.1, %v5304_v5  ;;  %v7457_v48 = vadd.f32 %v7227_v11, %v9492_v27  ;;  %v9493_v32 = vld [vmem:[#allocation35_spill] sm:$0xff] }
 0x39c   :  { %4959 = vst [vmem:[#allocation2 + $0x18] sm:$0xff] %v4665_v17   ;;  %v7451_v13 = vadd.f32 %v3117_v50, %v9491_v28  ;;  %v7461_v22 = vadd.f32 %v7227_v11, %v9493_v32  ;;  %v9494_v17 = vld [vmem:[#allocation29_spill] sm:$0xff] }
 0x39d   :  { %5309 = vtanh.f32 %v1294_v42  ;;  %v2007_v7 = vpop.f32.mrf.mxu2  ;;  %v3502_v15 = vpop.f32.mrf.mxu0  ;;  %v7465_v5 = vadd.f32 %v2375_v49, %v7046_v37 }
 0x39e   :  { %v5306_v40 = vpop.eup %5305  ;;  %v3354_v35 = vpack.c.bf16 %v7451_v13, %v7448_v14  ;;  %5311 = vtanh.f32 %v2719_v19  ;;  %v2008_v4 = vadd.f32 %v7311_v53, %v2007_v7  ;;  %v1049_v32 = vpack.c.bf16 %v7461_v22, %v7457_v48 }
 0x39f   :  { %v5308_v43 = vpop.eup %5307  ;;  %v2376_v33 = vmul.f32 0.1, %v5306_v40  ;;  %v3503_v19 = vadd.f32 %v7280_v16, %v3502_v15 }
 0x3a0   :  { %v2720_v29 = vpop.f32.mrf.mxu3  ;;  %3541 = vmatmul.bf16.gmra.mxu0 %v3354_v35  ;;  %v1634_v28 = vmul.f32 0.1, %v5308_v43 }
 0x3a1   :  { %v2721_v50 = vadd.f32 %v7311_v53, %v2720_v29  ;;  %v7469_v42 = vadd.f32 %v2376_v33, %v9494_v17 }
 0x3a2   :  { %v1296_v27 = vpop.f32.mrf.mxu1  ;;  %v7478_v33 = vadd.f32 %v1634_v28, %v7071_v52 }
 0x3a3   :  { %9495 = vst [vmem:[#allocation24_spill] sm:$0xff] %v7469_v42  ;;  %v5310_v54 = vpop.eup %5309  ;;  %5313 = vtanh.f32 %v2721_v50  ;;  %v2603_v7 = vpack.c.bf16 %v7469_v42, %v7465_v5  ;;  %v1297_v49 = vadd.f32 %v7311_v53, %v1296_v27 }
 0x3a4   :  { %v1635_v40 = vmul.f32 0.1, %v5310_v54  ;;  %5315 = vtanh.f32 %v2008_v4  ;;  %v5312_v37 = vpop.eup %5311  ;;  %v3804_v54 = vadd.f32 %v3503_v19, %v7097_v23 }
 0x3a5   :  { %1335 = vmatmul.bf16.gmra.mxu1 %v1049_v32  ;;  %v2009_v35 = vpop.f32.mrf.mxu2  ;;  %2762 = vmatmul.bf16.gmra.mxu3 %v2603_v7  ;;  %v3504_v43 = vpop.f32.mrf.mxu0  ;;  %v3118_v4 = vmul.f32 0.1, %v5312_v37 }
 0x3a6   :  { %v2010_v29 = vadd.f32 %v7311_v53, %v2009_v35  ;;  %v3505_v15 = vadd.f32 %v7280_v16, %v3504_v43  ;;  %v7483_v50 = vadd.f32 %v1635_v40, %v7066_v31 }
 0x3a7   :  { %v7492_v23 = vadd.f32 %v3118_v4, %v7074_v62 }
 0x3a8   :  { %9496 = vst [vmem:[#allocation26_spill] sm:$0xff] %v7483_v50  ;;  %5317 = vtanh.f32 %v2010_v29  ;;  %v3805_v17 = vadd.f32 %v3505_v15, %v7100_v30  ;;  %v2723_v27 = vpop.f32.mrf.mxu3  ;;  %v1852_v32 = vpack.c.bf16 %v7483_v50, %v7478_v33  ;;  %v9497_v30 = vld [vmem:[#allocation27_spill] sm:$0xff] }
 0x3a9   :  { %v5314_v7 = vpop.eup %5313  ;;  %5319 = vtanh.f32 %v1297_v49  ;;  %v2724_v31 = vadd.f32 %v7311_v53, %v2723_v27 }
 0x3aa   :  { %v5316_v52 = vpop.eup %5315  ;;  %v3119_v28 = vmul.f32 0.1, %v5314_v7  ;;  %v4670_v35 = vpack.c.bf16 %v3805_v17, %v3804_v54  ;;  %v1298_v42 = vpop.f32.mrf.mxu1  ;;  %2051 = vmatmul.bf16.gmra.mxu2 %v1852_v32  ;;  %v9498_v17 = vld [vmem:[#allocation37_spill] sm:$0xff] }
 0x3ab   :  { %v1299_v40 = vadd.f32 %v7311_v53, %v1298_v42  ;;  %v2377_v37 = vmul.f32 0.1, %v5316_v52  ;;  %v7501_v27 = vadd.f32 %v7227_v11, %v9498_v17  ;;  %v9499_v42 = vld [vmem:[#allocation38_spill] sm:$0xff] }
 0x3ac   :  { %4960 = vst [vmem:[#allocation2 + $0x20] sm:$0xff] %v4670_v35   ;;  %v7495_v19 = vadd.f32 %v3119_v28, %v9497_v30  ;;  %v7505_v62 = vadd.f32 %v7227_v11, %v9499_v42  ;;  %v9501_v35 = vld [vmem:[#allocation32_spill] sm:$0xff] }
 0x3ad   :  { %5321 = vtanh.f32 %v1299_v40  ;;  %v2012_v43 = vpop.f32.mrf.mxu2  ;;  %v3507_v49 = vpop.f32.mrf.mxu0  ;;  %v7509_v52 = vadd.f32 %v2377_v37, %v7086_v45 }
 0x3ae   :  { %v5318_v29 = vpop.eup %5317  ;;  %v3355_v15 = vpack.c.bf16 %v7495_v19, %v7492_v23  ;;  %5323 = vtanh.f32 %v2724_v31  ;;  %v2013_v32 = vadd.f32 %v7311_v53, %v2012_v43  ;;  %v1050_v42 = vpack.c.bf16 %v7505_v62, %v7501_v27 }
 0x3af   :  { %v5320_v54 = vpop.eup %5319  ;;  %v2378_v4 = vmul.f32 0.1, %v5318_v29  ;;  %9500 = vst [vmem:[#allocation21_spill] sm:$0xff] %v7509_v52  ;;  %v3508_v31 = vadd.f32 %v7280_v16, %v3507_v49 }
 0x3b0   :  { %v2725_v7 = vpop.f32.mrf.mxu3  ;;  %3546 = vmatmul.bf16.gmra.mxu0 %v3355_v15  ;;  %v1636_v30 = vmul.f32 0.1, %v5320_v54 }
 0x3b1   :  { %v2726_v28 = vadd.f32 %v7311_v53, %v2725_v7  ;;  %v7513_v40 = vadd.f32 %v2378_v4, %v9501_v35  ;;  %v9505_v35 = vld [vmem:[#allocation87_spill] sm:$0xff] }
 0x3b2   :  { %v1301_v17 = vpop.f32.mrf.mxu1  ;;  %v7522_v4 = vadd.f32 %v1636_v30, %v7111_v10 }
 0x3b3   :  { %9502 = vst [vmem:[#allocation19_spill] sm:$0xff] %v7513_v40  ;;  %v5322_v50 = vpop.eup %5321  ;;  %5325 = vtanh.f32 %v2726_v28  ;;  %v2604_v43 = vpack.c.bf16 %v7513_v40, %v7509_v52  ;;  %v1302_v37 = vadd.f32 %v7311_v53, %v1301_v17 }
 0x3b4   :  { %v1637_v29 = vmul.f32 0.1, %v5322_v50  ;;  %5327 = vtanh.f32 %v2013_v32  ;;  %v5324_v45 = vpop.eup %5323  ;;  %9503 = vst [vmem:[#allocation28_spill] sm:$0xff] %v7522_v4  ;;  %v3806_v50 = vadd.f32 %v3508_v31, %v7137_v34  ;;  %v9506_v34 = vld [vmem:[#allocation31_spill] sm:$0xff] }
 0x3b5   :  { %1340 = vmatmul.bf16.gmra.mxu1 %v1050_v42  ;;  %v2014_v15 = vpop.f32.mrf.mxu2  ;;  %2767 = vmatmul.bf16.gmra.mxu3 %v2604_v43  ;;  %v3509_v54 = vpop.f32.mrf.mxu0  ;;  %v3120_v32 = vmul.f32 0.1, %v5324_v45  ;;  %v9507_v45 = vld [vmem:[#allocation36_spill] sm:$0xff] }
 0x3b6   :  { %v2015_v7 = vadd.f32 %v7311_v53, %v2014_v15  ;;  %v3510_v49 = vadd.f32 %v7280_v16, %v3509_v54  ;;  %v7527_v28 = vadd.f32 %v1637_v29, %v7106_v56 }
 0x3b7   :  { %v7536_v31 = vadd.f32 %v3120_v32, %v9506_v34 }
 0x3b8   :  { %9504 = vst [vmem:[#allocation30_spill] sm:$0xff] %v7527_v28  ;;  %5329 = vtanh.f32 %v2015_v7  ;;  %v3807_v17 = vadd.f32 %v3510_v49, %v9505_v35  ;;  %v2728_v42 = vpop.f32.mrf.mxu3  ;;  %v1853_v43 = vpack.c.bf16 %v7527_v28, %v7522_v4 }
 0x3b9   :  { %v5326_v40 = vpop.eup %5325  ;;  %5331 = vtanh.f32 %v1302_v37  ;;  %v2729_v56 = vadd.f32 %v7311_v53, %v2728_v42 }
 0x3ba   :  { %v5328_v10 = vpop.eup %5327  ;;  %v3121_v30 = vmul.f32 0.1, %v5326_v40  ;;  %v4675_v15 = vpack.c.bf16 %v3807_v17, %v3806_v50  ;;  %v1303_v52 = vpop.f32.mrf.mxu1  ;;  %2056 = vmatmul.bf16.gmra.mxu2 %v1853_v43  ;;  %v9509_v17 = vld [vmem:[#allocation39_spill] sm:$0xff] }
 0x3bb   :  { %v1304_v29 = vadd.f32 %v7311_v53, %v1303_v52  ;;  %v2379_v7 = vmul.f32 0.1, %v5328_v10  ;;  %v7545_v42 = vadd.f32 %v7227_v11, %v9509_v17  ;;  %v9510_v52 = vld [vmem:[#allocation40_spill] sm:$0xff] }
 0x3bc   :  { %4961 = vst [vmem:[#allocation2 + $0x28] sm:$0xff] %v4675_v15   ;;  %v7539_v54 = vadd.f32 %v3121_v30, %v9507_v45  ;;  %v7549_v32 = vadd.f32 %v7227_v11, %v9510_v52  ;;  %v9511_v15 = vld [vmem:[#allocation34_spill] sm:$0xff] }
 0x3bd   :  { %5333 = vtanh.f32 %v1304_v29  ;;  %v2017_v49 = vpop.f32.mrf.mxu2  ;;  %v3512_v37 = vpop.f32.mrf.mxu0  ;;  %v7553_v29 = vadd.f32 %v2379_v7, %v9511_v15  ;;  %v9513_v45 = vld [vmem:[#allocation86_spill] sm:$0xff] }
 0x3be   :  { %9508 = vst [vmem:[#allocation25_spill] sm:$0xff] %v7539_v54  ;;  %v5330_v35 = vpop.eup %5329  ;;  %v3356_v40 = vpack.c.bf16 %v7539_v54, %v7536_v31  ;;  %5335 = vtanh.f32 %v2729_v56  ;;  %v2018_v10 = vadd.f32 %v7311_v53, %v2017_v49  ;;  %v1051_v52 = vpack.c.bf16 %v7549_v32, %v7545_v42 }
 0x3bf   :  { %v5332_v50 = vpop.eup %5331  ;;  %v2380_v43 = vmul.f32 0.1, %v5330_v35  ;;  %9512 = vst [vmem:[#allocation23_spill] sm:$0xff] %v7553_v29  ;;  %v3513_v56 = vadd.f32 %v7280_v16, %v3512_v37 }
 0x3c0   :  { %v2730_v30 = vpop.f32.mrf.mxu3  ;;  %3551 = vmatmul.bf16.gmra.mxu0 %v3356_v40  ;;  %v1638_v17 = vmul.f32 0.1, %v5332_v50 }
 0x3c1   :  { %v2731_v34 = vadd.f32 %v7311_v53, %v2730_v30  ;;  %v7557_v28 = vadd.f32 %v2380_v43, %v9513_v45 }
 0x3c2   :  { %v1306_v4 = vpop.f32.mrf.mxu1  ;;  %v7566_v30 = vadd.f32 %v1638_v17, %v7146_v25 }
 0x3c3   :  { %9514 = vst [vmem:[#allocation33_spill] sm:$0xff] %v7557_v28  ;;  %v5334_v54 = vpop.eup %5333  ;;  %5337 = vtanh.f32 %v2731_v34  ;;  %v2605_v49 = vpack.c.bf16 %v7557_v28, %v7553_v29  ;;  %v1307_v40 = vadd.f32 %v7311_v53, %v1306_v4 }
 0x3c4   :  { %v1639_v35 = vmul.f32 0.1, %v5334_v54  ;;  %5339 = vtanh.f32 %v2018_v10  ;;  %v5336_v7 = vpop.eup %5335  ;;  %9515 = vst [vmem:[#allocation35_spill] sm:$0xff] %v7566_v30  ;;  %v3808_v54 = vadd.f32 %v3513_v56, %v7177_v21  ;;  %v9517_v21 = vld [vmem:[#allocation5_spill] sm:$0xff] }
 0x3c5   :  { %1345 = vmatmul.bf16.gmra.mxu1 %v1051_v52  ;;  %v2019_v43 = vpop.f32.mrf.mxu2  ;;  %2772 = vmatmul.bf16.gmra.mxu3 %v2605_v49  ;;  %v3514_v50 = vpop.f32.mrf.mxu0  ;;  %v3122_v10 = vmul.f32 0.1, %v5336_v7 }
 0x3c6   :  { %v2020_v15 = vadd.f32 %v7311_v53, %v2019_v43  ;;  %v3515_v37 = vadd.f32 %v7280_v16, %v3514_v50  ;;  %v7571_v34 = vadd.f32 %v1639_v35, %v7150_v12 }
 0x3c7   :  { %v7580_v56 = vadd.f32 %v3122_v10, %v9517_v21 }
 0x3c8   :  { %9516 = vst [vmem:[#allocation29_spill] sm:$0xff] %v7571_v34  ;;  %5341 = vtanh.f32 %v2020_v15  ;;  %v3809_v4 = vadd.f32 %v3515_v37, %v7180_v47  ;;  %v2733_v45 = vpop.f32.mrf.mxu3  ;;  %v1854_v52 = vpack.c.bf16 %v7571_v34, %v7566_v30  ;;  %v9518_v47 = vld [vmem:[#allocation6_spill] sm:$0xff] }
 0x3c9   :  { %v5338_v49 = vpop.eup %5337  ;;  %5343 = vtanh.f32 %v1307_v40  ;;  %v2734_v12 = vadd.f32 %v7311_v53, %v2733_v45 }
 0x3ca   :  { %v5340_v25 = vpop.eup %5339  ;;  %v3123_v17 = vmul.f32 0.1, %v5338_v49  ;;  %v4680_v43 = vpack.c.bf16 %v3809_v4, %v3808_v54  ;;  %v1308_v28 = vpop.f32.mrf.mxu1  ;;  %2061 = vmatmul.bf16.gmra.mxu2 %v1854_v52  ;;  %v9519_v52 = vld [vmem:[#allocation41_spill] sm:$0xff] }
 0x3cb   :  { %v1309_v35 = vadd.f32 %v7311_v53, %v1308_v28  ;;  %v2381_v50 = vmul.f32 0.1, %v5340_v25  ;;  %v7589_v45 = vadd.f32 %v7227_v11, %v9519_v52  ;;  %v9520_v28 = vld [vmem:[#allocation42_spill] sm:$0xff] }
 0x3cc   :  { %4962 = vst [vmem:[#allocation2 + $0x30] sm:$0xff] %v4680_v43   ;;  %v7583_v7 = vadd.f32 %v3123_v17, %v9518_v47  ;;  %v7593_v10 = vadd.f32 %v7227_v11, %v9520_v28  ;;  %v9521_v43 = vld [vmem:[#allocation82_spill] sm:$0xff]  ;;  %v9523_v47 = vld [vmem:[#allocation83_spill] sm:$0xff] }
 0x3cd   :  { %5345 = vtanh.f32 %v1309_v35  ;;  %v2022_v15 = vpop.f32.mrf.mxu2  ;;  %v3517_v40 = vpop.f32.mrf.mxu0  ;;  %v7597_v35 = vadd.f32 %v2381_v50, %v9521_v43 }
 0x3ce   :  { %v5342_v37 = vpop.eup %5341  ;;  %v3357_v54 = vpack.c.bf16 %v7583_v7, %v7580_v56  ;;  %5347 = vtanh.f32 %v2734_v12  ;;  %v2023_v25 = vadd.f32 %v7311_v53, %v2022_v15  ;;  %v1052_v28 = vpack.c.bf16 %v7593_v10, %v7589_v45 }
 0x3cf   :  { %v5344_v4 = vpop.eup %5343  ;;  %v2382_v49 = vmul.f32 0.1, %v5342_v37  ;;  %9522 = vst [vmem:[#allocation27_spill] sm:$0xff] %v7597_v35  ;;  %v3518_v12 = vadd.f32 %v7280_v16, %v3517_v40 }
 0x3d0   :  { %v2735_v17 = vpop.f32.mrf.mxu3  ;;  %3556 = vmatmul.bf16.gmra.mxu0 %v3357_v54  ;;  %v1640_v52 = vmul.f32 0.1, %v5344_v4 }
 0x3d1   :  { %v2736_v21 = vadd.f32 %v7311_v53, %v2735_v17  ;;  %v7601_v34 = vadd.f32 %v2382_v49, %v9523_v47  ;;  %v9527_v47 = vld [vmem:[#allocation9_spill] sm:$0xff] }
 0x3d2   :  { %v1311_v30 = vpop.f32.mrf.mxu1  ;;  %v7610_v17 = vadd.f32 %v1640_v52, %v7186_v57 }
 0x3d3   :  { %9524 = vst [vmem:[#allocation37_spill] sm:$0xff] %v7601_v34  ;;  %v5346_v29 = vpop.eup %5345  ;;  %5349 = vtanh.f32 %v2736_v21  ;;  %v2606_v15 = vpack.c.bf16 %v7601_v34, %v7597_v35  ;;  %v1312_v54 = vadd.f32 %v7311_v53, %v1311_v30 }
 0x3d4   :  { %v1641_v37 = vmul.f32 0.1, %v5346_v29  ;;  %5351 = vtanh.f32 %v2023_v25  ;;  %v5348_v50 = vpop.eup %5347  ;;  %9525 = vst [vmem:[#allocation38_spill] sm:$0xff] %v7610_v17  ;;  %v3810_v29 = vadd.f32 %v3518_v12, %v7217_v9  ;;  %v9528_v9 = vld [vmem:[#allocation8_spill] sm:$0xff] }
 0x3d5   :  { %1350 = vmatmul.bf16.gmra.mxu1 %v1052_v28  ;;  %v2024_v49 = vpop.f32.mrf.mxu2  ;;  %2777 = vmatmul.bf16.gmra.mxu3 %v2606_v15  ;;  %v3519_v4 = vpop.f32.mrf.mxu0  ;;  %v3124_v25 = vmul.f32 0.1, %v5348_v50  ;;  %v9529_v50 = vld [vmem:[#allocation10_spill] sm:$0xff] }
 0x3d6   :  { %v2025_v43 = vadd.f32 %v7311_v53, %v2024_v49  ;;  %v3520_v40 = vadd.f32 %v7280_v16, %v3519_v4  ;;  %v7615_v21 = vadd.f32 %v1641_v37, %v7190_v59 }
 0x3d7   :  { %v7624_v12 = vadd.f32 %v3124_v25, %v9528_v9 }
 0x3d8   :  { %9526 = vst [vmem:[#allocation32_spill] sm:$0xff] %v7615_v21  ;;  %5353 = vtanh.f32 %v2025_v43  ;;  %v3811_v30 = vadd.f32 %v3520_v40, %v9527_v47  ;;  %v2738_v28 = vpop.f32.mrf.mxu3  ;;  %v1855_v15 = vpack.c.bf16 %v7615_v21, %v7610_v17 }
 0x3d9   :  { %v5350_v34 = vpop.eup %5349  ;;  %5355 = vtanh.f32 %v1312_v54  ;;  %v2739_v59 = vadd.f32 %v7311_v53, %v2738_v28 }
 0x3da   :  { %v5352_v57 = vpop.eup %5351  ;;  %v3125_v52 = vmul.f32 0.1, %v5350_v34  ;;  %v4685_v49 = vpack.c.bf16 %v3811_v30, %v3810_v29  ;;  %v1313_v35 = vpop.f32.mrf.mxu1  ;;  %2066 = vmatmul.bf16.gmra.mxu2 %v1855_v15  ;;  %v9531_v30 = vld [vmem:[#allocation43_spill] sm:$0xff] }
 0x3db   :  { %v1314_v37 = vadd.f32 %v7311_v53, %v1313_v35  ;;  %v2383_v43 = vmul.f32 0.1, %v5352_v57  ;;  %v7633_v28 = vadd.f32 %v7227_v11, %v9531_v30  ;;  %v9532_v35 = vld [vmem:[#allocation45_spill] sm:$0xff] }
 0x3dc   :  { %4963 = vst [vmem:[#allocation2 + $0x38] sm:$0xff] %v4685_v49   ;;  %v7627_v4 = vadd.f32 %v3125_v52, %v9529_v50  ;;  %v7637_v25 = vadd.f32 %v7227_v11, %v9532_v35  ;;  %v9534_v49 = vld [vmem:[#allocation56_spill] sm:$0xff]  ;;  %v9536_v50 = vld [vmem:[#allocation57_spill] sm:$0xff] }
 0x3dd   :  { %5357 = vtanh.f32 %v1314_v37  ;;  %v2027_v40 = vpop.f32.mrf.mxu2  ;;  %v3522_v54 = vpop.f32.mrf.mxu0  ;;  %v7641_v37 = vadd.f32 %v2383_v43, %v9534_v49  ;;  %v9539_v49 = vld [vmem:[#allocation12_spill] sm:$0xff] }
 0x3de   :  { %9530 = vst [vmem:[#allocation87_spill] sm:$0xff] %v7627_v4  ;;  %v5354_v47 = vpop.eup %5353  ;;  %v3358_v34 = vpack.c.bf16 %v7627_v4, %v7624_v12  ;;  %5359 = vtanh.f32 %v2739_v59  ;;  %v2028_v57 = vadd.f32 %v7311_v53, %v2027_v40  ;;  %v1053_v11 = vpack.c.bf16 %v7637_v25, %v7633_v28 }
 0x3df   :  { %v5356_v29 = vpop.eup %5355  ;;  %9533 = vst [vmem:[#allocation31_spill] sm:$0xff] %v7637_v25  ;;  %v2384_v15 = vmul.f32 0.1, %v5354_v47  ;;  %v3523_v59 = vadd.f32 %v7280_v16, %v3522_v54 }
 0x3e0   :  { %v2740_v52 = vpop.f32.mrf.mxu3  ;;  %3561 = vmatmul.bf16.gmra.mxu0 %v3358_v34  ;;  %9535 = vst [vmem:[#allocation36_spill] sm:$0xff] %v7641_v37  ;;  %v1642_v30 = vmul.f32 0.1, %v5356_v29 }
 0x3e1   :  { %v2741_v9 = vadd.f32 %v7311_v53, %v2740_v52  ;;  %v7645_v21 = vadd.f32 %v2384_v15, %v9536_v50  ;;  %v9541_v50 = vld [vmem:[#allocation13_spill] sm:$0xff] }
 0x3e2   :  { %v1316_v17 = vpop.f32.mrf.mxu1  ;;  %v7654_v15 = vadd.f32 %v1642_v30, %v7231_v55 }
 0x3e3   :  { %9537 = vst [vmem:[#allocation39_spill] sm:$0xff] %v7645_v21  ;;  %v5358_v4 = vpop.eup %5357  ;;  %5361 = vtanh.f32 %v2741_v9  ;;  %v2607_v40 = vpack.c.bf16 %v7645_v21, %v7641_v37  ;;  %v1317_v34 = vadd.f32 %v7311_v53, %v1316_v17  ;;  %v9542_v21 = vld [vmem:[#allocation11_spill] sm:$0xff] }
 0x3e4   :  { %v1643_v47 = vmul.f32 0.1, %v5358_v4  ;;  %5363 = vtanh.f32 %v2028_v57  ;;  %v5360_v43 = vpop.eup %5359  ;;  %9538 = vst [vmem:[#allocation40_spill] sm:$0xff] %v7654_v15  ;;  %v3812_v4 = vadd.f32 %v3523_v59, %v9541_v50  ;;  %v9543_v59 = vld [vmem:[#allocation14_spill] sm:$0xff] }
 0x3e5   :  { %1355 = vmatmul.bf16.gmra.mxu1 %v1053_v11  ;;  %v2029_v35 = vpop.f32.mrf.mxu2  ;;  %2782 = vmatmul.bf16.gmra.mxu3 %v2607_v40  ;;  %v3524_v29 = vpop.f32.mrf.mxu0  ;;  %v3126_v57 = vmul.f32 0.1, %v5360_v43 }
 0x3e6   :  { %v2030_v52 = vadd.f32 %v7311_v53, %v2029_v35  ;;  %v3525_v54 = vadd.f32 %v7280_v16, %v3524_v29  ;;  %v7659_v9 = vadd.f32 %v1643_v47, %v9539_v49 }
 0x3e7   :  { %v7668_v43 = vadd.f32 %v3126_v57, %v9543_v59  ;;  %v9547_v57 = vld [vmem:[#allocation47_spill] sm:$0xff] }
 0x3e8   :  { %9540 = vst [vmem:[#allocation34_spill] sm:$0xff] %v7659_v9  ;;  %5365 = vtanh.f32 %v2030_v52  ;;  %v3813_v17 = vadd.f32 %v3525_v54, %v9542_v21  ;;  %v2743_v11 = vpop.f32.mrf.mxu3  ;;  %v1856_v40 = vpack.c.bf16 %v7659_v9, %v7654_v15  ;;  %v9545_v21 = vld [vmem:[#allocation7_spill] sm:$0xff]  ;;  %v9550_v9 = vld [vmem:[#allocation88_spill] sm:$0xff] }
 0x3e9   :  { %v5362_v37 = vpop.eup %5361  ;;  %5367 = vtanh.f32 %v1317_v34  ;;  %v2744_v47 = vadd.f32 %v7311_v53, %v2743_v11  ;;  %9544 = vst [vmem:[#allocation86_spill] sm:$0xff] %v7668_v43  ;;  %v9548_v11 = vld [vmem:[#allocation50_spill] sm:$0xff] }
 0x3ea   :  { %v5364_v55 = vpop.eup %5363  ;;  %v3127_v30 = vmul.f32 0.1, %v5362_v37  ;;  %v4690_v35 = vpack.c.bf16 %v3813_v17, %v3812_v4  ;;  %v1318_v25 = vpop.f32.mrf.mxu1  ;;  %2071 = vmatmul.bf16.gmra.mxu2 %v1856_v40 }
 0x3eb   :  { %v1319_v29 = vadd.f32 %v7311_v53, %v1318_v25  ;;  %v2385_v54 = vmul.f32 0.1, %v5364_v55  ;;  %v7678_v25 = vld [vmem:[%s9163_s2] ss:$0 sm:$0xff] }
 0x3ec   :  { %4964 = vst [vmem:[#allocation2 + $0x40] sm:$0xff] %v4690_v35   ;;  %v7671_v52 = vadd.f32 %v3127_v30, %v9545_v21  ;;  %v7682_v17 = vadd.f32 %v7678_v25, %v9547_v57  ;;  %v7686_v40 = vadd.f32 %v7678_v25, %v9548_v11 }
 0x3ed   :  { %5369 = vtanh.f32 %v1319_v29  ;;  %v2032_v49 = vpop.f32.mrf.mxu2  ;;  %v3527_v34 = vpop.f32.mrf.mxu0  ;;  %v9549_v29 = vld [vmem:[#allocation84_spill] sm:$0xff] }
 0x3ee   :  { %9546 = vst [vmem:[#allocation5_spill] sm:$0xff] %v7671_v52  ;;  %v5366_v50 = vpop.eup %5365  ;;  %v3359_v37 = vpack.c.bf16 %v7671_v52, %v7668_v43  ;;  %5371 = vtanh.f32 %v2744_v47  ;;  %v2033_v30 = vadd.f32 %v7311_v53, %v2032_v49  ;;  %v7690_v59 = vadd.f32 %v2385_v54, %v9549_v29 }
 0x3ef   :  { %v5368_v4 = vpop.eup %5367  ;;  %v2386_v55 = vmul.f32 0.1, %v5366_v50  ;;  %v1054_v11 = vpack.c.bf16 %v7686_v40, %v7682_v17  ;;  %v3528_v47 = vadd.f32 %v7280_v16, %v3527_v34 }
 0x3f0   :  { %v2745_v35 = vpop.f32.mrf.mxu3  ;;  %3566 = vmatmul.bf16.gmra.mxu0 %v3359_v37  ;;  %v1644_v57 = vmul.f32 0.1, %v5368_v4 }
 0x3f1   :  { %v2746_v21 = vadd.f32 %v7311_v53, %v2745_v35  ;;  %v7694_v15 = vadd.f32 %v2386_v55, %v9550_v9 }
 0x3f2   :  { %v1321_v52 = vpop.f32.mrf.mxu1  ;;  %v7703_v55 = vadd.f32 %v1644_v57, %v7271_v24 }
 0x3f3   :  { %9551 = vst [vmem:[#allocation6_spill] sm:$0xff] %v7694_v15  ;;  %v5370_v43 = vpop.eup %5369  ;;  %5373 = vtanh.f32 %v2746_v21  ;;  %v2608_v49 = vpack.c.bf16 %v7694_v15, %v7690_v59  ;;  %v1322_v37 = vadd.f32 %v7311_v53, %v1321_v52 }
 0x3f4   :  { %v1645_v50 = vmul.f32 0.1, %v5370_v43  ;;  %5375 = vtanh.f32 %v2033_v30  ;;  %v5372_v54 = vpop.eup %5371  ;;  %v3814_v43 = vadd.f32 %v3528_v47, %v7316_v46 }
 0x3f5   :  { %1360 = vmatmul.bf16.gmra.mxu1 %v1054_v11  ;;  %v2034_v9 = vpop.f32.mrf.mxu2  ;;  %2787 = vmatmul.bf16.gmra.mxu3 %v2608_v49  ;;  %v3529_v4 = vpop.f32.mrf.mxu0  ;;  %v3128_v30 = vmul.f32 0.1, %v5372_v54 }
 0x3f6   :  { %v2035_v35 = vadd.f32 %v7311_v53, %v2034_v9  ;;  %v3530_v34 = vadd.f32 %v7280_v16, %v3529_v4  ;;  %v7708_v29 = vadd.f32 %v1645_v50, %v7275_v26 }
 0x3f7   :  { %v7717_v46 = vadd.f32 %v3128_v30, %v7284_v36 }
 0x3f8   :  { %9552 = vst [vmem:[#allocation41_spill] sm:$0xff] %v7708_v29  ;;  %5377 = vtanh.f32 %v2035_v35  ;;  %v3815_v52 = vadd.f32 %v3530_v34, %v7319_v38  ;;  %v2748_v21 = vpop.f32.mrf.mxu3  ;;  %v1857_v11 = vpack.c.bf16 %v7708_v29, %v7703_v55  ;;  %v9553_v38 = vld [vmem:[#allocation16_spill] sm:$0xff] }
 0x3f9   :  { %v5374_v49 = vpop.eup %5373  ;;  %5379 = vtanh.f32 %v1322_v37  ;;  %v2749_v26 = vadd.f32 %v7311_v53, %v2748_v21 }
 0x3fa   :  { %v5376_v24 = vpop.eup %5375  ;;  %v3129_v57 = vmul.f32 0.1, %v5374_v49  ;;  %v4695_v9 = vpack.c.bf16 %v3815_v52, %v3814_v43  ;;  %v1323_v15 = vpop.f32.mrf.mxu1  ;;  %2076 = vmatmul.bf16.gmra.mxu2 %v1857_v11  ;;  %v9554_v43 = vld [vmem:[#allocation52_spill] sm:$0xff]  ;;  %v9556_v49 = vld [vmem:[#allocation18_spill] sm:$0xff] }
 0x3fb   :  { %v1324_v16 = vadd.f32 %v7311_v53, %v1323_v15  ;;  %v2387_v50 = vmul.f32 0.1, %v5376_v24  ;;  %v7726_v52 = vadd.f32 %v7678_v25, %v9554_v43  ;;  %v9555_v15 = vld [vmem:[#allocation54_spill] sm:$0xff] }
 0x3fc   :  { %4965 = vst [vmem:[#allocation2 + $0x48] sm:$0xff] %v4695_v9   ;;  %v7720_v47 = vadd.f32 %v3129_v57, %v9553_v38  ;;  %v7730_v36 = vadd.f32 %v7678_v25, %v9555_v15  ;;  %v9558_v9 = vld [vmem:[#allocation66_spill] sm:$0xff] }
 0x3fd   :  { %5381 = vtanh.f32 %v1324_v16  ;;  %v2037_v54 = vpop.f32.mrf.mxu2  ;;  %v3532_v37 = vpop.f32.mrf.mxu0  ;;  %v7734_v24 = vadd.f32 %v2387_v50, %v9556_v49 }
 0x3fe   :  { %v5378_v4 = vpop.eup %5377  ;;  %v3360_v35 = vpack.c.bf16 %v7720_v47, %v7717_v46  ;;  %5383 = vtanh.f32 %v2749_v26  ;;  %v2038_v21 = vadd.f32 %v7311_v53, %v2037_v54  ;;  %v1055_v15 = vpack.c.bf16 %v7730_v36, %v7726_v52  ;;  %v7745_v26 = vld [vmem:[%s9167_s6] ss:$0 sm:$0xff] }
 0x3ff   :  { %v5380_v34 = vpop.eup %5379  ;;  %v2388_v30 = vmul.f32 0.1, %v5378_v4  ;;  %9557 = vst [vmem:[#allocation42_spill] sm:$0xff] %v7734_v24  ;;  %v3533_v54 = vadd.f32 %v7745_v26, %v3532_v37 }
 0x400   :  { %v2750_v11 = vpop.f32.mrf.mxu3  ;;  %3571 = vmatmul.bf16.gmra.mxu0 %v3360_v35  ;;  %v1646_v38 = vmul.f32 0.1, %v5380_v34  ;;  %v7753_v35 = vld [vmem:[%s9165_s4] ss:$0 sm:$0xff] }
 0x401   :  { %v2751_v57 = vadd.f32 %v7311_v53, %v2750_v11  ;;  %v7738_v16 = vadd.f32 %v2388_v30, %v9558_v9 }
 0x402   :  { %v1326_v43 = vpop.f32.mrf.mxu1  ;;  %v7757_v37 = vadd.f32 %v1646_v38, %v7325_v41 }
 0x403   :  { %9559 = vst [vmem:[#allocation82_spill] sm:$0xff] %v7738_v16  ;;  %v5382_v29 = vpop.eup %5381  ;;  %5385 = vtanh.f32 %v2751_v57  ;;  %v2609_v53 = vpack.c.bf16 %v7738_v16, %v7734_v24  ;;  %v1327_v34 = vadd.f32 %v7753_v35, %v1326_v43  ;;  %v3816_v57 = vadd.f32 %v3533_v54, %v7360_v39 }
 0x404   :  { %v1647_v50 = vmul.f32 0.1, %v5382_v29  ;;  %5387 = vtanh.f32 %v2038_v21  ;;  %v5384_v4 = vpop.eup %5383 }
 0x405   :  { %1365 = vmatmul.bf16.gmra.mxu1 %v1055_v15  ;;  %v2039_v30 = vpop.f32.mrf.mxu2  ;;  %2792 = vmatmul.bf16.gmra.mxu3 %v2609_v53  ;;  %v3534_v11 = vpop.f32.mrf.mxu0  ;;  %v3130_v9 = vmul.f32 0.1, %v5384_v4 }
 0x406   :  { %v2040_v49 = vadd.f32 %v7753_v35, %v2039_v30  ;;  %v3535_v29 = vadd.f32 %v7745_v26, %v3534_v11  ;;  %v7762_v21 = vadd.f32 %v1647_v50, %v7329_v2 }
 0x407   :  { %v7771_v39 = vadd.f32 %v3130_v9, %v7333_v3 }
 0x408   :  { %9560 = vst [vmem:[#allocation83_spill] sm:$0xff] %v7762_v21  ;;  %5389 = vtanh.f32 %v2040_v49  ;;  %v3817_v43 = vadd.f32 %v3535_v29, %v7363_v51  ;;  %v2753_v15 = vpop.f32.mrf.mxu3  ;;  %v1858_v53 = vpack.c.bf16 %v7762_v21, %v7757_v37  ;;  %v9561_v51 = vld [vmem:[#allocation85_spill] sm:$0xff] }
 0x409   :  { %v5386_v16 = vpop.eup %5385  ;;  %5391 = vtanh.f32 %v1327_v34  ;;  %v2754_v2 = vadd.f32 %v7753_v35, %v2753_v15 }
 0x40a   :  { %v5388_v41 = vpop.eup %5387  ;;  %v3131_v38 = vmul.f32 0.1, %v5386_v16  ;;  %v4700_v30 = vpack.c.bf16 %v3817_v43, %v3816_v57  ;;  %v1328_v24 = vpop.f32.mrf.mxu1  ;;  %2081 = vmatmul.bf16.gmra.mxu2 %v1858_v53  ;;  %v9562_v57 = vld [vmem:[#allocation58_spill] sm:$0xff] }
 0x40b   :  { %v1329_v50 = vadd.f32 %v7753_v35, %v1328_v24  ;;  %v2389_v4 = vmul.f32 0.1, %v5388_v41  ;;  %v7780_v43 = vadd.f32 %v7678_v25, %v9562_v57  ;;  %v9563_v24 = vld [vmem:[#allocation61_spill] sm:$0xff] }
 0x40c   :  { %4966 = vst [vmem:[#allocation2 + $0x50] sm:$0xff] %v4700_v30   ;;  %v7774_v54 = vadd.f32 %v3131_v38, %v9561_v51  ;;  %v7784_v3 = vadd.f32 %v7678_v25, %v9563_v24  ;;  %v9564_v30 = vld [vmem:[#allocation17_spill] sm:$0xff] }
 0x40d   :  { %5393 = vtanh.f32 %v1329_v50  ;;  %v2042_v11 = vpop.f32.mrf.mxu2  ;;  %v3537_v34 = vpop.f32.mrf.mxu0  ;;  %v7788_v41 = vadd.f32 %v2389_v4, %v7346_v20 }
 0x40e   :  { %v5390_v49 = vpop.eup %5389  ;;  %v3361_v16 = vpack.c.bf16 %v7774_v54, %v7771_v39  ;;  %5395 = vtanh.f32 %v2754_v2  ;;  %v2043_v15 = vadd.f32 %v7753_v35, %v2042_v11  ;;  %v1056_v24 = vpack.c.bf16 %v7784_v3, %v7780_v43 }
 0x40f   :  { %v5392_v29 = vpop.eup %5391  ;;  %v2390_v9 = vmul.f32 0.1, %v5390_v49  ;;  %v3538_v2 = vadd.f32 %v7745_v26, %v3537_v34 }
 0x410   :  { %v2755_v53 = vpop.f32.mrf.mxu3  ;;  %3576 = vmatmul.bf16.gmra.mxu0 %v3361_v16  ;;  %v1648_v51 = vmul.f32 0.1, %v5392_v29 }
 0x411   :  { %v2756_v38 = vadd.f32 %v7753_v35, %v2755_v53  ;;  %v7792_v50 = vadd.f32 %v2390_v9, %v9564_v30 }
 0x412   :  { %v1331_v57 = vpop.f32.mrf.mxu1  ;;  %v7801_v9 = vadd.f32 %v1648_v51, %v7369_v8 }
 0x413   :  { %9565 = vst [vmem:[#allocation9_spill] sm:$0xff] %v7792_v50  ;;  %v5394_v21 = vpop.eup %5393  ;;  %5397 = vtanh.f32 %v2756_v38  ;;  %v2610_v11 = vpack.c.bf16 %v7792_v50, %v7788_v41  ;;  %v1332_v4 = vadd.f32 %v7753_v35, %v1331_v57 }
 0x414   :  { %v1649_v49 = vmul.f32 0.1, %v5394_v21  ;;  %5399 = vtanh.f32 %v2043_v15  ;;  %v5396_v20 = vpop.eup %5395  ;;  %v3818_v21 = vadd.f32 %v3538_v2, %v7404_v58 }
 0x415   :  { %1370 = vmatmul.bf16.gmra.mxu1 %v1056_v24  ;;  %v2044_v16 = vpop.f32.mrf.mxu2  ;;  %2797 = vmatmul.bf16.gmra.mxu3 %v2610_v11  ;;  %v3539_v29 = vpop.f32.mrf.mxu0  ;;  %v3132_v15 = vmul.f32 0.1, %v5396_v20 }
 0x416   :  { %v2045_v53 = vadd.f32 %v7753_v35, %v2044_v16  ;;  %v3540_v34 = vadd.f32 %v7745_v26, %v3539_v29  ;;  %v7806_v38 = vadd.f32 %v1649_v49, %v7373_v44 }
 0x417   :  { %v7815_v58 = vadd.f32 %v3132_v15, %v7377_v18 }
 0x418   :  { %9566 = vst [vmem:[#allocation8_spill] sm:$0xff] %v7806_v38  ;;  %5401 = vtanh.f32 %v2045_v53  ;;  %v3819_v30 = vadd.f32 %v3540_v34, %v7407_v61  ;;  %v2758_v57 = vpop.f32.mrf.mxu3  ;;  %v1859_v24 = vpack.c.bf16 %v7806_v38, %v7801_v9  ;;  %v9567_v61 = vld [vmem:[#allocation20_spill] sm:$0xff] }
 0x419   :  { %v5398_v11 = vpop.eup %5397  ;;  %5403 = vtanh.f32 %v1332_v4  ;;  %v2759_v44 = vadd.f32 %v7753_v35, %v2758_v57 }
 0x41a   :  { %v5400_v8 = vpop.eup %5399  ;;  %v3133_v51 = vmul.f32 0.1, %v5398_v11  ;;  %v4705_v16 = vpack.c.bf16 %v3819_v30, %v3818_v21  ;;  %v1333_v50 = vpop.f32.mrf.mxu1  ;;  %2086 = vmatmul.bf16.gmra.mxu2 %v1859_v24  ;;  %v9568_v30 = vld [vmem:[#allocation63_spill] sm:$0xff] }
 0x41b   :  { %v1334_v49 = vadd.f32 %v7753_v35, %v1333_v50  ;;  %v2391_v20 = vmul.f32 0.1, %v5400_v8  ;;  %v7824_v57 = vadd.f32 %v7678_v25, %v9568_v30  ;;  %v9569_v50 = vld [vmem:[#allocation65_spill] sm:$0xff] }
 0x41c   :  { %4967 = vst [vmem:[#allocation2 + $0x58] sm:$0xff] %v4705_v16   ;;  %v7818_v2 = vadd.f32 %v3133_v51, %v9567_v61  ;;  %v7828_v18 = vadd.f32 %v7678_v25, %v9569_v50  ;;  %v9570_v16 = vld [vmem:[#allocation22_spill] sm:$0xff] }
 0x41d   :  { %5405 = vtanh.f32 %v1334_v49  ;;  %v2047_v29 = vpop.f32.mrf.mxu2  ;;  %v3542_v4 = vpop.f32.mrf.mxu0  ;;  %v7832_v8 = vadd.f32 %v2391_v20, %v7390_v1 }
 0x41e   :  { %v5402_v53 = vpop.eup %5401  ;;  %v3362_v34 = vpack.c.bf16 %v7818_v2, %v7815_v58  ;;  %5407 = vtanh.f32 %v2759_v44  ;;  %v2048_v24 = vadd.f32 %v7753_v35, %v2047_v29  ;;  %v1057_v50 = vpack.c.bf16 %v7828_v18, %v7824_v57 }
 0x41f   :  { %v5404_v21 = vpop.eup %5403  ;;  %v2392_v15 = vmul.f32 0.1, %v5402_v53  ;;  %v3543_v44 = vadd.f32 %v7745_v26, %v3542_v4 }
 0x420   :  { %v2760_v11 = vpop.f32.mrf.mxu3  ;;  %3581 = vmatmul.bf16.gmra.mxu0 %v3362_v34  ;;  %v1650_v61 = vmul.f32 0.1, %v5404_v21 }
 0x421   :  { %v2761_v51 = vadd.f32 %v7753_v35, %v2760_v11  ;;  %v7836_v49 = vadd.f32 %v2392_v15, %v9570_v16 }
 0x422   :  { %v1336_v30 = vpop.f32.mrf.mxu1  ;;  %v7845_v15 = vadd.f32 %v1650_v61, %v7413_v60 }
 0x423   :  { %9571 = vst [vmem:[#allocation10_spill] sm:$0xff] %v7836_v49  ;;  %v5406_v38 = vpop.eup %5405  ;;  %5409 = vtanh.f32 %v2761_v51  ;;  %v2611_v29 = vpack.c.bf16 %v7836_v49, %v7832_v8  ;;  %v1337_v20 = vadd.f32 %v7753_v35, %v1336_v30 }
 0x424   :  { %v1651_v53 = vmul.f32 0.1, %v5406_v38  ;;  %5411 = vtanh.f32 %v2048_v24  ;;  %v5408_v1 = vpop.eup %5407  ;;  %v3820_v38 = vadd.f32 %v3543_v44, %v7448_v14 }
 0x425   :  { %1375 = vmatmul.bf16.gmra.mxu1 %v1057_v50  ;;  %v2049_v34 = vpop.f32.mrf.mxu2  ;;  %2802 = vmatmul.bf16.gmra.mxu3 %v2611_v29  ;;  %v3544_v21 = vpop.f32.mrf.mxu0  ;;  %v3134_v24 = vmul.f32 0.1, %v5408_v1 }
 0x426   :  { %v2050_v11 = vadd.f32 %v7753_v35, %v2049_v34  ;;  %v3545_v4 = vadd.f32 %v7745_v26, %v3544_v21  ;;  %v7850_v51 = vadd.f32 %v1651_v53, %v7417_v0 }
 0x427   :  { %v7859_v14 = vadd.f32 %v3134_v24, %v7421_v6 }
 0x428   :  { %9572 = vst [vmem:[#allocation43_spill] sm:$0xff] %v7850_v51  ;;  %5413 = vtanh.f32 %v2050_v11  ;;  %v3821_v16 = vadd.f32 %v3545_v4, %v7451_v13  ;;  %v2763_v30 = vpop.f32.mrf.mxu3  ;;  %v1860_v50 = vpack.c.bf16 %v7850_v51, %v7845_v15  ;;  %v9573_v13 = vld [vmem:[#allocation15_spill] sm:$0xff] }
 0x429   :  { %v5410_v29 = vpop.eup %5409  ;;  %5415 = vtanh.f32 %v1337_v20  ;;  %v2764_v0 = vadd.f32 %v7753_v35, %v2763_v30 }
 0x42a   :  { %v5412_v60 = vpop.eup %5411  ;;  %v3135_v61 = vmul.f32 0.1, %v5410_v29  ;;  %v4710_v34 = vpack.c.bf16 %v3821_v16, %v3820_v38  ;;  %v1338_v49 = vpop.f32.mrf.mxu1  ;;  %2091 = vmatmul.bf16.gmra.mxu2 %v1860_v50  ;;  %v9574_v16 = vld [vmem:[#allocation44_spill] sm:$0xff] }
 0x42b   :  { %v1339_v53 = vadd.f32 %v7753_v35, %v1338_v49  ;;  %v2393_v1 = vmul.f32 0.1, %v5412_v60  ;;  %v7868_v30 = vadd.f32 %v7678_v25, %v9574_v16  ;;  %v9575_v49 = vld [vmem:[#allocation46_spill] sm:$0xff] }
 0x42c   :  { %4968 = vst [vmem:[#allocation2 + $0x60] sm:$0xff] %v4710_v34   ;;  %v7862_v44 = vadd.f32 %v3135_v61, %v9573_v13  ;;  %v7872_v6 = vadd.f32 %v7678_v25, %v9575_v49  ;;  %v9576_v34 = vld [vmem:[#allocation69_spill] sm:$0xff] }
 0x42d   :  { %5417 = vtanh.f32 %v1339_v53  ;;  %v2052_v21 = vpop.f32.mrf.mxu2  ;;  %v3547_v20 = vpop.f32.mrf.mxu0  ;;  %v7876_v60 = vadd.f32 %v2393_v1, %v7434_v63 }
 0x42e   :  { %v5414_v11 = vpop.eup %5413  ;;  %v3363_v4 = vpack.c.bf16 %v7862_v44, %v7859_v14  ;;  %5419 = vtanh.f32 %v2764_v0  ;;  %v2053_v50 = vadd.f32 %v7753_v35, %v2052_v21  ;;  %v1058_v49 = vpack.c.bf16 %v7872_v6, %v7868_v30 }
 0x42f   :  { %v5416_v38 = vpop.eup %5415  ;;  %v2394_v24 = vmul.f32 0.1, %v5414_v11  ;;  %v3548_v0 = vadd.f32 %v7745_v26, %v3547_v20 }
 0x430   :  { %v2765_v29 = vpop.f32.mrf.mxu3  ;;  %3586 = vmatmul.bf16.gmra.mxu0 %v3363_v4  ;;  %v1652_v13 = vmul.f32 0.1, %v5416_v38 }
 0x431   :  { %v2766_v61 = vadd.f32 %v7753_v35, %v2765_v29  ;;  %v7880_v53 = vadd.f32 %v2394_v24, %v9576_v34 }
 0x432   :  { %v1341_v16 = vpop.f32.mrf.mxu1  ;;  %v7889_v24 = vadd.f32 %v1652_v13, %v7457_v48 }
 0x433   :  { %9577 = vst [vmem:[#allocation45_spill] sm:$0xff] %v7880_v53  ;;  %v5418_v51 = vpop.eup %5417  ;;  %5421 = vtanh.f32 %v2766_v61  ;;  %v2612_v21 = vpack.c.bf16 %v7880_v53, %v7876_v60  ;;  %v1342_v1 = vadd.f32 %v7753_v35, %v1341_v16 }
 0x434   :  { %v1653_v11 = vmul.f32 0.1, %v5418_v51  ;;  %5423 = vtanh.f32 %v2053_v50  ;;  %v5420_v63 = vpop.eup %5419  ;;  %v3822_v51 = vadd.f32 %v3548_v0, %v7492_v23 }
 0x435   :  { %1380 = vmatmul.bf16.gmra.mxu1 %v1058_v49  ;;  %v2054_v4 = vpop.f32.mrf.mxu2  ;;  %2807 = vmatmul.bf16.gmra.mxu3 %v2612_v21  ;;  %v3549_v38 = vpop.f32.mrf.mxu0  ;;  %v3136_v50 = vmul.f32 0.1, %v5420_v63 }
 0x436   :  { %v2055_v29 = vadd.f32 %v7753_v35, %v2054_v4  ;;  %v3550_v20 = vadd.f32 %v7745_v26, %v3549_v38  ;;  %v7894_v61 = vadd.f32 %v1653_v11, %v7461_v22 }
 0x437   :  { %v7903_v23 = vadd.f32 %v3136_v50, %v7465_v5 }
 0x438   :  { %9578 = vst [vmem:[#allocation56_spill] sm:$0xff] %v7894_v61  ;;  %5425 = vtanh.f32 %v2055_v29  ;;  %v3823_v34 = vadd.f32 %v3550_v20, %v7495_v19  ;;  %v2768_v16 = vpop.f32.mrf.mxu3  ;;  %v1861_v49 = vpack.c.bf16 %v7894_v61, %v7889_v24  ;;  %v9579_v19 = vld [vmem:[#allocation24_spill] sm:$0xff] }
 0x439   :  { %v5422_v21 = vpop.eup %5421  ;;  %5427 = vtanh.f32 %v1342_v1  ;;  %v2769_v22 = vadd.f32 %v7753_v35, %v2768_v16 }
 0x43a   :  { %v5424_v48 = vpop.eup %5423  ;;  %v3137_v13 = vmul.f32 0.1, %v5422_v21  ;;  %v4715_v4 = vpack.c.bf16 %v3823_v34, %v3822_v51  ;;  %v1343_v53 = vpop.f32.mrf.mxu1  ;;  %2096 = vmatmul.bf16.gmra.mxu2 %v1861_v49  ;;  %v9580_v34 = vld [vmem:[#allocation48_spill] sm:$0xff] }
 0x43b   :  { %v1344_v11 = vadd.f32 %v7753_v35, %v1343_v53  ;;  %v2395_v63 = vmul.f32 0.1, %v5424_v48  ;;  %v7912_v16 = vadd.f32 %v7678_v25, %v9580_v34  ;;  %v9581_v53 = vld [vmem:[#allocation49_spill] sm:$0xff] }
 0x43c   :  { %4969 = vst [vmem:[#allocation2 + $0x68] sm:$0xff] %v4715_v4   ;;  %v7906_v0 = vadd.f32 %v3137_v13, %v9579_v19  ;;  %v7916_v5 = vadd.f32 %v7678_v25, %v9581_v53  ;;  %v9583_v4 = vld [vmem:[#allocation26_spill] sm:$0xff] }
 0x43d   :  { %5429 = vtanh.f32 %v1344_v11  ;;  %v2057_v38 = vpop.f32.mrf.mxu2  ;;  %v3552_v1 = vpop.f32.mrf.mxu0  ;;  %v7920_v48 = vadd.f32 %v2395_v63, %v7478_v33 }
 0x43e   :  { %v5426_v29 = vpop.eup %5425  ;;  %v3364_v20 = vpack.c.bf16 %v7906_v0, %v7903_v23  ;;  %5431 = vtanh.f32 %v2769_v22  ;;  %v2058_v49 = vadd.f32 %v7753_v35, %v2057_v38  ;;  %v1059_v53 = vpack.c.bf16 %v7916_v5, %v7912_v16 }
 0x43f   :  { %v5428_v51 = vpop.eup %5427  ;;  %v2396_v50 = vmul.f32 0.1, %v5426_v29  ;;  %9582 = vst [vmem:[#allocation57_spill] sm:$0xff] %v7920_v48  ;;  %v3553_v22 = vadd.f32 %v7745_v26, %v3552_v1 }
 0x440   :  { %v2770_v21 = vpop.f32.mrf.mxu3  ;;  %3591 = vmatmul.bf16.gmra.mxu0 %v3364_v20  ;;  %v1654_v19 = vmul.f32 0.1, %v5428_v51 }
 0x441   :  { %v2771_v13 = vadd.f32 %v7753_v35, %v2770_v21  ;;  %v7924_v11 = vadd.f32 %v2396_v50, %v9583_v4  ;;  %v9587_v4 = vld [vmem:[#allocation25_spill] sm:$0xff] }
 0x442   :  { %v1346_v34 = vpop.f32.mrf.mxu1  ;;  %v7933_v50 = vadd.f32 %v1654_v19, %v7501_v27 }
 0x443   :  { %9584 = vst [vmem:[#allocation12_spill] sm:$0xff] %v7924_v11  ;;  %v5430_v61 = vpop.eup %5429  ;;  %5433 = vtanh.f32 %v2771_v13  ;;  %v2613_v38 = vpack.c.bf16 %v7924_v11, %v7920_v48  ;;  %v1347_v63 = vadd.f32 %v7753_v35, %v1346_v34 }
 0x444   :  { %v1655_v29 = vmul.f32 0.1, %v5430_v61  ;;  %5435 = vtanh.f32 %v2058_v49  ;;  %v5432_v33 = vpop.eup %5431  ;;  %9585 = vst [vmem:[#allocation13_spill] sm:$0xff] %v7933_v50  ;;  %v3824_v61 = vadd.f32 %v3553_v22, %v7536_v31  ;;  %v9588_v31 = vld [vmem:[#allocation21_spill] sm:$0xff] }
 0x445   :  { %1385 = vmatmul.bf16.gmra.mxu1 %v1059_v53  ;;  %v2059_v20 = vpop.f32.mrf.mxu2  ;;  %2812 = vmatmul.bf16.gmra.mxu3 %v2613_v38  ;;  %v3554_v51 = vpop.f32.mrf.mxu0  ;;  %v3138_v49 = vmul.f32 0.1, %v5432_v33  ;;  %v9589_v33 = vld [vmem:[#allocation19_spill] sm:$0xff] }
 0x446   :  { %v2060_v21 = vadd.f32 %v7753_v35, %v2059_v20  ;;  %v3555_v1 = vadd.f32 %v7745_v26, %v3554_v51  ;;  %v7938_v13 = vadd.f32 %v1655_v29, %v7505_v62 }
 0x447   :  { %v7947_v22 = vadd.f32 %v3138_v49, %v9588_v31 }
 0x448   :  { %9586 = vst [vmem:[#allocation11_spill] sm:$0xff] %v7938_v13  ;;  %5437 = vtanh.f32 %v2060_v21  ;;  %v3825_v34 = vadd.f32 %v3555_v1, %v9587_v4  ;;  %v2773_v53 = vpop.f32.mrf.mxu3  ;;  %v1862_v38 = vpack.c.bf16 %v7938_v13, %v7933_v50 }
 0x449   :  { %v5434_v11 = vpop.eup %5433  ;;  %5439 = vtanh.f32 %v1347_v63  ;;  %v2774_v62 = vadd.f32 %v7753_v35, %v2773_v53 }
 0x44a   :  { %v5436_v27 = vpop.eup %5435  ;;  %v3139_v19 = vmul.f32 0.1, %v5434_v11  ;;  %v4720_v20 = vpack.c.bf16 %v3825_v34, %v3824_v61  ;;  %v1348_v48 = vpop.f32.mrf.mxu1  ;;  %2101 = vmatmul.bf16.gmra.mxu2 %v1862_v38  ;;  %v9591_v34 = vld [vmem:[#allocation51_spill] sm:$0xff] }
 0x44b   :  { %v1349_v29 = vadd.f32 %v7753_v35, %v1348_v48  ;;  %v2397_v21 = vmul.f32 0.1, %v5436_v27  ;;  %v7956_v53 = vadd.f32 %v7678_v25, %v9591_v34  ;;  %v9592_v48 = vld [vmem:[#allocation53_spill] sm:$0xff] }
 0x44c   :  { %4970 = vst [vmem:[#allocation2 + $0x70] sm:$0xff] %v4720_v20   ;;  %v7950_v51 = vadd.f32 %v3139_v19, %v9589_v33  ;;  %v7960_v49 = vadd.f32 %v7678_v25, %v9592_v48  ;;  %v9593_v20 = vld [vmem:[#allocation28_spill] sm:$0xff]  ;;  %v9595_v33 = vld [vmem:[#allocation30_spill] sm:$0xff] }
 0x44d   :  { %5441 = vtanh.f32 %v1349_v29  ;;  %v2062_v1 = vpop.f32.mrf.mxu2  ;;  %v3557_v63 = vpop.f32.mrf.mxu0  ;;  %v7964_v29 = vadd.f32 %v2397_v21, %v9593_v20 }
 0x44e   :  { %9590 = vst [vmem:[#allocation14_spill] sm:$0xff] %v7950_v51  ;;  %v5438_v4 = vpop.eup %5437  ;;  %v3365_v11 = vpack.c.bf16 %v7950_v51, %v7947_v22  ;;  %5443 = vtanh.f32 %v2774_v62  ;;  %v2063_v27 = vadd.f32 %v7753_v35, %v2062_v1  ;;  %v1060_v48 = vpack.c.bf16 %v7960_v49, %v7956_v53 }
 0x44f   :  { %v5440_v61 = vpop.eup %5439  ;;  %v2398_v38 = vmul.f32 0.1, %v5438_v4  ;;  %9594 = vst [vmem:[#allocation7_spill] sm:$0xff] %v7964_v29  ;;  %v3558_v62 = vadd.f32 %v7745_v26, %v3557_v63 }
 0x450   :  { %v2775_v19 = vpop.f32.mrf.mxu3  ;;  %3596 = vmatmul.bf16.gmra.mxu0 %v3365_v11  ;;  %v1656_v34 = vmul.f32 0.1, %v5440_v61 }
 0x451   :  { %v2776_v31 = vadd.f32 %v7753_v35, %v2775_v19  ;;  %v7968_v13 = vadd.f32 %v2398_v38, %v9595_v33 }
 0x452   :  { %v1351_v50 = vpop.f32.mrf.mxu1  ;;  %v7977_v19 = vadd.f32 %v1656_v34, %v7545_v42 }
 0x453   :  { %9596 = vst [vmem:[#allocation47_spill] sm:$0xff] %v7968_v13  ;;  %v5442_v51 = vpop.eup %5441  ;;  %5445 = vtanh.f32 %v2776_v31  ;;  %v2614_v1 = vpack.c.bf16 %v7968_v13, %v7964_v29  ;;  %v1352_v11 = vadd.f32 %v7753_v35, %v1351_v50 }
 0x454   :  { %v1657_v4 = vmul.f32 0.1, %v5442_v51  ;;  %5447 = vtanh.f32 %v2063_v27  ;;  %v5444_v21 = vpop.eup %5443  ;;  %9597 = vst [vmem:[#allocation50_spill] sm:$0xff] %v7977_v19  ;;  %v3826_v51 = vadd.f32 %v3558_v62, %v7580_v56  ;;  %v9599_v56 = vld [vmem:[#allocation23_spill] sm:$0xff] }
 0x455   :  { %1390 = vmatmul.bf16.gmra.mxu1 %v1060_v48  ;;  %v2064_v38 = vpop.f32.mrf.mxu2  ;;  %2817 = vmatmul.bf16.gmra.mxu3 %v2614_v1  ;;  %v3559_v61 = vpop.f32.mrf.mxu0  ;;  %v3140_v27 = vmul.f32 0.1, %v5444_v21 }
 0x456   :  { %v2065_v20 = vadd.f32 %v7753_v35, %v2064_v38  ;;  %v3560_v63 = vadd.f32 %v7745_v26, %v3559_v61  ;;  %v7982_v31 = vadd.f32 %v1657_v4, %v7549_v32 }
 0x457   :  { %v7991_v62 = vadd.f32 %v3140_v27, %v9599_v56 }
 0x458   :  { %9598 = vst [vmem:[#allocation84_spill] sm:$0xff] %v7982_v31  ;;  %5449 = vtanh.f32 %v2065_v20  ;;  %v3827_v50 = vadd.f32 %v3560_v63, %v7583_v7  ;;  %v2778_v33 = vpop.f32.mrf.mxu3  ;;  %v1863_v48 = vpack.c.bf16 %v7982_v31, %v7977_v19  ;;  %v9600_v7 = vld [vmem:[#allocation33_spill] sm:$0xff] }
 0x459   :  { %v5446_v1 = vpop.eup %5445  ;;  %5451 = vtanh.f32 %v1352_v11  ;;  %v2779_v32 = vadd.f32 %v7753_v35, %v2778_v33 }
 0x45a   :  { %v5448_v42 = vpop.eup %5447  ;;  %v3141_v34 = vmul.f32 0.1, %v5446_v1  ;;  %v4725_v38 = vpack.c.bf16 %v3827_v50, %v3826_v51  ;;  %v1353_v13 = vpop.f32.mrf.mxu1  ;;  %2106 = vmatmul.bf16.gmra.mxu2 %v1863_v48  ;;  %v9601_v48 = vld [vmem:[#allocation55_spill] sm:$0xff] }
 0x45b   :  { %v1354_v4 = vadd.f32 %v7753_v35, %v1353_v13  ;;  %v2399_v61 = vmul.f32 0.1, %v5448_v42  ;;  %v8000_v33 = vadd.f32 %v7678_v25, %v9601_v48  ;;  %v9602_v13 = vld [vmem:[#allocation59_spill] sm:$0xff] }
 0x45c   :  { %4971 = vst [vmem:[#allocation2 + $0x78] sm:$0xff] %v4725_v38   ;;  %v7994_v21 = vadd.f32 %v3141_v34, %v9600_v7  ;;  %v8004_v27 = vadd.f32 %v7678_v25, %v9602_v13  ;;  %v9603_v38 = vld [vmem:[#allocation35_spill] sm:$0xff]  ;;  %v9605_v7 = vld [vmem:[#allocation29_spill] sm:$0xff] }
 0x45d   :  { %5453 = vtanh.f32 %v1354_v4  ;;  %v2067_v20 = vpop.f32.mrf.mxu2  ;;  %v3562_v11 = vpop.f32.mrf.mxu0  ;;  %v8008_v4 = vadd.f32 %v2399_v61, %v9603_v38 }
 0x45e   :  { %v5450_v63 = vpop.eup %5449  ;;  %v3366_v51 = vpack.c.bf16 %v7994_v21, %v7991_v62  ;;  %5455 = vtanh.f32 %v2779_v32  ;;  %v2068_v42 = vadd.f32 %v7753_v35, %v2067_v20  ;;  %v1061_v13 = vpack.c.bf16 %v8004_v27, %v8000_v33 }
 0x45f   :  { %v5452_v50 = vpop.eup %5451  ;;  %v2400_v1 = vmul.f32 0.1, %v5450_v63  ;;  %9604 = vst [vmem:[#allocation88_spill] sm:$0xff] %v8008_v4  ;;  %v3563_v32 = vadd.f32 %v7745_v26, %v3562_v11 }
 0x460   :  { %v2780_v34 = vpop.f32.mrf.mxu3  ;;  %3601 = vmatmul.bf16.gmra.mxu0 %v3366_v51  ;;  %v1658_v48 = vmul.f32 0.1, %v5452_v50 }
 0x461   :  { %v2781_v56 = vadd.f32 %v7753_v35, %v2780_v34  ;;  %v8012_v31 = vadd.f32 %v2400_v1, %v9605_v7  ;;  %v9609_v7 = vld [vmem:[#allocation87_spill] sm:$0xff] }
 0x462   :  { %v1356_v19 = vpop.f32.mrf.mxu1  ;;  %v8021_v34 = vadd.f32 %v1658_v48, %v7589_v45 }
 0x463   :  { %9606 = vst [vmem:[#allocation16_spill] sm:$0xff] %v8012_v31  ;;  %v5454_v29 = vpop.eup %5453  ;;  %5457 = vtanh.f32 %v2781_v56  ;;  %v2615_v20 = vpack.c.bf16 %v8012_v31, %v8008_v4  ;;  %v1357_v51 = vadd.f32 %v7753_v35, %v1356_v19 }
 0x464   :  { %v1659_v63 = vmul.f32 0.1, %v5454_v29  ;;  %5459 = vtanh.f32 %v2068_v42  ;;  %v5456_v61 = vpop.eup %5455  ;;  %9607 = vst [vmem:[#allocation52_spill] sm:$0xff] %v8021_v34  ;;  %v3828_v29 = vadd.f32 %v3563_v32, %v7624_v12  ;;  %v9610_v12 = vld [vmem:[#allocation27_spill] sm:$0xff] }
 0x465   :  { %1395 = vmatmul.bf16.gmra.mxu1 %v1061_v13  ;;  %v2069_v1 = vpop.f32.mrf.mxu2  ;;  %2822 = vmatmul.bf16.gmra.mxu3 %v2615_v20  ;;  %v3564_v50 = vpop.f32.mrf.mxu0  ;;  %v3142_v42 = vmul.f32 0.1, %v5456_v61  ;;  %v9611_v61 = vld [vmem:[#allocation37_spill] sm:$0xff] }
 0x466   :  { %v2070_v38 = vadd.f32 %v7753_v35, %v2069_v1  ;;  %v3565_v11 = vadd.f32 %v7745_v26, %v3564_v50  ;;  %v8026_v56 = vadd.f32 %v1659_v63, %v7593_v10 }
 0x467   :  { %v8035_v32 = vadd.f32 %v3142_v42, %v9610_v12 }
 0x468   :  { %9608 = vst [vmem:[#allocation54_spill] sm:$0xff] %v8026_v56  ;;  %5461 = vtanh.f32 %v2070_v38  ;;  %v3829_v19 = vadd.f32 %v3565_v11, %v9609_v7  ;;  %v2783_v13 = vpop.f32.mrf.mxu3  ;;  %v1864_v20 = vpack.c.bf16 %v8026_v56, %v8021_v34 }
 0x469   :  { %v5458_v31 = vpop.eup %5457  ;;  %5463 = vtanh.f32 %v1357_v51  ;;  %v2784_v10 = vadd.f32 %v7753_v35, %v2783_v13 }
 0x46a   :  { %v5460_v45 = vpop.eup %5459  ;;  %v3143_v48 = vmul.f32 0.1, %v5458_v31  ;;  %v4730_v1 = vpack.c.bf16 %v3829_v19, %v3828_v29  ;;  %v1358_v4 = vpop.f32.mrf.mxu1  ;;  %2111 = vmatmul.bf16.gmra.mxu2 %v1864_v20  ;;  %v9613_v19 = vld [vmem:[#allocation60_spill] sm:$0xff] }
 0x46b   :  { %v1359_v63 = vadd.f32 %v7753_v35, %v1358_v4  ;;  %v2401_v38 = vmul.f32 0.1, %v5460_v45  ;;  %v8044_v13 = vadd.f32 %v7678_v25, %v9613_v19  ;;  %v9615_v4 = vld [vmem:[#allocation62_spill] sm:$0xff] }
 0x46c   :  { %4972 = vst [vmem:[#allocation2 + $0x80] sm:$0xff] %v4730_v1   ;;  %v8038_v50 = vadd.f32 %v3143_v48, %v9611_v61  ;;  %v8048_v42 = vadd.f32 %v7678_v25, %v9615_v4  ;;  %v9617_v1 = vld [vmem:[#allocation38_spill] sm:$0xff]  ;;  %v9619_v61 = vld [vmem:[#allocation32_spill] sm:$0xff] }
 0x46d   :  { %5465 = vtanh.f32 %v1359_v63  ;;  %v2072_v11 = vpop.f32.mrf.mxu2  ;;  %v3567_v51 = vpop.f32.mrf.mxu0  ;;  %9614 = vst [vmem:[#allocation66_spill] sm:$0xff] %v8044_v13  ;;  %v8052_v63 = vadd.f32 %v2401_v38, %v9617_v1 }
 0x46e   :  { %9612 = vst [vmem:[#allocation18_spill] sm:$0xff] %v8038_v50  ;;  %v5462_v7 = vpop.eup %5461  ;;  %v3367_v31 = vpack.c.bf16 %v8038_v50, %v8035_v32  ;;  %5467 = vtanh.f32 %v2784_v10  ;;  %v2073_v45 = vadd.f32 %v7753_v35, %v2072_v11  ;;  %v1062_v4 = vpack.c.bf16 %v8048_v42, %v8044_v13 }
 0x46f   :  { %v5464_v29 = vpop.eup %5463  ;;  %9616 = vst [vmem:[#allocation85_spill] sm:$0xff] %v8048_v42  ;;  %v2402_v20 = vmul.f32 0.1, %v5462_v7  ;;  %v3568_v10 = vadd.f32 %v7745_v26, %v3567_v51 }
 0x470   :  { %v2785_v48 = vpop.f32.mrf.mxu3  ;;  %3606 = vmatmul.bf16.gmra.mxu0 %v3367_v31  ;;  %9618 = vst [vmem:[#allocation58_spill] sm:$0xff] %v8052_v63  ;;  %v1660_v19 = vmul.f32 0.1, %v5464_v29 }
 0x471   :  { %v2786_v12 = vadd.f32 %v7753_v35, %v2785_v48  ;;  %v8056_v56 = vadd.f32 %v2402_v20, %v9619_v61 }
 0x472   :  { %v1361_v34 = vpop.f32.mrf.mxu1  ;;  %v8065_v48 = vadd.f32 %v1660_v19, %v7633_v28 }
 0x473   :  { %9620 = vst [vmem:[#allocation61_spill] sm:$0xff] %v8056_v56  ;;  %v5466_v50 = vpop.eup %5465  ;;  %5469 = vtanh.f32 %v2786_v12  ;;  %v2616_v11 = vpack.c.bf16 %v8056_v56, %v8052_v63  ;;  %v1362_v31 = vadd.f32 %v7753_v35, %v1361_v34  ;;  %v9622_v12 = vld [vmem:[#allocation31_spill] sm:$0xff]  ;;  %v9624_v56 = vld [vmem:[#allocation86_spill] sm:$0xff]  ;;  %v9625_v63 = vld [vmem:[#allocation5_spill] sm:$0xff] }
 0x474   :  { %v1661_v7 = vmul.f32 0.1, %v5466_v50  ;;  %5471 = vtanh.f32 %v2073_v45  ;;  %v5468_v38 = vpop.eup %5467  ;;  %9621 = vst [vmem:[#allocation17_spill] sm:$0xff] %v8065_v48  ;;  %v3830_v50 = vadd.f32 %v3568_v10, %v9624_v56  ;;  %v9626_v56 = vld [vmem:[#allocation36_spill] sm:$0xff] }
 0x475   :  { %1400 = vmatmul.bf16.gmra.mxu1 %v1062_v4  ;;  %v2074_v20 = vpop.f32.mrf.mxu2  ;;  %2827 = vmatmul.bf16.gmra.mxu3 %v2616_v11  ;;  %v3569_v29 = vpop.f32.mrf.mxu0  ;;  %v3144_v45 = vmul.f32 0.1, %v5468_v38 }
 0x476   :  { %v2075_v1 = vadd.f32 %v7753_v35, %v2074_v20  ;;  %v3570_v51 = vadd.f32 %v7745_v26, %v3569_v29  ;;  %v8070_v61 = vadd.f32 %v1661_v7, %v9622_v12 }
 0x477   :  { %v8079_v10 = vadd.f32 %v3144_v45, %v9626_v56 }
 0x478   :  { %9623 = vst [vmem:[#allocation20_spill] sm:$0xff] %v8070_v61  ;;  %5473 = vtanh.f32 %v2075_v1  ;;  %v3831_v34 = vadd.f32 %v3570_v51, %v9625_v63  ;;  %v2788_v4 = vpop.f32.mrf.mxu3  ;;  %v1865_v11 = vpack.c.bf16 %v8070_v61, %v8065_v48  ;;  %v9627_v63 = vld [vmem:[#allocation39_spill] sm:$0xff] }
 0x479   :  { %v5470_v42 = vpop.eup %5469  ;;  %5475 = vtanh.f32 %v1362_v31  ;;  %v2789_v7 = vadd.f32 %v7753_v35, %v2788_v4 }
 0x47a   :  { %v5472_v28 = vpop.eup %5471  ;;  %v3145_v19 = vmul.f32 0.1, %v5470_v42  ;;  %v4735_v20 = vpack.c.bf16 %v3831_v34, %v3830_v50  ;;  %v1363_v13 = vpop.f32.mrf.mxu1  ;;  %2116 = vmatmul.bf16.gmra.mxu2 %v1865_v11  ;;  %v9629_v34 = vld [vmem:[#allocation64_spill] sm:$0xff] }
 0x47b   :  { %v1364_v29 = vadd.f32 %v7753_v35, %v1363_v13  ;;  %v2403_v1 = vmul.f32 0.1, %v5472_v28  ;;  %v8088_v4 = vadd.f32 %v7678_v25, %v9629_v34  ;;  %v9630_v13 = vld [vmem:[#allocation67_spill] sm:$0xff] }
 0x47c   :  { %4973 = vst [vmem:[#allocation2 + $0x88] sm:$0xff] %v4735_v20   ;;  %v8082_v38 = vadd.f32 %v3145_v19, %v9627_v63  ;;  %v8092_v45 = vadd.f32 %v7678_v25, %v9630_v13  ;;  %v9631_v20 = vld [vmem:[#allocation40_spill] sm:$0xff]  ;;  %v9632_v63 = vld [vmem:[#allocation34_spill] sm:$0xff] }
 0x47d   :  { %5477 = vtanh.f32 %v1364_v29  ;;  %v2077_v51 = vpop.f32.mrf.mxu2  ;;  %v3572_v31 = vpop.f32.mrf.mxu0  ;;  %v8096_v29 = vadd.f32 %v2403_v1, %v9631_v20 }
 0x47e   :  { %9628 = vst [vmem:[#allocation63_spill] sm:$0xff] %v8082_v38  ;;  %v5474_v12 = vpop.eup %5473  ;;  %v3368_v42 = vpack.c.bf16 %v8082_v38, %v8079_v10  ;;  %5479 = vtanh.f32 %v2789_v7  ;;  %v2078_v28 = vadd.f32 %v7753_v35, %v2077_v51  ;;  %v1063_v25 = vpack.c.bf16 %v8092_v45, %v8088_v4 }
 0x47f   :  { %v5476_v50 = vpop.eup %5475  ;;  %v2404_v11 = vmul.f32 0.1, %v5474_v12  ;;  %v3573_v7 = vadd.f32 %v7745_v26, %v3572_v31 }
 0x480   :  { %v2790_v19 = vpop.f32.mrf.mxu3  ;;  %3611 = vmatmul.bf16.gmra.mxu0 %v3368_v42  ;;  %v1662_v34 = vmul.f32 0.1, %v5476_v50 }
 0x481   :  { %v2791_v56 = vadd.f32 %v7753_v35, %v2790_v19  ;;  %v8100_v61 = vadd.f32 %v2404_v11, %v9632_v63 }
 0x482   :  { %v1366_v48 = vpop.f32.mrf.mxu1  ;;  %v8109_v11 = vadd.f32 %v1662_v34, %v7682_v17 }
 0x483   :  { %v5478_v38 = vpop.eup %5477  ;;  %5481 = vtanh.f32 %v2791_v56  ;;  %v2617_v51 = vpack.c.bf16 %v8100_v61, %v8096_v29  ;;  %v1367_v42 = vadd.f32 %v7753_v35, %v1366_v48 }
 0x484   :  { %v1663_v12 = vmul.f32 0.1, %v5478_v38  ;;  %5483 = vtanh.f32 %v2078_v28  ;;  %v5480_v1 = vpop.eup %5479  ;;  %9633 = vst [vmem:[#allocation65_spill] sm:$0xff] %v8109_v11  ;;  %v3832_v38 = vadd.f32 %v3573_v7, %v7717_v46 }
 0x485   :  { %1405 = vmatmul.bf16.gmra.mxu1 %v1063_v25  ;;  %v2079_v13 = vpop.f32.mrf.mxu2  ;;  %2832 = vmatmul.bf16.gmra.mxu3 %v2617_v51  ;;  %v3574_v50 = vpop.f32.mrf.mxu0  ;;  %v3146_v28 = vmul.f32 0.1, %v5480_v1 }
 0x486   :  { %v2080_v19 = vadd.f32 %v7753_v35, %v2079_v13  ;;  %v3575_v31 = vadd.f32 %v7745_v26, %v3574_v50  ;;  %v8114_v20 = vadd.f32 %v1663_v12, %v7686_v40 }
 0x487   :  { %v8123_v46 = vadd.f32 %v3146_v28, %v7690_v59  ;;  %v9636_v59 = vld [vmem:[#allocation68_spill] sm:$0xff] }
 0x488   :  { %9634 = vst [vmem:[#allocation22_spill] sm:$0xff] %v8114_v20  ;;  %5485 = vtanh.f32 %v2080_v19  ;;  %v3833_v48 = vadd.f32 %v3575_v31, %v7720_v47  ;;  %v2793_v56 = vpop.f32.mrf.mxu3  ;;  %v1866_v63 = vpack.c.bf16 %v8114_v20, %v8109_v11  ;;  %v9635_v47 = vld [vmem:[#allocation6_spill] sm:$0xff] }
 0x489   :  { %v5482_v25 = vpop.eup %5481  ;;  %5487 = vtanh.f32 %v1367_v42  ;;  %v2794_v40 = vadd.f32 %v7753_v35, %v2793_v56  ;;  %v9637_v56 = vld [vmem:[#allocation70_spill] sm:$0xff] }
 0x48a   :  { %v5484_v17 = vpop.eup %5483  ;;  %v3147_v34 = vmul.f32 0.1, %v5482_v25  ;;  %v4740_v51 = vpack.c.bf16 %v3833_v48, %v3832_v38  ;;  %v1368_v13 = vpop.f32.mrf.mxu1  ;;  %2121 = vmatmul.bf16.gmra.mxu2 %v1866_v63  ;;  %v8133_v48 = vld [vmem:[%s9163_s2] ss:$0 sm:$0xff] }
 0x48b   :  { %v1369_v12 = vadd.f32 %v7753_v35, %v1368_v13  ;;  %v2405_v1 = vmul.f32 0.1, %v5484_v17  ;;  %v8137_v28 = vadd.f32 %v8133_v48, %v9636_v59  ;;  %v8141_v63 = vadd.f32 %v8133_v48, %v9637_v56 }
 0x48c   :  { %4974 = vst [vmem:[#allocation2 + $0x90] sm:$0xff] %v4740_v51   ;;  %v8126_v7 = vadd.f32 %v3147_v34, %v9635_v47 }
 0x48d   :  { %5489 = vtanh.f32 %v1369_v12  ;;  %v2082_v50 = vpop.f32.mrf.mxu2  ;;  %v3577_v42 = vpop.f32.mrf.mxu0  ;;  %v8145_v51 = vadd.f32 %v2405_v1, %v7703_v55  ;;  %v9638_v12 = vld [vmem:[#allocation41_spill] sm:$0xff]  ;;  %v1064_v56 = vpack.c.bf16 %v8141_v63, %v8137_v28 }
 0x48e   :  { %v5486_v19 = vpop.eup %5485  ;;  %v3369_v31 = vpack.c.bf16 %v8126_v7, %v8123_v46  ;;  %5491 = vtanh.f32 %v2794_v40  ;;  %v2083_v17 = vadd.f32 %v7753_v35, %v2082_v50  ;;  %v3578_v40 = vadd.f32 %v7745_v26, %v3577_v42 }
 0x48f   :  { %v5488_v38 = vpop.eup %5487  ;;  %v2406_v25 = vmul.f32 0.1, %v5486_v19 }
 0x490   :  { %v2795_v34 = vpop.f32.mrf.mxu3  ;;  %3616 = vmatmul.bf16.gmra.mxu0 %v3369_v31  ;;  %v1664_v59 = vmul.f32 0.1, %v5488_v38 }
 0x491   :  { %v2796_v13 = vadd.f32 %v7753_v35, %v2795_v34  ;;  %v8149_v47 = vadd.f32 %v2406_v25, %v9638_v12 }
 0x492   :  { %v1371_v20 = vpop.f32.mrf.mxu1  ;;  %v8158_v25 = vadd.f32 %v1664_v59, %v7726_v52 }
 0x493   :  { %9639 = vst [vmem:[#allocation15_spill] sm:$0xff] %v8149_v47  ;;  %v5490_v11 = vpop.eup %5489  ;;  %5493 = vtanh.f32 %v2796_v13  ;;  %v2618_v50 = vpack.c.bf16 %v8149_v47, %v8145_v51  ;;  %v1372_v1 = vadd.f32 %v7753_v35, %v1371_v20 }
 0x494   :  { %v1665_v19 = vmul.f32 0.1, %v5490_v11  ;;  %5495 = vtanh.f32 %v2083_v17  ;;  %v5492_v55 = vpop.eup %5491  ;;  %v3834_v11 = vadd.f32 %v3578_v40, %v7771_v39  ;;  %v9640_v39 = vld [vmem:[#allocation42_spill] sm:$0xff] }
 0x495   :  { %1410 = vmatmul.bf16.gmra.mxu1 %v1064_v56  ;;  %v2084_v31 = vpop.f32.mrf.mxu2  ;;  %2837 = vmatmul.bf16.gmra.mxu3 %v2618_v50  ;;  %v3579_v38 = vpop.f32.mrf.mxu0  ;;  %v3148_v17 = vmul.f32 0.1, %v5492_v55 }
 0x496   :  { %v2085_v34 = vadd.f32 %v7753_v35, %v2084_v31  ;;  %v3580_v42 = vadd.f32 %v7745_v26, %v3579_v38  ;;  %v8163_v13 = vadd.f32 %v1665_v19, %v7730_v36 }
 0x497   :  { %v8172_v40 = vadd.f32 %v3148_v17, %v9640_v39 }
 0x498   :  { %5497 = vtanh.f32 %v2085_v34  ;;  %v3835_v20 = vadd.f32 %v3580_v42, %v7774_v54  ;;  %v2798_v12 = vpop.f32.mrf.mxu3  ;;  %v1867_v56 = vpack.c.bf16 %v8163_v13, %v8158_v25  ;;  %v9641_v54 = vld [vmem:[#allocation82_spill] sm:$0xff] }
 0x499   :  { %v5494_v50 = vpop.eup %5493  ;;  %5499 = vtanh.f32 %v1372_v1  ;;  %v2799_v36 = vadd.f32 %v7753_v35, %v2798_v12 }
 0x49a   :  { %v5496_v52 = vpop.eup %5495  ;;  %v3149_v59 = vmul.f32 0.1, %v5494_v50  ;;  %v4745_v31 = vpack.c.bf16 %v3835_v20, %v3834_v11  ;;  %v1373_v47 = vpop.f32.mrf.mxu1  ;;  %2126 = vmatmul.bf16.gmra.mxu2 %v1867_v56  ;;  %v9642_v20 = vld [vmem:[#allocation71_spill] sm:$0xff]  ;;  %v8190_v56 = vld [vmem:[%s9165_s4] ss:$0 sm:$0xff] }
 0x49b   :  { %v1374_v26 = vadd.f32 %v7753_v35, %v1373_v47  ;;  %v2407_v55 = vmul.f32 0.1, %v5496_v52  ;;  %v8181_v12 = vadd.f32 %v8133_v48, %v9642_v20  ;;  %v9643_v35 = vld [vmem:[#allocation72_spill] sm:$0xff] }
 0x49c   :  { %4975 = vst [vmem:[#allocation2 + $0x98] sm:$0xff] %v4745_v31   ;;  %v8175_v19 = vadd.f32 %v3149_v59, %v9641_v54  ;;  %v8185_v47 = vadd.f32 %v8133_v48, %v9643_v35 }
 0x49d   :  { %5501 = vtanh.f32 %v1374_v26  ;;  %v2087_v38 = vpop.f32.mrf.mxu2  ;;  %v3582_v1 = vpop.f32.mrf.mxu0  ;;  %v8194_v59 = vadd.f32 %v2407_v55, %v7757_v37  ;;  %v9646_v26 = vld [vmem:[#allocation83_spill] sm:$0xff] }
 0x49e   :  { %v5498_v34 = vpop.eup %5497  ;;  %v3370_v42 = vpack.c.bf16 %v8175_v19, %v8172_v40  ;;  %9644 = vst [vmem:[#allocation44_spill] sm:$0xff] %v8185_v47  ;;  %5503 = vtanh.f32 %v2799_v36  ;;  %v2088_v50 = vadd.f32 %v8190_v56, %v2087_v38  ;;  %v1065_v20 = vpack.c.bf16 %v8185_v47, %v8181_v12  ;;  %v8205_v38 = vld [vmem:[%s9167_s6] ss:$0 sm:$0xff] }
 0x49f   :  { %v5500_v11 = vpop.eup %5499  ;;  %v2408_v17 = vmul.f32 0.1, %v5498_v34  ;;  %9645 = vst [vmem:[#allocation46_spill] sm:$0xff] %v8194_v59 }
 0x4a0   :  { %v2800_v52 = vpop.f32.mrf.mxu3  ;;  %3621 = vmatmul.bf16.gmra.mxu0 %v3370_v42  ;;  %v1666_v54 = vmul.f32 0.1, %v5500_v11  ;;  %v3583_v42 = vadd.f32 %v8205_v38, %v3582_v1 }
 0x4a1   :  { %v2801_v31 = vadd.f32 %v8190_v56, %v2800_v52  ;;  %v8198_v39 = vadd.f32 %v2408_v17, %v9646_v26 }
 0x4a2   :  { %v1376_v34 = vpop.f32.mrf.mxu1  ;;  %v8212_v26 = vadd.f32 %v1666_v54, %v7780_v43 }
 0x4a3   :  { %9647 = vst [vmem:[#allocation69_spill] sm:$0xff] %v8198_v39  ;;  %v5502_v36 = vpop.eup %5501  ;;  %5505 = vtanh.f32 %v2801_v31  ;;  %v2619_v37 = vpack.c.bf16 %v8198_v39, %v8194_v59  ;;  %v1377_v11 = vadd.f32 %v8190_v56, %v1376_v34 }
 0x4a4   :  { %v1667_v55 = vmul.f32 0.1, %v5502_v36  ;;  %5507 = vtanh.f32 %v2088_v50  ;;  %v5504_v35 = vpop.eup %5503  ;;  %v3836_v36 = vadd.f32 %v3583_v42, %v7815_v58 }
 0x4a5   :  { %1415 = vmatmul.bf16.gmra.mxu1 %v1065_v20  ;;  %v2089_v17 = vpop.f32.mrf.mxu2  ;;  %2842 = vmatmul.bf16.gmra.mxu3 %v2619_v37  ;;  %v3584_v52 = vpop.f32.mrf.mxu0  ;;  %v3150_v50 = vmul.f32 0.1, %v5504_v35 }
 0x4a6   :  { %v2090_v47 = vadd.f32 %v8190_v56, %v2089_v17  ;;  %v3585_v1 = vadd.f32 %v8205_v38, %v3584_v52  ;;  %v8217_v31 = vadd.f32 %v1667_v55, %v7784_v3 }
 0x4a7   :  { %v8226_v58 = vadd.f32 %v3150_v50, %v7788_v41 }
 0x4a8   :  { %9648 = vst [vmem:[#allocation24_spill] sm:$0xff] %v8217_v31  ;;  %5509 = vtanh.f32 %v2090_v47  ;;  %v3837_v34 = vadd.f32 %v3585_v1, %v7818_v2  ;;  %v2803_v20 = vpop.f32.mrf.mxu3  ;;  %v1868_v37 = vpack.c.bf16 %v8217_v31, %v8212_v26  ;;  %v9649_v2 = vld [vmem:[#allocation9_spill] sm:$0xff] }
 0x4a9   :  { %v5506_v39 = vpop.eup %5505  ;;  %5511 = vtanh.f32 %v1377_v11  ;;  %v2804_v3 = vadd.f32 %v8190_v56, %v2803_v20 }
 0x4aa   :  { %v5508_v43 = vpop.eup %5507  ;;  %v3151_v54 = vmul.f32 0.1, %v5506_v39  ;;  %v4750_v17 = vpack.c.bf16 %v3837_v34, %v3836_v36  ;;  %v1378_v59 = vpop.f32.mrf.mxu1  ;;  %2131 = vmatmul.bf16.gmra.mxu2 %v1868_v37  ;;  %v9650_v36 = vld [vmem:[#allocation73_spill] sm:$0xff] }
 0x4ab   :  { %v1379_v55 = vadd.f32 %v8190_v56, %v1378_v59  ;;  %v2409_v42 = vmul.f32 0.1, %v5508_v43  ;;  %v8235_v34 = vadd.f32 %v8133_v48, %v9650_v36  ;;  %v9651_v59 = vld [vmem:[#allocation74_spill] sm:$0xff] }
 0x4ac   :  { %4976 = vst [vmem:[#allocation2 + $0xa0] sm:$0xff] %v4750_v17   ;;  %v8229_v47 = vadd.f32 %v3151_v54, %v9649_v2  ;;  %v8239_v41 = vadd.f32 %v8133_v48, %v9651_v59  ;;  %v9652_v17 = vld [vmem:[#allocation8_spill] sm:$0xff] }
 0x4ad   :  { %5513 = vtanh.f32 %v1379_v55  ;;  %v2092_v35 = vpop.f32.mrf.mxu2  ;;  %v3587_v11 = vpop.f32.mrf.mxu0  ;;  %v8243_v43 = vadd.f32 %v2409_v42, %v7801_v9 }
 0x4ae   :  { %v5510_v52 = vpop.eup %5509  ;;  %v3371_v39 = vpack.c.bf16 %v8229_v47, %v8226_v58  ;;  %5515 = vtanh.f32 %v2804_v3  ;;  %v2093_v20 = vadd.f32 %v8190_v56, %v2092_v35  ;;  %v1066_v59 = vpack.c.bf16 %v8239_v41, %v8235_v34 }
 0x4af   :  { %v5512_v1 = vpop.eup %5511  ;;  %v2410_v50 = vmul.f32 0.1, %v5510_v52  ;;  %v3588_v3 = vadd.f32 %v8205_v38, %v3587_v11 }
 0x4b0   :  { %v2805_v37 = vpop.f32.mrf.mxu3  ;;  %3626 = vmatmul.bf16.gmra.mxu0 %v3371_v39  ;;  %v1668_v2 = vmul.f32 0.1, %v5512_v1 }
 0x4b1   :  { %v2806_v54 = vadd.f32 %v8190_v56, %v2805_v37  ;;  %v8247_v55 = vadd.f32 %v2410_v50, %v9652_v17 }
 0x4b2   :  { %v1381_v36 = vpop.f32.mrf.mxu1  ;;  %v8256_v50 = vadd.f32 %v1668_v2, %v7824_v57 }
 0x4b3   :  { %9653 = vst [vmem:[#allocation48_spill] sm:$0xff] %v8247_v55  ;;  %v5514_v31 = vpop.eup %5513  ;;  %5517 = vtanh.f32 %v2806_v54  ;;  %v2620_v35 = vpack.c.bf16 %v8247_v55, %v8243_v43  ;;  %v1382_v42 = vadd.f32 %v8190_v56, %v1381_v36 }
 0x4b4   :  { %v1669_v52 = vmul.f32 0.1, %v5514_v31  ;;  %5519 = vtanh.f32 %v2093_v20  ;;  %v5516_v9 = vpop.eup %5515  ;;  %v3838_v31 = vadd.f32 %v3588_v3, %v7859_v14 }
 0x4b5   :  { %1420 = vmatmul.bf16.gmra.mxu1 %v1066_v59  ;;  %v2094_v39 = vpop.f32.mrf.mxu2  ;;  %2847 = vmatmul.bf16.gmra.mxu3 %v2620_v35  ;;  %v3589_v1 = vpop.f32.mrf.mxu0  ;;  %v3152_v20 = vmul.f32 0.1, %v5516_v9 }
 0x4b6   :  { %v2095_v37 = vadd.f32 %v8190_v56, %v2094_v39  ;;  %v3590_v11 = vadd.f32 %v8205_v38, %v3589_v1  ;;  %v8261_v54 = vadd.f32 %v1669_v52, %v7828_v18 }
 0x4b7   :  { %v8270_v14 = vadd.f32 %v3152_v20, %v7832_v8 }
 0x4b8   :  { %9654 = vst [vmem:[#allocation49_spill] sm:$0xff] %v8261_v54  ;;  %5521 = vtanh.f32 %v2095_v37  ;;  %v3839_v17 = vadd.f32 %v3590_v11, %v7862_v44  ;;  %v2808_v36 = vpop.f32.mrf.mxu3  ;;  %v1869_v59 = vpack.c.bf16 %v8261_v54, %v8256_v50  ;;  %v9655_v44 = vld [vmem:[#allocation10_spill] sm:$0xff] }
 0x4b9   :  { %v5518_v35 = vpop.eup %5517  ;;  %5523 = vtanh.f32 %v1382_v42  ;;  %v2809_v18 = vadd.f32 %v8190_v56, %v2808_v36 }
 0x4ba   :  { %v5520_v57 = vpop.eup %5519  ;;  %v3153_v2 = vmul.f32 0.1, %v5518_v35  ;;  %v4755_v39 = vpack.c.bf16 %v3839_v17, %v3838_v31  ;;  %v1383_v55 = vpop.f32.mrf.mxu1  ;;  %2136 = vmatmul.bf16.gmra.mxu2 %v1869_v59  ;;  %v9656_v17 = vld [vmem:[#allocation75_spill] sm:$0xff] }
 0x4bb   :  { %v1384_v52 = vadd.f32 %v8190_v56, %v1383_v55  ;;  %v2411_v9 = vmul.f32 0.1, %v5520_v57  ;;  %v8279_v36 = vadd.f32 %v8133_v48, %v9656_v17  ;;  %v9657_v55 = vld [vmem:[#allocation76_spill] sm:$0xff] }
 0x4bc   :  { %4977 = vst [vmem:[#allocation2 + $0xa8] sm:$0xff] %v4755_v39   ;;  %v8273_v3 = vadd.f32 %v3153_v2, %v9655_v44  ;;  %v8283_v8 = vadd.f32 %v8133_v48, %v9657_v55  ;;  %v9658_v39 = vld [vmem:[#allocation43_spill] sm:$0xff] }
 0x4bd   :  { %5525 = vtanh.f32 %v1384_v52  ;;  %v2097_v1 = vpop.f32.mrf.mxu2  ;;  %v3592_v42 = vpop.f32.mrf.mxu0  ;;  %v8287_v57 = vadd.f32 %v2411_v9, %v7845_v15 }
 0x4be   :  { %v5522_v37 = vpop.eup %5521  ;;  %v3372_v11 = vpack.c.bf16 %v8273_v3, %v8270_v14  ;;  %5527 = vtanh.f32 %v2809_v18  ;;  %v2098_v59 = vadd.f32 %v8190_v56, %v2097_v1  ;;  %v1067_v55 = vpack.c.bf16 %v8283_v8, %v8279_v36 }
 0x4bf   :  { %v5524_v31 = vpop.eup %5523  ;;  %v2412_v20 = vmul.f32 0.1, %v5522_v37  ;;  %v3593_v18 = vadd.f32 %v8205_v38, %v3592_v42 }
 0x4c0   :  { %v2810_v35 = vpop.f32.mrf.mxu3  ;;  %3631 = vmatmul.bf16.gmra.mxu0 %v3372_v11  ;;  %v1670_v44 = vmul.f32 0.1, %v5524_v31 }
 0x4c1   :  { %v2811_v2 = vadd.f32 %v8190_v56, %v2810_v35  ;;  %v8291_v52 = vadd.f32 %v2412_v20, %v9658_v39 }
 0x4c2   :  { %v1386_v17 = vpop.f32.mrf.mxu1  ;;  %v8300_v20 = vadd.f32 %v1670_v44, %v7868_v30 }
 0x4c3   :  { %9659 = vst [vmem:[#allocation26_spill] sm:$0xff] %v8291_v52  ;;  %v5526_v54 = vpop.eup %5525  ;;  %5529 = vtanh.f32 %v2811_v2  ;;  %v2621_v1 = vpack.c.bf16 %v8291_v52, %v8287_v57  ;;  %v1387_v9 = vadd.f32 %v8190_v56, %v1386_v17 }
 0x4c4   :  { %v1671_v37 = vmul.f32 0.1, %v5526_v54  ;;  %5531 = vtanh.f32 %v2098_v59  ;;  %v5528_v15 = vpop.eup %5527  ;;  %v3840_v54 = vadd.f32 %v3593_v18, %v7903_v23 }
 0x4c5   :  { %1425 = vmatmul.bf16.gmra.mxu1 %v1067_v55  ;;  %v2099_v11 = vpop.f32.mrf.mxu2  ;;  %2852 = vmatmul.bf16.gmra.mxu3 %v2621_v1  ;;  %v3594_v31 = vpop.f32.mrf.mxu0  ;;  %v3154_v59 = vmul.f32 0.1, %v5528_v15 }
 0x4c6   :  { %v2100_v35 = vadd.f32 %v8190_v56, %v2099_v11  ;;  %v3595_v42 = vadd.f32 %v8205_v38, %v3594_v31  ;;  %v8305_v2 = vadd.f32 %v1671_v37, %v7872_v6 }
 0x4c7   :  { %v8314_v23 = vadd.f32 %v3154_v59, %v7876_v60 }
 0x4c8   :  { %9660 = vst [vmem:[#allocation25_spill] sm:$0xff] %v8305_v2  ;;  %5533 = vtanh.f32 %v2100_v35  ;;  %v3841_v39 = vadd.f32 %v3595_v42, %v7906_v0  ;;  %v2813_v17 = vpop.f32.mrf.mxu3  ;;  %v1870_v55 = vpack.c.bf16 %v8305_v2, %v8300_v20  ;;  %v9661_v0 = vld [vmem:[#allocation45_spill] sm:$0xff] }
 0x4c9   :  { %v5530_v1 = vpop.eup %5529  ;;  %5535 = vtanh.f32 %v1387_v9  ;;  %v2814_v6 = vadd.f32 %v8190_v56, %v2813_v17 }
 0x4ca   :  { %v5532_v30 = vpop.eup %5531  ;;  %v3155_v44 = vmul.f32 0.1, %v5530_v1  ;;  %v4760_v11 = vpack.c.bf16 %v3841_v39, %v3840_v54  ;;  %v1388_v52 = vpop.f32.mrf.mxu1  ;;  %2141 = vmatmul.bf16.gmra.mxu2 %v1870_v55  ;;  %v9662_v39 = vld [vmem:[#allocation77_spill] sm:$0xff] }
 0x4cb   :  { %v1389_v37 = vadd.f32 %v8190_v56, %v1388_v52  ;;  %v2413_v15 = vmul.f32 0.1, %v5532_v30  ;;  %v8323_v17 = vadd.f32 %v8133_v48, %v9662_v39  ;;  %v9663_v52 = vld [vmem:[#allocation78_spill] sm:$0xff] }
 0x4cc   :  { %4978 = vst [vmem:[#allocation2 + $0xb0] sm:$0xff] %v4760_v11   ;;  %v8317_v18 = vadd.f32 %v3155_v44, %v9661_v0  ;;  %v8327_v60 = vadd.f32 %v8133_v48, %v9663_v52  ;;  %v9665_v11 = vld [vmem:[#allocation56_spill] sm:$0xff] }
 0x4cd   :  { %5537 = vtanh.f32 %v1389_v37  ;;  %v2102_v31 = vpop.f32.mrf.mxu2  ;;  %v3597_v9 = vpop.f32.mrf.mxu0  ;;  %v8331_v30 = vadd.f32 %v2413_v15, %v7889_v24 }
 0x4ce   :  { %v5534_v35 = vpop.eup %5533  ;;  %v3373_v42 = vpack.c.bf16 %v8317_v18, %v8314_v23  ;;  %5539 = vtanh.f32 %v2814_v6  ;;  %v2103_v55 = vadd.f32 %v8190_v56, %v2102_v31  ;;  %v1068_v52 = vpack.c.bf16 %v8327_v60, %v8323_v17 }
 0x4cf   :  { %v5536_v54 = vpop.eup %5535  ;;  %v2414_v59 = vmul.f32 0.1, %v5534_v35  ;;  %9664 = vst [vmem:[#allocation21_spill] sm:$0xff] %v8331_v30  ;;  %v3598_v6 = vadd.f32 %v8205_v38, %v3597_v9 }
 0x4d0   :  { %v2815_v1 = vpop.f32.mrf.mxu3  ;;  %3636 = vmatmul.bf16.gmra.mxu0 %v3373_v42  ;;  %v1672_v0 = vmul.f32 0.1, %v5536_v54 }
 0x4d1   :  { %v2816_v44 = vadd.f32 %v8190_v56, %v2815_v1  ;;  %v8335_v37 = vadd.f32 %v2414_v59, %v9665_v11  ;;  %v9669_v11 = vld [vmem:[#allocation14_spill] sm:$0xff] }
 0x4d2   :  { %v1391_v39 = vpop.f32.mrf.mxu1  ;;  %v8344_v59 = vadd.f32 %v1672_v0, %v7912_v16 }
 0x4d3   :  { %9666 = vst [vmem:[#allocation19_spill] sm:$0xff] %v8335_v37  ;;  %v5538_v2 = vpop.eup %5537  ;;  %5541 = vtanh.f32 %v2816_v44  ;;  %v2622_v31 = vpack.c.bf16 %v8335_v37, %v8331_v30  ;;  %v1392_v15 = vadd.f32 %v8190_v56, %v1391_v39 }
 0x4d4   :  { %v1673_v35 = vmul.f32 0.1, %v5538_v2  ;;  %5543 = vtanh.f32 %v2103_v55  ;;  %v5540_v24 = vpop.eup %5539  ;;  %9667 = vst [vmem:[#allocation51_spill] sm:$0xff] %v8344_v59  ;;  %v3842_v2 = vadd.f32 %v3598_v6, %v7947_v22  ;;  %v9670_v22 = vld [vmem:[#allocation57_spill] sm:$0xff] }
 0x4d5   :  { %1430 = vmatmul.bf16.gmra.mxu1 %v1068_v52  ;;  %v2104_v42 = vpop.f32.mrf.mxu2  ;;  %2857 = vmatmul.bf16.gmra.mxu3 %v2622_v31  ;;  %v3599_v54 = vpop.f32.mrf.mxu0  ;;  %v3156_v55 = vmul.f32 0.1, %v5540_v24  ;;  %v9671_v24 = vld [vmem:[#allocation12_spill] sm:$0xff] }
 0x4d6   :  { %v8347_v1 = vadd.f32 %v1673_v35, %v7916_v5  ;;  %v2105_v9 = vadd.f32 %v8190_v56, %v2104_v42  ;;  %v3600_v44 = vadd.f32 %v8205_v38, %v3599_v54 }
 0x4d7   :  { %v8358_v6 = vadd.f32 %v3156_v55, %v9670_v22 }
 0x4d8   :  { %9668 = vst [vmem:[#allocation53_spill] sm:$0xff] %v8347_v1  ;;  %5545 = vtanh.f32 %v2105_v9  ;;  %v3843_v39 = vadd.f32 %v3600_v44, %v9669_v11  ;;  %v2818_v52 = vpop.f32.mrf.mxu3  ;;  %v1871_v31 = vpack.c.bf16 %v8347_v1, %v8344_v59 }
 0x4d9   :  { %v5542_v37 = vpop.eup %5541  ;;  %5547 = vtanh.f32 %v1392_v15  ;;  %v2819_v42 = vadd.f32 %v8190_v56, %v2818_v52 }
 0x4da   :  { %v5544_v16 = vpop.eup %5543  ;;  %v3157_v0 = vmul.f32 0.1, %v5542_v37  ;;  %v4765_v5 = vpack.c.bf16 %v3843_v39, %v3842_v2  ;;  %v1393_v35 = vpop.f32.mrf.mxu1  ;;  %2146 = vmatmul.bf16.gmra.mxu2 %v1871_v31  ;;  %v9673_v39 = vld [vmem:[#allocation79_spill] sm:$0xff]  ;;  %v9674_v31 = vld [vmem:[#allocation80_spill] sm:$0xff] }
 0x4db   :  { %v1394_v54 = vadd.f32 %v8190_v56, %v1393_v35  ;;  %v2415_v44 = vmul.f32 0.1, %v5544_v16  ;;  %v8367_v52 = vadd.f32 %v8133_v48, %v9673_v39  ;;  %v8371_v55 = vadd.f32 %v8133_v48, %v9674_v31  ;;  %v9675_v35 = vld [vmem:[#allocation13_spill] sm:$0xff] }
 0x4dc   :  { %4979 = vst [vmem:[#allocation2 + $0xb8] sm:$0xff] %v4765_v5   ;;  %v8361_v9 = vadd.f32 %v3157_v0, %v9671_v24  ;;  %v9676_v24 = vld [vmem:[#allocation11_spill] sm:$0xff] }
 0x4dd   :  { %5549 = vtanh.f32 %v1394_v54  ;;  %v2107_v11 = vpop.f32.mrf.mxu2  ;;  %v3602_v15 = vpop.f32.mrf.mxu0  ;;  %v8375_v54 = vadd.f32 %v2415_v44, %v9675_v35  ;;  %v1069_v31 = vpack.c.bf16 %v8371_v55, %v8367_v52 }
 0x4de   :  { %9672 = vst [vmem:[#allocation28_spill] sm:$0xff] %v8361_v9  ;;  %v5546_v1 = vpop.eup %5545  ;;  %v3374_v37 = vpack.c.bf16 %v8361_v9, %v8358_v6  ;;  %5551 = vtanh.f32 %v2819_v42  ;;  %v2108_v16 = vadd.f32 %v8190_v56, %v2107_v11 }
 0x4df   :  { %v5548_v2 = vpop.eup %5547  ;;  %v2416_v5 = vmul.f32 0.1, %v5546_v1  ;;  %v3603_v1 = vadd.f32 %v8205_v38, %v3602_v15 }
 0x4e0   :  { %v2820_v0 = vpop.f32.mrf.mxu3  ;;  %3641 = vmatmul.bf16.gmra.mxu0 %v3374_v37  ;;  %v1674_v39 = vmul.f32 0.1, %v5548_v2 }
 0x4e1   :  { %v2821_v22 = vadd.f32 %v8190_v56, %v2820_v0  ;;  %v8379_v59 = vadd.f32 %v2416_v5, %v9676_v24 }
 0x4e2   :  { %v1396_v30 = vpop.f32.mrf.mxu1  ;;  %v8388_v0 = vadd.f32 %v1674_v39, %v7956_v53 }
 0x4e3   :  { %9677 = vst [vmem:[#allocation30_spill] sm:$0xff] %v8379_v59  ;;  %v5550_v9 = vpop.eup %5549  ;;  %5553 = vtanh.f32 %v2821_v22  ;;  %v2623_v42 = vpack.c.bf16 %v8379_v59, %v8375_v54  ;;  %v1397_v37 = vadd.f32 %v8190_v56, %v1396_v30 }
 0x4e4   :  { %v1675_v11 = vmul.f32 0.1, %v5550_v9  ;;  %5555 = vtanh.f32 %v2108_v16  ;;  %v5552_v44 = vpop.eup %5551  ;;  %9678 = vst [vmem:[#allocation23_spill] sm:$0xff] %v8388_v0  ;;  %v3844_v9 = vadd.f32 %v3603_v1, %v7991_v62  ;;  %v9680_v62 = vld [vmem:[#allocation7_spill] sm:$0xff] }
 0x4e5   :  { %1435 = vmatmul.bf16.gmra.mxu1 %v1069_v31  ;;  %v2109_v5 = vpop.f32.mrf.mxu2  ;;  %2862 = vmatmul.bf16.gmra.mxu3 %v2623_v42  ;;  %v3604_v2 = vpop.f32.mrf.mxu0  ;;  %v3158_v16 = vmul.f32 0.1, %v5552_v44 }
 0x4e6   :  { %v8391_v35 = vadd.f32 %v1675_v11, %v7960_v49  ;;  %v2110_v15 = vadd.f32 %v8190_v56, %v2109_v5  ;;  %v3605_v22 = vadd.f32 %v8205_v38, %v3604_v2 }
 0x4e7   :  { %v8402_v1 = vadd.f32 %v3158_v16, %v9680_v62 }
 0x4e8   :  { %9679 = vst [vmem:[#allocation33_spill] sm:$0xff] %v8391_v35  ;;  %5557 = vtanh.f32 %v2110_v15  ;;  %v3845_v30 = vadd.f32 %v3605_v22, %v7994_v21  ;;  %v2823_v24 = vpop.f32.mrf.mxu3  ;;  %v1872_v31 = vpack.c.bf16 %v8391_v35, %v8388_v0  ;;  %v9681_v21 = vld [vmem:[#allocation47_spill] sm:$0xff] }
 0x4e9   :  { %v5554_v42 = vpop.eup %5553  ;;  %5559 = vtanh.f32 %v1397_v37  ;;  %v2824_v5 = vadd.f32 %v8190_v56, %v2823_v24 }
 0x4ea   :  { %v5556_v53 = vpop.eup %5555  ;;  %v3159_v39 = vmul.f32 0.1, %v5554_v42  ;;  %v4770_v49 = vpack.c.bf16 %v3845_v30, %v3844_v9  ;;  %v1398_v11 = vpop.f32.mrf.mxu1  ;;  %2151 = vmatmul.bf16.gmra.mxu2 %v1872_v31  ;;  %v9682_v31 = vld [vmem:[#allocation81_spill] sm:$0xff] }
 0x4eb   :  { %v1399_v2 = vadd.f32 %v8190_v56, %v1398_v11  ;;  %v2417_v15 = vmul.f32 0.1, %v5556_v53  ;;  %v8411_v24 = vadd.f32 %v8133_v48, %v9682_v31 }
 0x4ec   :  { %4980 = vst [vmem:[#allocation2 + $0xc0] sm:$0xff] %v4770_v49   ;;  %v8405_v44 = vadd.f32 %v3159_v39, %v9681_v21  ;;  %v9683_v39 = vld [vmem:[#allocation50_spill] sm:$0xff] }
 0x4ed   :  { %5561 = vtanh.f32 %v1399_v2  ;;  %v2112_v22 = vpop.f32.mrf.mxu2  ;;  %v3607_v37 = vpop.f32.mrf.mxu0  ;;  %v8415_v53 = vadd.f32 %v2417_v15, %v9683_v39  ;;  %v9684_v2 = vld [vmem:[#allocation84_spill] sm:$0xff]  ;;  %v1070_v48 = vpack.c.bf16 %v8411_v24, %v8411_v24 }
 0x4ee   :  { %v5558_v35 = vpop.eup %5557  ;;  %v3375_v9 = vpack.c.bf16 %v8405_v44, %v8402_v1  ;;  %5563 = vtanh.f32 %v2824_v5  ;;  %v2113_v16 = vadd.f32 %v8190_v56, %v2112_v22 }
 0x4ef   :  { %v5560_v30 = vpop.eup %5559  ;;  %v2418_v42 = vmul.f32 0.1, %v5558_v35  ;;  %v3608_v35 = vadd.f32 %v8205_v38, %v3607_v37 }
 0x4f0   :  { %v2825_v49 = vpop.f32.mrf.mxu3  ;;  %3646 = vmatmul.bf16.gmra.mxu0 %v3375_v9  ;;  %v1676_v21 = vmul.f32 0.1, %v5560_v30 }
 0x4f1   :  { %v2826_v11 = vadd.f32 %v8190_v56, %v2825_v49  ;;  %v8419_v62 = vadd.f32 %v2418_v42, %v9684_v2 }
 0x4f2   :  { %v1401_v0 = vpop.f32.mrf.mxu1  ;;  %v8428_v42 = vadd.f32 %v1676_v21, %v8000_v33 }
 0x4f3   :  { %9685 = vst [vmem:[#allocation55_spill] sm:$0xff] %v8419_v62  ;;  %v5562_v59 = vpop.eup %5561  ;;  %5565 = vtanh.f32 %v2826_v11  ;;  %v2624_v5 = vpack.c.bf16 %v8419_v62, %v8415_v53  ;;  %v1402_v9 = vadd.f32 %v8190_v56, %v1401_v0  ;;  %v9688_v11 = vld [vmem:[#allocation18_spill] sm:$0xff] }
 0x4f4   :  { %v1677_v22 = vmul.f32 0.1, %v5562_v59  ;;  %5567 = vtanh.f32 %v2113_v16  ;;  %v5564_v15 = vpop.eup %5563  ;;  %9686 = vst [vmem:[#allocation59_spill] sm:$0xff] %v8428_v42  ;;  %v3846_v59 = vadd.f32 %v3608_v35, %v8035_v32  ;;  %v9689_v32 = vld [vmem:[#allocation88_spill] sm:$0xff] }
 0x4f5   :  { %1440 = vmatmul.bf16.gmra.mxu1 %v1070_v48  ;;  %v2114_v31 = vpop.f32.mrf.mxu2  ;;  %2867 = vmatmul.bf16.gmra.mxu3 %v2624_v5  ;;  %v3609_v30 = vpop.f32.mrf.mxu0  ;;  %v3160_v16 = vmul.f32 0.1, %v5564_v15  ;;  %v9690_v15 = vld [vmem:[#allocation16_spill] sm:$0xff] }
 0x4f6   :  { %v8431_v49 = vadd.f32 %v1677_v22, %v8004_v27  ;;  %v2115_v37 = vadd.f32 %v8190_v56, %v2114_v31  ;;  %v3610_v39 = vadd.f32 %v8205_v38, %v3609_v30 }
 0x4f7   :  { %v8442_v35 = vadd.f32 %v3160_v16, %v9689_v32  ;;  %v9691_v16 = vld [vmem:[#allocation52_spill] sm:$0xff] }
 0x4f8   :  { %9687 = vst [vmem:[#allocation35_spill] sm:$0xff] %v8431_v49  ;;  %5569 = vtanh.f32 %v2115_v37  ;;  %v3847_v0 = vadd.f32 %v3610_v39, %v9688_v11  ;;  %v2828_v2 = vpop.f32.mrf.mxu3  ;;  %v1873_v48 = vpack.c.bf16 %v8431_v49, %v8428_v42 }
 0x4f9   :  { %v5566_v5 = vpop.eup %5565  ;;  %5571 = vtanh.f32 %v1402_v9  ;;  %v2829_v31 = vadd.f32 %v8190_v56, %v2828_v2 }
 0x4fa   :  { %v5568_v33 = vpop.eup %5567  ;;  %v3161_v21 = vmul.f32 0.1, %v5566_v5  ;;  %v4775_v27 = vpack.c.bf16 %v3847_v0, %v3846_v59  ;;  %v1403_v22 = vpop.f32.mrf.mxu1  ;;  %2156 = vmatmul.bf16.gmra.mxu2 %v1873_v48 }
 0x4fb   :  { %v1404_v30 = vadd.f32 %v8190_v56, %v1403_v22  ;;  %v2419_v39 = vmul.f32 0.1, %v5568_v33  ;;  %v9693_v33 = vld [vmem:[#allocation54_spill] sm:$0xff] }
 0x4fc   :  { %4981 = vst [vmem:[#allocation2 + $0xc8] sm:$0xff] %v4775_v27   ;;  %v8445_v37 = vadd.f32 %v3161_v21, %v9690_v15 }
 0x4fd   :  { %5573 = vtanh.f32 %v1404_v30  ;;  %v2117_v11 = vpop.f32.mrf.mxu2  ;;  %v3612_v9 = vpop.f32.mrf.mxu0  ;;  %v8451_v27 = vadd.f32 %v2419_v39, %v9691_v16  ;;  %v9695_v16 = vld [vmem:[#allocation66_spill] sm:$0xff] }
 0x4fe   :  { %v5570_v49 = vpop.eup %5569  ;;  %v3376_v59 = vpack.c.bf16 %v8445_v37, %v8442_v35  ;;  %5575 = vtanh.f32 %v2829_v31  ;;  %v2118_v2 = vadd.f32 %v8190_v56, %v2117_v11  ;;  %v3613_v42 = vadd.f32 %v8205_v38, %v3612_v9 }
 0x4ff   :  { %v5572_v0 = vpop.eup %5571  ;;  %v2420_v48 = vmul.f32 0.1, %v5570_v49  ;;  %9692 = vst [vmem:[#allocation29_spill] sm:$0xff] %v8451_v27 }
 0x500   :  { %v2830_v5 = vpop.f32.mrf.mxu3  ;;  %3651 = vmatmul.bf16.gmra.mxu0 %v3376_v59  ;;  %v1678_v30 = vmul.f32 0.1, %v5572_v0  ;;  %v9697_v0 = vld [vmem:[#allocation85_spill] sm:$0xff] }
 0x501   :  { %v2831_v21 = vadd.f32 %v8190_v56, %v2830_v5  ;;  %v8455_v22 = vadd.f32 %v2420_v48, %v9693_v33 }
 0x502   :  { %v1406_v32 = vpop.f32.mrf.mxu1  ;;  %v8462_v48 = vadd.f32 %v1678_v30, %v9695_v16 }
 0x503   :  { %9694 = vst [vmem:[#allocation87_spill] sm:$0xff] %v8455_v22  ;;  %v5574_v15 = vpop.eup %5573  ;;  %5577 = vtanh.f32 %v2831_v21  ;;  %v2625_v49 = vpack.c.bf16 %v8455_v22, %v8451_v27  ;;  %v1407_v39 = vadd.f32 %v8190_v56, %v1406_v32  ;;  %v3848_v22 = vadd.f32 %v3613_v42, %v8079_v10  ;;  %v9700_v10 = vld [vmem:[#allocation58_spill] sm:$0xff] }
 0x504   :  { %v1679_v31 = vmul.f32 0.1, %v5574_v15  ;;  %5579 = vtanh.f32 %v2118_v2  ;;  %v5576_v11 = vpop.eup %5575  ;;  %9696 = vst [vmem:[#allocation27_spill] sm:$0xff] %v8462_v48  ;;  %v9699_v2 = vld [vmem:[#allocation63_spill] sm:$0xff] }
 0x505   :  { %v2119_v59 = vpop.f32.mrf.mxu2  ;;  %2872 = vmatmul.bf16.gmra.mxu3 %v2625_v49  ;;  %v3614_v5 = vpop.f32.mrf.mxu0  ;;  %v3162_v15 = vmul.f32 0.1, %v5576_v11  ;;  %v9701_v11 = vld [vmem:[#allocation61_spill] sm:$0xff] }
 0x506   :  { %v8465_v33 = vadd.f32 %v1679_v31, %v9697_v0  ;;  %v2120_v9 = vadd.f32 %v8190_v56, %v2119_v59  ;;  %v3615_v21 = vadd.f32 %v8205_v38, %v3614_v5 }
 0x507   :  { %v8476_v42 = vadd.f32 %v3162_v15, %v9700_v10  ;;  %v9702_v15 = vld [vmem:[#allocation17_spill] sm:$0xff] }
 0x508   :  { %9698 = vst [vmem:[#allocation37_spill] sm:$0xff] %v8465_v33  ;;  %5581 = vtanh.f32 %v2120_v9  ;;  %v3849_v27 = vadd.f32 %v3615_v21, %v9699_v2  ;;  %v2833_v32 = vpop.f32.mrf.mxu3  ;;  %v1874_v49 = vpack.c.bf16 %v8465_v33, %v8462_v48 }
 0x509   :  { %v5578_v62 = vpop.eup %5577  ;;  %5583 = vtanh.f32 %v1407_v39  ;;  %v2834_v59 = vadd.f32 %v8190_v56, %v2833_v32 }
 0x50a   :  { %v5580_v30 = vpop.eup %5579  ;;  %v3163_v16 = vmul.f32 0.1, %v5578_v62  ;;  %v4780_v31 = vpack.c.bf16 %v3849_v27, %v3848_v22  ;;  %v1408_v0 = vpop.f32.mrf.mxu1  ;;  %2161 = vmatmul.bf16.gmra.mxu2 %v1874_v49 }
 0x50b   :  { %v1409_v5 = vadd.f32 %v8190_v56, %v1408_v0  ;;  %v2421_v21 = vmul.f32 0.1, %v5580_v30  ;;  %v9703_v30 = vld [vmem:[#allocation20_spill] sm:$0xff] }
 0x50c   :  { %4982 = vst [vmem:[#allocation2 + $0xd0] sm:$0xff] %v4780_v31   ;;  %v8479_v9 = vadd.f32 %v3163_v16, %v9701_v11 }
 0x50d   :  { %5585 = vtanh.f32 %v1409_v5  ;;  %v2122_v2 = vpop.f32.mrf.mxu2  ;;  %v3617_v39 = vpop.f32.mrf.mxu0  ;;  %v8485_v31 = vadd.f32 %v2421_v21, %v9702_v15 }
 0x50e   :  { %v5582_v33 = vpop.eup %5581  ;;  %v3377_v62 = vpack.c.bf16 %v8479_v9, %v8476_v42  ;;  %5587 = vtanh.f32 %v2834_v59  ;;  %v2123_v32 = vadd.f32 %v8190_v56, %v2122_v2  ;;  %v3618_v48 = vadd.f32 %v8205_v38, %v3617_v39 }
 0x50f   :  { %v5584_v27 = vpop.eup %5583  ;;  %v2422_v22 = vmul.f32 0.1, %v5582_v33 }
 0x510   :  { %v2835_v49 = vpop.f32.mrf.mxu3  ;;  %3656 = vmatmul.bf16.gmra.mxu0 %v3377_v62  ;;  %v1680_v5 = vmul.f32 0.1, %v5584_v27 }
 0x511   :  { %v2836_v16 = vadd.f32 %v8190_v56, %v2835_v49  ;;  %v8489_v0 = vadd.f32 %v2422_v22, %v9703_v30 }
 0x512   :  { %v1411_v10 = vpop.f32.mrf.mxu1  ;;  %v8496_v22 = vadd.f32 %v1680_v5, %v8088_v4 }
 0x513   :  { %v5586_v11 = vpop.eup %5585  ;;  %5589 = vtanh.f32 %v2836_v16  ;;  %v2626_v33 = vpack.c.bf16 %v8489_v0, %v8485_v31  ;;  %v1412_v21 = vadd.f32 %v8190_v56, %v1411_v10  ;;  %v3850_v16 = vadd.f32 %v3618_v48, %v8123_v46 }
 0x514   :  { %v1681_v59 = vmul.f32 0.1, %v5586_v11  ;;  %5591 = vtanh.f32 %v2123_v32  ;;  %v5588_v2 = vpop.eup %5587 }
 0x515   :  { %v2124_v62 = vpop.f32.mrf.mxu2  ;;  %2877 = vmatmul.bf16.gmra.mxu3 %v2626_v33  ;;  %v3619_v49 = vpop.f32.mrf.mxu0  ;;  %v3164_v30 = vmul.f32 0.1, %v5588_v2 }
 0x516   :  { %v8499_v27 = vadd.f32 %v1681_v59, %v8092_v45  ;;  %v2125_v39 = vadd.f32 %v8190_v56, %v2124_v62  ;;  %v3620_v15 = vadd.f32 %v8205_v38, %v3619_v49 }
 0x517   :  { %v8510_v46 = vadd.f32 %v3164_v30, %v8096_v29  ;;  %v9704_v29 = vld [vmem:[#allocation65_spill] sm:$0xff] }
 0x518   :  { %5593 = vtanh.f32 %v2125_v39  ;;  %v3851_v32 = vadd.f32 %v3620_v15, %v8126_v7  ;;  %v2838_v10 = vpop.f32.mrf.mxu3  ;;  %v1875_v11 = vpack.c.bf16 %v8499_v27, %v8496_v22 }
 0x519   :  { %v5590_v33 = vpop.eup %5589  ;;  %5595 = vtanh.f32 %v1412_v21  ;;  %v2839_v62 = vadd.f32 %v8190_v56, %v2838_v10 }
 0x51a   :  { %v5592_v4 = vpop.eup %5591  ;;  %v3165_v5 = vmul.f32 0.1, %v5590_v33  ;;  %v4785_v45 = vpack.c.bf16 %v3851_v32, %v3850_v16  ;;  %v1413_v59 = vpop.f32.mrf.mxu1  ;;  %2166 = vmatmul.bf16.gmra.mxu2 %v1875_v11  ;;  %v9705_v33 = vld [vmem:[#allocation22_spill] sm:$0xff] }
 0x51b   :  { %v1414_v49 = vadd.f32 %v8190_v56, %v1413_v59  ;;  %v2423_v48 = vmul.f32 0.1, %v5592_v4 }
 0x51c   :  { %4983 = vst [vmem:[#allocation2 + $0xd8] sm:$0xff] %v4785_v45   ;;  %v8513_v7 = vadd.f32 %v3165_v5, %v8100_v61 }
 0x51d   :  { %5597 = vtanh.f32 %v1414_v49  ;;  %v2127_v2 = vpop.f32.mrf.mxu2  ;;  %v3622_v21 = vpop.f32.mrf.mxu0  ;;  %v8519_v30 = vadd.f32 %v2423_v48, %v9704_v29 }
 0x51e   :  { %v5594_v39 = vpop.eup %5593  ;;  %v3378_v15 = vpack.c.bf16 %v8513_v7, %v8510_v46  ;;  %5599 = vtanh.f32 %v2839_v62  ;;  %v2128_v10 = vadd.f32 %v8190_v56, %v2127_v2  ;;  %v3623_v49 = vadd.f32 %v8205_v38, %v3622_v21 }
 0x51f   :  { %v5596_v16 = vpop.eup %5595  ;;  %v2424_v32 = vmul.f32 0.1, %v5594_v39 }
 0x520   :  { %v2840_v11 = vpop.f32.mrf.mxu3  ;;  %3661 = vmatmul.bf16.gmra.mxu0 %v3378_v15  ;;  %v1682_v5 = vmul.f32 0.1, %v5596_v16 }
 0x521   :  { %v2841_v61 = vadd.f32 %v8190_v56, %v2840_v11  ;;  %v8523_v4 = vadd.f32 %v2424_v32, %v9705_v33 }
 0x522   :  { %v1416_v45 = vpop.f32.mrf.mxu1  ;;  %v8530_v32 = vadd.f32 %v1682_v5, %v8137_v28 }
 0x523   :  { %v5598_v59 = vpop.eup %5597  ;;  %5601 = vtanh.f32 %v2841_v61  ;;  %v2627_v62 = vpack.c.bf16 %v8523_v4, %v8519_v30  ;;  %v1417_v48 = vadd.f32 %v8190_v56, %v1416_v45  ;;  %v3852_v61 = vadd.f32 %v3623_v49, %v8172_v40 }
 0x524   :  { %v1683_v2 = vmul.f32 0.1, %v5598_v59  ;;  %5603 = vtanh.f32 %v2128_v10  ;;  %v5600_v39 = vpop.eup %5599 }
 0x525   :  { %v2129_v15 = vpop.f32.mrf.mxu2  ;;  %2882 = vmatmul.bf16.gmra.mxu3 %v2627_v62  ;;  %v3624_v11 = vpop.f32.mrf.mxu0  ;;  %v3166_v33 = vmul.f32 0.1, %v5600_v39 }
 0x526   :  { %v8533_v16 = vadd.f32 %v1683_v2, %v8141_v63  ;;  %v2130_v21 = vadd.f32 %v8190_v56, %v2129_v15  ;;  %v3625_v29 = vadd.f32 %v8205_v38, %v3624_v11 }
 0x527   :  { %v8544_v40 = vadd.f32 %v3166_v33, %v8145_v51 }
 0x528   :  { %5605 = vtanh.f32 %v2130_v21  ;;  %v3853_v10 = vadd.f32 %v3625_v29, %v8175_v19  ;;  %v2843_v45 = vpop.f32.mrf.mxu3  ;;  %v1876_v59 = vpack.c.bf16 %v8533_v16, %v8530_v32  ;;  %v9706_v19 = vld [vmem:[#allocation15_spill] sm:$0xff] }
 0x529   :  { %v5602_v62 = vpop.eup %5601  ;;  %5607 = vtanh.f32 %v1417_v48  ;;  %v2844_v15 = vadd.f32 %v8190_v56, %v2843_v45 }
 0x52a   :  { %v5604_v28 = vpop.eup %5603  ;;  %v3167_v5 = vmul.f32 0.1, %v5602_v62  ;;  %v4790_v63 = vpack.c.bf16 %v3853_v10, %v3852_v61  ;;  %v1418_v2 = vpop.f32.mrf.mxu1  ;;  %2171 = vmatmul.bf16.gmra.mxu2 %v1876_v59 }
 0x52b   :  { %v1419_v11 = vadd.f32 %v8190_v56, %v1418_v2  ;;  %v2425_v39 = vmul.f32 0.1, %v5604_v28 }
 0x52c   :  { %4984 = vst [vmem:[#allocation2 + $0xe0] sm:$0xff] %v4790_v63   ;;  %v8547_v49 = vadd.f32 %v3167_v5, %v9706_v19 }
 0x52d   :  { %5609 = vtanh.f32 %v1419_v11  ;;  %v2132_v21 = vpop.f32.mrf.mxu2  ;;  %v3627_v48 = vpop.f32.mrf.mxu0  ;;  %v8553_v51 = vadd.f32 %v2425_v39, %v8158_v25 }
 0x52e   :  { %v5606_v29 = vpop.eup %5605  ;;  %v3379_v61 = vpack.c.bf16 %v8547_v49, %v8544_v40  ;;  %5611 = vtanh.f32 %v2844_v15  ;;  %v2133_v45 = vadd.f32 %v8190_v56, %v2132_v21  ;;  %v3628_v11 = vadd.f32 %v8205_v38, %v3627_v48 }
 0x52f   :  { %v5608_v10 = vpop.eup %5607  ;;  %v2426_v59 = vmul.f32 0.1, %v5606_v29 }
 0x530   :  { %v2845_v62 = vpop.f32.mrf.mxu3  ;;  %3666 = vmatmul.bf16.gmra.mxu0 %v3379_v61  ;;  %v1684_v5 = vmul.f32 0.1, %v5608_v10  ;;  %v9707_v61 = vld [vmem:[#allocation44_spill] sm:$0xff] }
 0x531   :  { %v2846_v33 = vadd.f32 %v8190_v56, %v2845_v62  ;;  %v8557_v28 = vadd.f32 %v2426_v59, %v8163_v13  ;;  %v3854_v62 = vadd.f32 %v3628_v11, %v8226_v58  ;;  %v9708_v58 = vld [vmem:[#allocation46_spill] sm:$0xff] }
 0x532   :  { %v1421_v63 = vpop.f32.mrf.mxu1  ;;  %v8564_v13 = vadd.f32 %v1684_v5, %v8181_v12 }
 0x533   :  { %v5610_v2 = vpop.eup %5609  ;;  %5613 = vtanh.f32 %v2846_v33  ;;  %v2628_v15 = vpack.c.bf16 %v8557_v28, %v8553_v51  ;;  %v1422_v25 = vadd.f32 %v8190_v56, %v1421_v63 }
 0x534   :  { %v1685_v19 = vmul.f32 0.1, %v5610_v2  ;;  %5615 = vtanh.f32 %v2133_v45  ;;  %v5612_v21 = vpop.eup %5611 }
 0x535   :  { %v2134_v39 = vpop.f32.mrf.mxu2  ;;  %2887 = vmatmul.bf16.gmra.mxu3 %v2628_v15  ;;  %v3629_v29 = vpop.f32.mrf.mxu0  ;;  %v3168_v33 = vmul.f32 0.1, %v5612_v21 }
 0x536   :  { %v8567_v10 = vadd.f32 %v1685_v19, %v9707_v61  ;;  %v2135_v48 = vadd.f32 %v8190_v56, %v2134_v39  ;;  %v3630_v59 = vadd.f32 %v8205_v38, %v3629_v29 }
 0x537   :  { %v8578_v11 = vadd.f32 %v3168_v33, %v9708_v58  ;;  %v8601_v58 = vld [vmem:[%s9167_s6] ss:$0 sm:$0xff] }
 0x538   :  { %5617 = vtanh.f32 %v2135_v48  ;;  %v3855_v45 = vadd.f32 %v3630_v59, %v8229_v47  ;;  %v2848_v63 = vpop.f32.mrf.mxu3  ;;  %v1877_v2 = vpack.c.bf16 %v8567_v10, %v8564_v13  ;;  %v9709_v47 = vld [vmem:[#allocation69_spill] sm:$0xff] }
 0x539   :  { %v5614_v15 = vpop.eup %5613  ;;  %5619 = vtanh.f32 %v1422_v25  ;;  %v2849_v39 = vadd.f32 %v8190_v56, %v2848_v63 }
 0x53a   :  { %v5616_v12 = vpop.eup %5615  ;;  %v3169_v5 = vmul.f32 0.1, %v5614_v15  ;;  %v4795_v19 = vpack.c.bf16 %v3855_v45, %v3854_v62  ;;  %v1423_v61 = vpop.f32.mrf.mxu1  ;;  %2176 = vmatmul.bf16.gmra.mxu2 %v1877_v2 }
 0x53b   :  { %v1424_v38 = vadd.f32 %v8190_v56, %v1423_v61  ;;  %v2427_v29 = vmul.f32 0.1, %v5616_v12  ;;  %v8588_v56 = vld [vmem:[%s9165_s4] ss:$0 sm:$0xff] }
 0x53c   :  { %4985 = vst [vmem:[#allocation2 + $0xe8] sm:$0xff] %v4795_v19   ;;  %v8581_v21 = vadd.f32 %v3169_v5, %v9709_v47  ;;  %v9710_v5 = vld [vmem:[#allocation24_spill] sm:$0xff] }
 0x53d   :  { %5621 = vtanh.f32 %v1424_v38  ;;  %v2137_v48 = vpop.f32.mrf.mxu2  ;;  %v3632_v25 = vpop.f32.mrf.mxu0  ;;  %v8592_v15 = vadd.f32 %v2427_v29, %v8212_v26 }
 0x53e   :  { %v5618_v59 = vpop.eup %5617  ;;  %v3380_v62 = vpack.c.bf16 %v8581_v21, %v8578_v11  ;;  %5623 = vtanh.f32 %v2849_v39  ;;  %v2138_v33 = vadd.f32 %v8588_v56, %v2137_v48  ;;  %v3633_v47 = vadd.f32 %v8601_v58, %v3632_v25 }
 0x53f   :  { %v5620_v45 = vpop.eup %5619  ;;  %v2428_v2 = vmul.f32 0.1, %v5618_v59 }
 0x540   :  { %v2850_v63 = vpop.f32.mrf.mxu3  ;;  %3671 = vmatmul.bf16.gmra.mxu0 %v3380_v62  ;;  %v1686_v61 = vmul.f32 0.1, %v5620_v45 }
 0x541   :  { %v2851_v12 = vadd.f32 %v8588_v56, %v2850_v63  ;;  %v8596_v19 = vadd.f32 %v2428_v2, %v9710_v5  ;;  %v3856_v5 = vadd.f32 %v3633_v47, %v8270_v14 }
 0x542   :  { %v1426_v38 = vpop.f32.mrf.mxu1  ;;  %v8608_v2 = vadd.f32 %v1686_v61, %v8235_v34 }
 0x543   :  { %9711 = vst [vmem:[#allocation60_spill] sm:$0xff] %v8596_v19  ;;  %v5622_v39 = vpop.eup %5621  ;;  %5625 = vtanh.f32 %v2851_v12  ;;  %v2629_v26 = vpack.c.bf16 %v8596_v19, %v8592_v15  ;;  %v1427_v59 = vadd.f32 %v8588_v56, %v1426_v38 }
 0x544   :  { %v1687_v29 = vmul.f32 0.1, %v5622_v39  ;;  %5627 = vtanh.f32 %v2138_v33  ;;  %v5624_v48 = vpop.eup %5623 }
 0x545   :  { %v2139_v62 = vpop.f32.mrf.mxu2  ;;  %2892 = vmatmul.bf16.gmra.mxu3 %v2629_v26  ;;  %v3634_v45 = vpop.f32.mrf.mxu0  ;;  %v3170_v39 = vmul.f32 0.1, %v5624_v48 }
 0x546   :  { %v8611_v63 = vadd.f32 %v1687_v29, %v8239_v41  ;;  %v2140_v25 = vadd.f32 %v8588_v56, %v2139_v62  ;;  %v3635_v12 = vadd.f32 %v8601_v58, %v3634_v45 }
 0x547   :  { %v8622_v14 = vadd.f32 %v3170_v39, %v8243_v43 }
 0x548   :  { %5629 = vtanh.f32 %v2140_v25  ;;  %v3857_v33 = vadd.f32 %v3635_v12, %v8273_v3  ;;  %v2853_v38 = vpop.f32.mrf.mxu3  ;;  %v1878_v26 = vpack.c.bf16 %v8611_v63, %v8608_v2  ;;  %v9712_v3 = vld [vmem:[#allocation48_spill] sm:$0xff] }
 0x549   :  { %v5626_v19 = vpop.eup %5625  ;;  %5631 = vtanh.f32 %v1427_v59  ;;  %v2854_v62 = vadd.f32 %v8588_v56, %v2853_v38 }
 0x54a   :  { %v5628_v34 = vpop.eup %5627  ;;  %v3171_v61 = vmul.f32 0.1, %v5626_v19  ;;  %v4800_v41 = vpack.c.bf16 %v3857_v33, %v3856_v5  ;;  %v1428_v29 = vpop.f32.mrf.mxu1  ;;  %2181 = vmatmul.bf16.gmra.mxu2 %v1878_v26 }
 0x54b   :  { %v1429_v45 = vadd.f32 %v8588_v56, %v1428_v29  ;;  %v2429_v48 = vmul.f32 0.1, %v5628_v34  ;;  %v9713_v34 = vld [vmem:[#allocation49_spill] sm:$0xff] }
 0x54c   :  { %4986 = vst [vmem:[#allocation2 + $0xf0] sm:$0xff] %v4800_v41   ;;  %v8625_v47 = vadd.f32 %v3171_v61, %v9712_v3 }
 0x54d   :  { %5633 = vtanh.f32 %v1429_v45  ;;  %v2142_v25 = vpop.f32.mrf.mxu2  ;;  %v3637_v59 = vpop.f32.mrf.mxu0  ;;  %v8631_v43 = vadd.f32 %v2429_v48, %v8256_v50 }
 0x54e   :  { %v5630_v12 = vpop.eup %5629  ;;  %v3381_v19 = vpack.c.bf16 %v8625_v47, %v8622_v14  ;;  %5635 = vtanh.f32 %v2854_v62  ;;  %v2143_v38 = vadd.f32 %v8588_v56, %v2142_v25  ;;  %v3638_v3 = vadd.f32 %v8601_v58, %v3637_v59 }
 0x54f   :  { %v5632_v5 = vpop.eup %5631  ;;  %v2430_v33 = vmul.f32 0.1, %v5630_v12 }
 0x550   :  { %v2855_v26 = vpop.f32.mrf.mxu3  ;;  %3676 = vmatmul.bf16.gmra.mxu0 %v3381_v19  ;;  %v1688_v41 = vmul.f32 0.1, %v5632_v5 }
 0x551   :  { %v2856_v39 = vadd.f32 %v8588_v56, %v2855_v26  ;;  %v8635_v61 = vadd.f32 %v2430_v33, %v9713_v34 }
 0x552   :  { %v1431_v29 = vpop.f32.mrf.mxu1  ;;  %v8642_v33 = vadd.f32 %v1688_v41, %v8279_v36 }
 0x553   :  { %v5634_v45 = vpop.eup %5633  ;;  %5637 = vtanh.f32 %v2856_v39  ;;  %v2630_v62 = vpack.c.bf16 %v8635_v61, %v8631_v43  ;;  %v1432_v50 = vadd.f32 %v8588_v56, %v1431_v29  ;;  %v3858_v39 = vadd.f32 %v3638_v3, %v8314_v23 }
 0x554   :  { %v1689_v25 = vmul.f32 0.1, %v5634_v45  ;;  %5639 = vtanh.f32 %v2143_v38  ;;  %v5636_v12 = vpop.eup %5635 }
 0x555   :  { %v2144_v48 = vpop.f32.mrf.mxu2  ;;  %2897 = vmatmul.bf16.gmra.mxu3 %v2630_v62  ;;  %v3639_v19 = vpop.f32.mrf.mxu0  ;;  %v3172_v34 = vmul.f32 0.1, %v5636_v12 }
 0x556   :  { %v8645_v5 = vadd.f32 %v1689_v25, %v8283_v8  ;;  %v2145_v59 = vadd.f32 %v8588_v56, %v2144_v48  ;;  %v3640_v26 = vadd.f32 %v8601_v58, %v3639_v19 }
 0x557   :  { %v8656_v23 = vadd.f32 %v3172_v34, %v8287_v57 }
 0x558   :  { %5641 = vtanh.f32 %v2145_v59  ;;  %v3859_v38 = vadd.f32 %v3640_v26, %v8317_v18  ;;  %v2858_v29 = vpop.f32.mrf.mxu3  ;;  %v1879_v45 = vpack.c.bf16 %v8645_v5, %v8642_v33  ;;  %v9714_v18 = vld [vmem:[#allocation26_spill] sm:$0xff] }
 0x559   :  { %v5638_v62 = vpop.eup %5637  ;;  %5643 = vtanh.f32 %v1432_v50  ;;  %v2859_v48 = vadd.f32 %v8588_v56, %v2858_v29 }
 0x55a   :  { %v5640_v36 = vpop.eup %5639  ;;  %v3173_v41 = vmul.f32 0.1, %v5638_v62  ;;  %v4805_v8 = vpack.c.bf16 %v3859_v38, %v3858_v39  ;;  %v1433_v25 = vpop.f32.mrf.mxu1  ;;  %2186 = vmatmul.bf16.gmra.mxu2 %v1879_v45 }
 0x55b   :  { %v1434_v19 = vadd.f32 %v8588_v56, %v1433_v25  ;;  %v2431_v12 = vmul.f32 0.1, %v5640_v36  ;;  %v9715_v36 = vld [vmem:[#allocation25_spill] sm:$0xff] }
 0x55c   :  { %4987 = vst [vmem:[#allocation2 + $0xf8] sm:$0xff] %v4805_v8   ;;  %v8659_v3 = vadd.f32 %v3173_v41, %v9714_v18 }
 0x55d   :  { %5645 = vtanh.f32 %v1434_v19  ;;  %v2147_v59 = vpop.f32.mrf.mxu2  ;;  %v3642_v50 = vpop.f32.mrf.mxu0  ;;  %v8665_v57 = vadd.f32 %v2431_v12, %v8300_v20 }
 0x55e   :  { %v5642_v26 = vpop.eup %5641  ;;  %v3382_v39 = vpack.c.bf16 %v8659_v3, %v8656_v23  ;;  %5647 = vtanh.f32 %v2859_v48  ;;  %v2148_v29 = vadd.f32 %v8588_v56, %v2147_v59  ;;  %v3643_v18 = vadd.f32 %v8601_v58, %v3642_v50 }
 0x55f   :  { %v5644_v38 = vpop.eup %5643  ;;  %v2432_v45 = vmul.f32 0.1, %v5642_v26 }
 0x560   :  { %v2860_v62 = vpop.f32.mrf.mxu3  ;;  %3681 = vmatmul.bf16.gmra.mxu0 %v3382_v39  ;;  %v1690_v8 = vmul.f32 0.1, %v5644_v38 }
 0x561   :  { %v2861_v34 = vadd.f32 %v8588_v56, %v2860_v62  ;;  %v8669_v41 = vadd.f32 %v2432_v45, %v9715_v36 }
 0x562   :  { %v1436_v25 = vpop.f32.mrf.mxu1  ;;  %v8676_v45 = vadd.f32 %v1690_v8, %v8323_v17 }
 0x563   :  { %9716 = vst [vmem:[#allocation62_spill] sm:$0xff] %v8669_v41  ;;  %v5646_v19 = vpop.eup %5645  ;;  %5649 = vtanh.f32 %v2861_v34  ;;  %v2631_v48 = vpack.c.bf16 %v8669_v41, %v8665_v57  ;;  %v1437_v20 = vadd.f32 %v8588_v56, %v1436_v25  ;;  %v3860_v34 = vadd.f32 %v3643_v18, %v8358_v6  ;;  %v9720_v6 = vld [vmem:[#allocation21_spill] sm:$0xff] }
 0x564   :  { %v1691_v59 = vmul.f32 0.1, %v5646_v19  ;;  %5651 = vtanh.f32 %v2148_v29  ;;  %v5648_v26 = vpop.eup %5647  ;;  %9717 = vst [vmem:[#allocation38_spill] sm:$0xff] %v8676_v45  ;;  %v9719_v29 = vld [vmem:[#allocation28_spill] sm:$0xff] }
 0x565   :  { %v2149_v12 = vpop.f32.mrf.mxu2  ;;  %2902 = vmatmul.bf16.gmra.mxu3 %v2631_v48  ;;  %v3644_v39 = vpop.f32.mrf.mxu0  ;;  %v3174_v36 = vmul.f32 0.1, %v5648_v26  ;;  %v9721_v26 = vld [vmem:[#allocation19_spill] sm:$0xff] }
 0x566   :  { %v8679_v38 = vadd.f32 %v1691_v59, %v8327_v60  ;;  %v2150_v50 = vadd.f32 %v8588_v56, %v2149_v12  ;;  %v3645_v62 = vadd.f32 %v8601_v58, %v3644_v39 }
 0x567   :  { %v8690_v18 = vadd.f32 %v3174_v36, %v9720_v6  ;;  %v9722_v36 = vld [vmem:[#allocation51_spill] sm:$0xff] }
 0x568   :  { %9718 = vst [vmem:[#allocation32_spill] sm:$0xff] %v8679_v38  ;;  %5653 = vtanh.f32 %v2150_v50  ;;  %v3861_v19 = vadd.f32 %v3645_v62, %v9719_v29  ;;  %v2863_v25 = vpop.f32.mrf.mxu3  ;;  %v1880_v48 = vpack.c.bf16 %v8679_v38, %v8676_v45 }
 0x569   :  { %v5650_v41 = vpop.eup %5649  ;;  %5655 = vtanh.f32 %v1437_v20  ;;  %v2864_v12 = vadd.f32 %v8588_v56, %v2863_v25 }
 0x56a   :  { %v5652_v17 = vpop.eup %5651  ;;  %v3175_v8 = vmul.f32 0.1, %v5650_v41  ;;  %v4810_v60 = vpack.c.bf16 %v3861_v19, %v3860_v34  ;;  %v1438_v59 = vpop.f32.mrf.mxu1  ;;  %2191 = vmatmul.bf16.gmra.mxu2 %v1880_v48 }
 0x56b   :  { %v1439_v39 = vadd.f32 %v8588_v56, %v1438_v59  ;;  %v2433_v62 = vmul.f32 0.1, %v5652_v17 }
 0x56c   :  { %4988 = vst [vmem:[#allocation2 + $0x100] sm:$0xff] %v4810_v60   ;;  %v8693_v50 = vadd.f32 %v3175_v8, %v9721_v26  ;;  %v9723_v8 = vld [vmem:[#allocation53_spill] sm:$0xff] }
 0x56d   :  { %5657 = vtanh.f32 %v1439_v39  ;;  %v2152_v29 = vpop.f32.mrf.mxu2  ;;  %v3647_v20 = vpop.f32.mrf.mxu0  ;;  %v8699_v60 = vadd.f32 %v2433_v62, %v9722_v36 }
 0x56e   :  { %v5654_v38 = vpop.eup %5653  ;;  %v3383_v41 = vpack.c.bf16 %v8693_v50, %v8690_v18  ;;  %5659 = vtanh.f32 %v2864_v12  ;;  %v2153_v25 = vadd.f32 %v8588_v56, %v2152_v29  ;;  %v3648_v45 = vadd.f32 %v8601_v58, %v3647_v20 }
 0x56f   :  { %v5656_v34 = vpop.eup %5655  ;;  %v2434_v19 = vmul.f32 0.1, %v5654_v38 }
 0x570   :  { %v2865_v48 = vpop.f32.mrf.mxu3  ;;  %3686 = vmatmul.bf16.gmra.mxu0 %v3383_v41  ;;  %v1692_v39 = vmul.f32 0.1, %v5656_v34 }
 0x571   :  { %v8702_v59 = vadd.f32 %v2434_v19, %v9723_v8  ;;  %v2866_v17 = vadd.f32 %v8588_v56, %v2865_v48  ;;  %v3862_v8 = vadd.f32 %v3648_v45, %v8402_v1  ;;  %v9724_v1 = vld [vmem:[#allocation30_spill] sm:$0xff] }
 0x572   :  { %v1441_v6 = vpop.f32.mrf.mxu1  ;;  %v8710_v36 = vadd.f32 %v1692_v39, %v8367_v52 }
 0x573   :  { %v5658_v26 = vpop.eup %5657  ;;  %5661 = vtanh.f32 %v2866_v17  ;;  %v1442_v38 = vadd.f32 %v8588_v56, %v1441_v6  ;;  %v2632_v12 = vpack.c.bf16 %v8702_v59, %v8699_v60 }
 0x574   :  { %v1693_v29 = vmul.f32 0.1, %v5658_v26  ;;  %5663 = vtanh.f32 %v2153_v25  ;;  %v5660_v62 = vpop.eup %5659 }
 0x575   :  { %v2154_v41 = vpop.f32.mrf.mxu2  ;;  %2907 = vmatmul.bf16.gmra.mxu3 %v2632_v12  ;;  %v3649_v19 = vpop.f32.mrf.mxu0  ;;  %5665 = vtanh.f32 %v1442_v38  ;;  %v3176_v17 = vmul.f32 0.1, %v5660_v62 }
 0x576   :  { %v8713_v34 = vadd.f32 %v1693_v29, %v8371_v55  ;;  %v2155_v20 = vadd.f32 %v8588_v56, %v2154_v41  ;;  %v3650_v48 = vadd.f32 %v8601_v58, %v3649_v19 }
 0x577   :  { %v8723_v19 = vadd.f32 %v3176_v17, %v8375_v54  ;;  %v9725_v54 = vld [vmem:[#allocation23_spill] sm:$0xff] }
 0x578   :  { %5667 = vtanh.f32 %v2155_v20  ;;  %v3863_v25 = vadd.f32 %v3650_v48, %v8405_v44  ;;  %v2868_v6 = vpop.f32.mrf.mxu3  ;;  %v1881_v26 = vpack.c.bf16 %v8713_v34, %v8710_v36 }
 0x579   :  { %v5662_v52 = vpop.eup %5661  ;;  %v2869_v41 = vadd.f32 %v8588_v56, %v2868_v6 }
 0x57a   :  { %v5664_v39 = vpop.eup %5663  ;;  %v3177_v12 = vmul.f32 0.1, %v5662_v52  ;;  %v4815_v55 = vpack.c.bf16 %v3863_v25, %v3862_v8  ;;  %v1443_v29 = vpop.f32.mrf.mxu1  ;;  %2196 = vmatmul.bf16.gmra.mxu2 %v1881_v26 }
 0x57b   :  { %v5666_v44 = vpop.eup %5665  ;;  %v2435_v38 = vmul.f32 0.1, %v5664_v39  ;;  %5669 = vtanh.f32 %v2869_v41 }
 0x57c   :  { %4989 = vst [vmem:[#allocation2 + $0x108] sm:$0xff] %v4815_v55   ;;  %v8726_v45 = vadd.f32 %v3177_v12, %v9724_v1  ;;  %v1694_v25 = vmul.f32 0.1, %v5666_v44  ;;  %v9726_v12 = vld [vmem:[#allocation33_spill] sm:$0xff] }
 0x57d   :  { %v2157_v62 = vpop.f32.mrf.mxu2  ;;  %v3652_v20 = vpop.f32.mrf.mxu0  ;;  %v8732_v17 = vadd.f32 %v2435_v38, %v9725_v54 }
 0x57e   :  { %v5668_v48 = vpop.eup %5667  ;;  %v3384_v52 = vpack.c.bf16 %v8726_v45, %v8723_v19  ;;  %v2158_v6 = vadd.f32 %v8588_v56, %v2157_v62  ;;  %v3653_v29 = vadd.f32 %v8601_v58, %v3652_v20  ;;  %v8742_v41 = vadd.f32 %v1694_v25, %v8411_v24 }
 0x57f   :  { %v2436_v8 = vmul.f32 0.1, %v5668_v48 }
 0x580   :  { %v2870_v26 = vpop.f32.mrf.mxu3  ;;  %3691 = vmatmul.bf16.gmra.mxu0 %v3384_v52  ;;  %9727 = vst [vmem:[#allocation31_spill] sm:$0xff] %v8742_v41  ;;  %v1882_v24 = vpack.c.bf16 %v8742_v41, %v8742_v41 }
 0x581   :  { %v8735_v55 = vadd.f32 %v2436_v8, %v9726_v12  ;;  %v2871_v39 = vadd.f32 %v8588_v56, %v2870_v26  ;;  %v5670_v44 = vpop.eup %5669  ;;  %v3864_v8 = vadd.f32 %v3653_v29, %v8442_v35  ;;  %v9728_v35 = vld [vmem:[#allocation55_spill] sm:$0xff] }
 0x582   :  { %v3178_v26 = vmul.f32 0.1, %v5670_v44 }
 0x583   :  { %5671 = vtanh.f32 %v2871_v39  ;;  %v2633_v1 = vpack.c.bf16 %v8735_v55, %v8732_v17 }
 0x584   :  { %5673 = vtanh.f32 %v2158_v6 }
 0x585   :  { %v2159_v62 = vpop.f32.mrf.mxu2  ;;  %2912 = vmatmul.bf16.gmra.mxu3 %v2633_v1  ;;  %v3654_v38 = vpop.f32.mrf.mxu0 }
 0x586   :  { %v2160_v48 = vadd.f32 %v8588_v56, %v2159_v62  ;;  %v3655_v52 = vadd.f32 %v8601_v58, %v3654_v38  ;;  %v8752_v62 = vadd.f32 %v3178_v26, %v8415_v53  ;;  %v9731_v26 = vld [vmem:[#allocation35_spill] sm:$0xff] }
 0x588   :  { %5675 = vtanh.f32 %v2160_v48  ;;  %v3865_v20 = vadd.f32 %v3655_v52, %v8445_v37  ;;  %v2873_v54 = vpop.f32.mrf.mxu3 }
 0x589   :  { %v5672_v25 = vpop.eup %5671  ;;  %v2874_v1 = vadd.f32 %v8588_v56, %v2873_v54  ;;  %v9729_v54 = vld [vmem:[#allocation59_spill] sm:$0xff] }
 0x58a   :  { %v5674_v6 = vpop.eup %5673  ;;  %v3179_v12 = vmul.f32 0.1, %v5672_v25  ;;  %v4820_v39 = vpack.c.bf16 %v3865_v20, %v3864_v8  ;;  %2201 = vmatmul.bf16.gmra.mxu2 %v1882_v24 }
 0x58b   :  { %v2437_v44 = vmul.f32 0.1, %v5674_v6  ;;  %5677 = vtanh.f32 %v2874_v1 }
 0x58c   :  { %4990 = vst [vmem:[#allocation2 + $0x110] sm:$0xff] %v4820_v39   ;;  %v8755_v29 = vadd.f32 %v3179_v12, %v9728_v35 }
 0x58d   :  { %v2162_v37 = vpop.f32.mrf.mxu2  ;;  %v3657_v38 = vpop.f32.mrf.mxu0  ;;  %v8761_v53 = vadd.f32 %v2437_v44, %v9729_v54 }
 0x58e   :  { %v5676_v48 = vpop.eup %5675  ;;  %v3385_v52 = vpack.c.bf16 %v8755_v29, %v8752_v62  ;;  %v2163_v8 = vadd.f32 %v8588_v56, %v2162_v37  ;;  %v3658_v12 = vadd.f32 %v8601_v58, %v3657_v38 }
 0x58f   :  { %v2438_v41 = vmul.f32 0.1, %v5676_v48  ;;  %9730 = vst [vmem:[#allocation86_spill] sm:$0xff] %v8761_v53 }
 0x590   :  { %v2875_v20 = vpop.f32.mrf.mxu3  ;;  %3696 = vmatmul.bf16.gmra.mxu0 %v3385_v52 }
 0x591   :  { %v8764_v24 = vadd.f32 %v2438_v41, %v9731_v26  ;;  %v2876_v25 = vadd.f32 %v8588_v56, %v2875_v20  ;;  %v5678_v39 = vpop.eup %5677  ;;  %v3866_v41 = vadd.f32 %v3658_v12, %v8476_v42 }
 0x592   :  { %v3180_v48 = vmul.f32 0.1, %v5678_v39 }
 0x593   :  { %9732 = vst [vmem:[#allocation5_spill] sm:$0xff] %v8764_v24  ;;  %5679 = vtanh.f32 %v2876_v25  ;;  %v2634_v6 = vpack.c.bf16 %v8764_v24, %v8761_v53  ;;  %v9733_v24 = vld [vmem:[#allocation29_spill] sm:$0xff] }
 0x594   :  { %5681 = vtanh.f32 %v2163_v8 }
 0x595   :  { %v2164_v1 = vpop.f32.mrf.mxu2  ;;  %2917 = vmatmul.bf16.gmra.mxu3 %v2634_v6  ;;  %v3659_v35 = vpop.f32.mrf.mxu0  ;;  %v8776_v6 = vadd.f32 %v3180_v48, %v9733_v24  ;;  %v9736_v48 = vld [vmem:[#allocation37_spill] sm:$0xff] }
 0x596   :  { %v2165_v37 = vadd.f32 %v8588_v56, %v2164_v1  ;;  %v3660_v44 = vadd.f32 %v8601_v58, %v3659_v35  ;;  %v9734_v1 = vld [vmem:[#allocation87_spill] sm:$0xff] }
 0x598   :  { %5683 = vtanh.f32 %v2165_v37  ;;  %v3867_v52 = vadd.f32 %v3660_v44, %v8479_v9  ;;  %v2878_v20 = vpop.f32.mrf.mxu3 }
 0x599   :  { %v5680_v54 = vpop.eup %5679  ;;  %v2879_v38 = vadd.f32 %v8588_v56, %v2878_v20 }
 0x59a   :  { %v5682_v26 = vpop.eup %5681  ;;  %v3181_v8 = vmul.f32 0.1, %v5680_v54  ;;  %v4825_v25 = vpack.c.bf16 %v3867_v52, %v3866_v41  ;;  %v9735_v52 = vld [vmem:[#allocation27_spill] sm:$0xff] }
 0x59b   :  { %v2439_v39 = vmul.f32 0.1, %v5682_v26  ;;  %5685 = vtanh.f32 %v2879_v38 }
 0x59c   :  { %4991 = vst [vmem:[#allocation2 + $0x118] sm:$0xff] %v4825_v25   ;;  %v8779_v53 = vadd.f32 %v3181_v8, %v9734_v1 }
 0x59d   :  { %v2167_v35 = vpop.f32.mrf.mxu2  ;;  %v3662_v42 = vpop.f32.mrf.mxu0  ;;  %v8785_v24 = vadd.f32 %v2439_v39, %v9735_v52 }
 0x59e   :  { %v5684_v12 = vpop.eup %5683  ;;  %v3386_v9 = vpack.c.bf16 %v8779_v53, %v8776_v6  ;;  %v2168_v44 = vadd.f32 %v8588_v56, %v2167_v35  ;;  %v3663_v8 = vadd.f32 %v8601_v58, %v3662_v42 }
 0x59f   :  { %v2440_v37 = vmul.f32 0.1, %v5684_v12 }
 0x5a0   :  { %v2880_v41 = vpop.f32.mrf.mxu3  ;;  %3701 = vmatmul.bf16.gmra.mxu0 %v3386_v9  ;;  %v3868_v9 = vadd.f32 %v3663_v8, %v8510_v46 }
 0x5a1   :  { %v8788_v20 = vadd.f32 %v2440_v37, %v9736_v48  ;;  %v2881_v54 = vadd.f32 %v8588_v56, %v2880_v41  ;;  %v5686_v25 = vpop.eup %5685 }
 0x5a2   :  { %v3182_v12 = vmul.f32 0.1, %v5686_v25 }
 0x5a3   :  { %5687 = vtanh.f32 %v2881_v54  ;;  %v2635_v26 = vpack.c.bf16 %v8788_v20, %v8785_v24 }
 0x5a4   :  { %5689 = vtanh.f32 %v2168_v44 }
 0x5a5   :  { %v2169_v38 = vpop.f32.mrf.mxu2  ;;  %2922 = vmatmul.bf16.gmra.mxu3 %v2635_v26  ;;  %v3664_v1 = vpop.f32.mrf.mxu0  ;;  %v8800_v26 = vadd.f32 %v3182_v12, %v8485_v31 }
 0x5a6   :  { %v2170_v35 = vadd.f32 %v8588_v56, %v2169_v38  ;;  %v3665_v39 = vadd.f32 %v8601_v58, %v3664_v1 }
 0x5a8   :  { %5691 = vtanh.f32 %v2170_v35  ;;  %v3869_v37 = vadd.f32 %v3665_v39, %v8513_v7  ;;  %v2883_v41 = vpop.f32.mrf.mxu3 }
 0x5a9   :  { %v5688_v52 = vpop.eup %5687  ;;  %v2884_v42 = vadd.f32 %v8588_v56, %v2883_v41 }
 0x5aa   :  { %v5690_v48 = vpop.eup %5689  ;;  %v3183_v44 = vmul.f32 0.1, %v5688_v52  ;;  %v4830_v54 = vpack.c.bf16 %v3869_v37, %v3868_v9 }
 0x5ab   :  { %v2441_v25 = vmul.f32 0.1, %v5690_v48  ;;  %5693 = vtanh.f32 %v2884_v42 }
 0x5ac   :  { %4992 = vst [vmem:[#allocation2 + $0x120] sm:$0xff] %v4830_v54   ;;  %v8803_v38 = vadd.f32 %v3183_v44, %v8489_v0 }
 0x5ad   :  { %v2172_v1 = vpop.f32.mrf.mxu2  ;;  %v3667_v46 = vpop.f32.mrf.mxu0  ;;  %v8809_v31 = vadd.f32 %v2441_v25, %v8496_v22 }
 0x5ae   :  { %v5692_v8 = vpop.eup %5691  ;;  %v3387_v7 = vpack.c.bf16 %v8803_v38, %v8800_v26  ;;  %v2173_v39 = vadd.f32 %v8588_v56, %v2172_v1  ;;  %v3668_v41 = vadd.f32 %v8601_v58, %v3667_v46 }
 0x5af   :  { %v2442_v35 = vmul.f32 0.1, %v5692_v8 }
 0x5b0   :  { %v2885_v9 = vpop.f32.mrf.mxu3  ;;  %3706 = vmatmul.bf16.gmra.mxu0 %v3387_v7 }
 0x5b1   :  { %v8812_v12 = vadd.f32 %v2442_v35, %v8499_v27  ;;  %v2886_v0 = vadd.f32 %v8588_v56, %v2885_v9  ;;  %v5694_v52 = vpop.eup %5693  ;;  %v3870_v27 = vadd.f32 %v3668_v41, %v8544_v40 }
 0x5b2   :  { %v3184_v42 = vmul.f32 0.1, %v5694_v52 }
 0x5b3   :  { %5695 = vtanh.f32 %v2886_v0  ;;  %v2636_v37 = vpack.c.bf16 %v8812_v12, %v8809_v31 }
 0x5b4   :  { %5697 = vtanh.f32 %v2173_v39  ;;  %v8824_v9 = vadd.f32 %v3184_v42, %v8519_v30 }
 0x5b5   :  { %v2174_v48 = vpop.f32.mrf.mxu2  ;;  %2927 = vmatmul.bf16.gmra.mxu3 %v2636_v37  ;;  %v3669_v44 = vpop.f32.mrf.mxu0 }
 0x5b6   :  { %v2175_v54 = vadd.f32 %v8588_v56, %v2174_v48  ;;  %v3670_v22 = vadd.f32 %v8601_v58, %v3669_v44 }
 0x5b8   :  { %5699 = vtanh.f32 %v2175_v54  ;;  %v3871_v25 = vadd.f32 %v3670_v22, %v8547_v49  ;;  %v2888_v1 = vpop.f32.mrf.mxu3 }
 0x5b9   :  { %v5696_v8 = vpop.eup %5695  ;;  %v2889_v46 = vadd.f32 %v8588_v56, %v2888_v1 }
 0x5ba   :  { %v5698_v7 = vpop.eup %5697  ;;  %v3185_v35 = vmul.f32 0.1, %v5696_v8  ;;  %v4835_v39 = vpack.c.bf16 %v3871_v25, %v3870_v27 }
 0x5bb   :  { %v2443_v37 = vmul.f32 0.1, %v5698_v7  ;;  %5701 = vtanh.f32 %v2889_v46 }
 0x5bc   :  { %4993 = vst [vmem:[#allocation2 + $0x128] sm:$0xff] %v4835_v39   ;;  %v8827_v0 = vadd.f32 %v3185_v35, %v8523_v4 }
 0x5bd   :  { %v2177_v52 = vpop.f32.mrf.mxu2  ;;  %v3672_v40 = vpop.f32.mrf.mxu0  ;;  %v8833_v30 = vadd.f32 %v2443_v37, %v8530_v32 }
 0x5be   :  { %v5700_v41 = vpop.eup %5699  ;;  %v3388_v49 = vpack.c.bf16 %v8827_v0, %v8824_v9  ;;  %v2178_v44 = vadd.f32 %v8588_v56, %v2177_v52  ;;  %v3673_v27 = vadd.f32 %v8601_v58, %v3672_v40 }
 0x5bf   :  { %v2444_v48 = vmul.f32 0.1, %v5700_v41 }
 0x5c0   :  { %v2890_v54 = vpop.f32.mrf.mxu3  ;;  %3711 = vmatmul.bf16.gmra.mxu0 %v3388_v49 }
 0x5c1   :  { %v8836_v22 = vadd.f32 %v2444_v48, %v8533_v16  ;;  %v2891_v4 = vadd.f32 %v8588_v56, %v2890_v54  ;;  %v5702_v25 = vpop.eup %5701  ;;  %v3872_v16 = vadd.f32 %v3673_v27, %v8578_v11 }
 0x5c2   :  { %v3186_v35 = vmul.f32 0.1, %v5702_v25 }
 0x5c3   :  { %5703 = vtanh.f32 %v2891_v4  ;;  %v2637_v42 = vpack.c.bf16 %v8836_v22, %v8833_v30 }
 0x5c4   :  { %5705 = vtanh.f32 %v2178_v44  ;;  %v8848_v48 = vadd.f32 %v3186_v35, %v8553_v51 }
 0x5c5   :  { %v2179_v1 = vpop.f32.mrf.mxu2  ;;  %2932 = vmatmul.bf16.gmra.mxu3 %v2637_v42  ;;  %v3674_v8 = vpop.f32.mrf.mxu0 }
 0x5c6   :  { %v2180_v7 = vadd.f32 %v8588_v56, %v2179_v1  ;;  %v3675_v32 = vadd.f32 %v8601_v58, %v3674_v8 }
 0x5c8   :  { %5707 = vtanh.f32 %v2180_v7  ;;  %v3873_v39 = vadd.f32 %v3675_v32, %v8581_v21  ;;  %v2893_v46 = vpop.f32.mrf.mxu3 }
 0x5c9   :  { %v5704_v37 = vpop.eup %5703  ;;  %v2894_v40 = vadd.f32 %v8588_v56, %v2893_v46 }
 0x5ca   :  { %v5706_v52 = vpop.eup %5705  ;;  %v3187_v41 = vmul.f32 0.1, %v5704_v37  ;;  %v4840_v49 = vpack.c.bf16 %v3873_v39, %v3872_v16 }
 0x5cb   :  { %v2445_v54 = vmul.f32 0.1, %v5706_v52  ;;  %5709 = vtanh.f32 %v2894_v40 }
 0x5cc   :  { %4994 = vst [vmem:[#allocation2 + $0x130] sm:$0xff] %v4840_v49   ;;  %v8851_v44 = vadd.f32 %v3187_v41, %v8557_v28 }
 0x5cd   :  { %v2182_v4 = vpop.f32.mrf.mxu2  ;;  %v3677_v11 = vpop.f32.mrf.mxu0  ;;  %v8857_v51 = vadd.f32 %v2445_v54, %v8564_v13 }
 0x5ce   :  { %v5708_v42 = vpop.eup %5707  ;;  %v3389_v21 = vpack.c.bf16 %v8851_v44, %v8848_v48  ;;  %v2183_v25 = vadd.f32 %v8588_v56, %v2182_v4  ;;  %v3678_v32 = vadd.f32 %v8601_v58, %v3677_v11 }
 0x5cf   :  { %v2446_v27 = vmul.f32 0.1, %v5708_v42 }
 0x5d0   :  { %v2895_v1 = vpop.f32.mrf.mxu3  ;;  %3716 = vmatmul.bf16.gmra.mxu0 %v3389_v21  ;;  %v9737_v21 = vld [vmem:[#allocation60_spill] sm:$0xff] }
 0x5d1   :  { %v8860_v8 = vadd.f32 %v2446_v27, %v8567_v10  ;;  %v2896_v28 = vadd.f32 %v8588_v56, %v2895_v1  ;;  %v5710_v35 = vpop.eup %5709  ;;  %v3874_v10 = vadd.f32 %v3678_v32, %v8622_v14 }
 0x5d2   :  { %v3188_v37 = vmul.f32 0.1, %v5710_v35 }
 0x5d3   :  { %5711 = vtanh.f32 %v2896_v28  ;;  %v2638_v7 = vpack.c.bf16 %v8860_v8, %v8857_v51 }
 0x5d4   :  { %5713 = vtanh.f32 %v2183_v25  ;;  %v8872_v42 = vadd.f32 %v3188_v37, %v8592_v15 }
 0x5d5   :  { %v2184_v16 = vpop.f32.mrf.mxu2  ;;  %2937 = vmatmul.bf16.gmra.mxu3 %v2638_v7  ;;  %v3679_v39 = vpop.f32.mrf.mxu0 }
 0x5d6   :  { %v2185_v46 = vadd.f32 %v8588_v56, %v2184_v16  ;;  %v3680_v13 = vadd.f32 %v8601_v58, %v3679_v39 }
 0x5d8   :  { %5715 = vtanh.f32 %v2185_v46  ;;  %v3875_v52 = vadd.f32 %v3680_v13, %v8625_v47  ;;  %v2898_v41 = vpop.f32.mrf.mxu3 }
 0x5d9   :  { %v5712_v49 = vpop.eup %5711  ;;  %v2899_v11 = vadd.f32 %v8588_v56, %v2898_v41 }
 0x5da   :  { %v5714_v40 = vpop.eup %5713  ;;  %v3189_v54 = vmul.f32 0.1, %v5712_v49  ;;  %v4845_v4 = vpack.c.bf16 %v3875_v52, %v3874_v10 }
 0x5db   :  { %v2447_v25 = vmul.f32 0.1, %v5714_v40  ;;  %5717 = vtanh.f32 %v2899_v11 }
 0x5dc   :  { %4995 = vst [vmem:[#allocation2 + $0x138] sm:$0xff] %v4845_v4   ;;  %v8875_v27 = vadd.f32 %v3189_v54, %v9737_v21 }
 0x5dd   :  { %v2187_v1 = vpop.f32.mrf.mxu2  ;;  %v3682_v14 = vpop.f32.mrf.mxu0  ;;  %v8881_v15 = vadd.f32 %v2447_v25, %v8608_v2 }
 0x5de   :  { %v5716_v28 = vpop.eup %5715  ;;  %v3390_v47 = vpack.c.bf16 %v8875_v27, %v8872_v42  ;;  %v2188_v32 = vadd.f32 %v8588_v56, %v2187_v1  ;;  %v3683_v13 = vadd.f32 %v8601_v58, %v3682_v14 }
 0x5df   :  { %v2448_v7 = vmul.f32 0.1, %v5716_v28 }
 0x5e0   :  { %v2900_v35 = vpop.f32.mrf.mxu3  ;;  %3721 = vmatmul.bf16.gmra.mxu0 %v3390_v47 }
 0x5e1   :  { %v8884_v16 = vadd.f32 %v2448_v7, %v8611_v63  ;;  %v2901_v39 = vadd.f32 %v8588_v56, %v2900_v35  ;;  %v5718_v37 = vpop.eup %5717  ;;  %v3876_v63 = vadd.f32 %v3683_v13, %v8656_v23 }
 0x5e2   :  { %v3190_v49 = vmul.f32 0.1, %v5718_v37 }
 0x5e3   :  { %5719 = vtanh.f32 %v2901_v39  ;;  %v2639_v46 = vpack.c.bf16 %v8884_v16, %v8881_v15 }
 0x5e4   :  { %5721 = vtanh.f32 %v2188_v32  ;;  %v8896_v14 = vadd.f32 %v3190_v49, %v8631_v43 }
 0x5e5   :  { %v2189_v10 = vpop.f32.mrf.mxu2  ;;  %2942 = vmatmul.bf16.gmra.mxu3 %v2639_v46  ;;  %v3684_v52 = vpop.f32.mrf.mxu0 }
 0x5e6   :  { %v2190_v41 = vadd.f32 %v8588_v56, %v2189_v10  ;;  %v3685_v2 = vadd.f32 %v8601_v58, %v3684_v52 }
 0x5e8   :  { %5723 = vtanh.f32 %v2190_v41  ;;  %v3877_v40 = vadd.f32 %v3685_v2, %v8659_v3  ;;  %v2903_v54 = vpop.f32.mrf.mxu3 }
 0x5e9   :  { %v5720_v4 = vpop.eup %5719  ;;  %v2904_v1 = vadd.f32 %v8588_v56, %v2903_v54 }
 0x5ea   :  { %v5722_v11 = vpop.eup %5721  ;;  %v3191_v21 = vmul.f32 0.1, %v5720_v4  ;;  %v4850_v25 = vpack.c.bf16 %v3877_v40, %v3876_v63 }
 0x5eb   :  { %v2449_v47 = vmul.f32 0.1, %v5722_v11  ;;  %5725 = vtanh.f32 %v2904_v1 }
 0x5ec   :  { %4996 = vst [vmem:[#allocation2 + $0x140] sm:$0xff] %v4850_v25   ;;  %v8899_v28 = vadd.f32 %v3191_v21, %v8635_v61 }
 0x5ed   :  { %v2192_v7 = vpop.f32.mrf.mxu2  ;;  %v3687_v23 = vpop.f32.mrf.mxu0  ;;  %v8905_v43 = vadd.f32 %v2449_v47, %v8642_v33 }
 0x5ee   :  { %v5724_v32 = vpop.eup %5723  ;;  %v3391_v3 = vpack.c.bf16 %v8899_v28, %v8896_v14  ;;  %v2193_v39 = vadd.f32 %v8588_v56, %v2192_v7  ;;  %v3688_v10 = vadd.f32 %v8601_v58, %v3687_v23  ;;  %v9738_v7 = vld [vmem:[#allocation62_spill] sm:$0xff] }
 0x5ef   :  { %v2450_v35 = vmul.f32 0.1, %v5724_v32 }
 0x5f0   :  { %v2905_v46 = vpop.f32.mrf.mxu3  ;;  %3726 = vmatmul.bf16.gmra.mxu0 %v3391_v3 }
 0x5f1   :  { %v8908_v13 = vadd.f32 %v2450_v35, %v8645_v5  ;;  %v2906_v61 = vadd.f32 %v8588_v56, %v2905_v46  ;;  %v5726_v52 = vpop.eup %5725  ;;  %v3878_v5 = vadd.f32 %v3688_v10, %v8690_v18  ;;  %v9740_v10 = vld [vmem:[#allocation32_spill] sm:$0xff] }
 0x5f2   :  { %v3192_v63 = vmul.f32 0.1, %v5726_v52 }
 0x5f3   :  { %5727 = vtanh.f32 %v2906_v61  ;;  %v2640_v37 = vpack.c.bf16 %v8908_v13, %v8905_v43 }
 0x5f4   :  { %5729 = vtanh.f32 %v2193_v39  ;;  %v8920_v47 = vadd.f32 %v3192_v63, %v8665_v57 }
 0x5f5   :  { %v2194_v41 = vpop.f32.mrf.mxu2  ;;  %2947 = vmatmul.bf16.gmra.mxu3 %v2640_v37  ;;  %v3689_v2 = vpop.f32.mrf.mxu0  ;;  %v9739_v37 = vld [vmem:[#allocation38_spill] sm:$0xff] }
 0x5f6   :  { %v2195_v49 = vadd.f32 %v8588_v56, %v2194_v41  ;;  %v3690_v33 = vadd.f32 %v8601_v58, %v3689_v2 }
 0x5f8   :  { %5731 = vtanh.f32 %v2195_v49  ;;  %v3879_v40 = vadd.f32 %v3690_v33, %v8693_v50  ;;  %v2908_v54 = vpop.f32.mrf.mxu3 }
 0x5f9   :  { %v5728_v4 = vpop.eup %5727  ;;  %v2909_v1 = vadd.f32 %v8588_v56, %v2908_v54 }
 0x5fa   :  { %v5730_v11 = vpop.eup %5729  ;;  %v3193_v21 = vmul.f32 0.1, %v5728_v4  ;;  %v4855_v25 = vpack.c.bf16 %v3879_v40, %v3878_v5 }
 0x5fb   :  { %v2451_v32 = vmul.f32 0.1, %v5730_v11  ;;  %5733 = vtanh.f32 %v2909_v1 }
 0x5fc   :  { %4997 = vst [vmem:[#allocation2 + $0x148] sm:$0xff] %v4855_v25   ;;  %v8923_v23 = vadd.f32 %v3193_v21, %v9738_v7 }
 0x5fd   :  { %v2197_v3 = vpop.f32.mrf.mxu2  ;;  %v3692_v18 = vpop.f32.mrf.mxu0  ;;  %v8929_v57 = vadd.f32 %v2451_v32, %v9739_v37 }
 0x5fe   :  { %v5732_v35 = vpop.eup %5731  ;;  %v3392_v50 = vpack.c.bf16 %v8923_v23, %v8920_v47  ;;  %v2198_v46 = vadd.f32 %v8588_v56, %v2197_v3  ;;  %v3693_v49 = vadd.f32 %v8601_v58, %v3692_v18  ;;  %v8945_v18 = vld [vmem:[%s9165_s4] ss:$0 sm:$0xff] }
 0x5ff   :  { %v2452_v39 = vmul.f32 0.1, %v5732_v35 }
 0x600   :  { %v2910_v61 = vpop.f32.mrf.mxu3  ;;  %3731 = vmatmul.bf16.gmra.mxu0 %v3392_v50  ;;  %v3880_v11 = vadd.f32 %v3693_v49, %v8723_v19  ;;  %v8969_v49 = vld [vmem:[%s9167_s6] ss:$0 sm:$0xff]  ;;  %s5825_s6 = smov [#allocation2]  }
 0x601   :  { %v8932_v52 = vadd.f32 %v2452_v39, %v9740_v10  ;;  %v2911_v41 = vadd.f32 %v8588_v56, %v2910_v61  ;;  %v5734_v33 = vpop.eup %5733  ;;  %s4175_s16 = sshll.u32 %s5825_s6, 4  ;;  %s4176_s16 = int_to_ptr.vmem [resolvable:$true] %s4175_s16 }
 0x602   :  { %v3194_v4 = vmul.f32 0.1, %v5734_v33 }
 0x603   :  { %5735 = vtanh.f32 %v2911_v41  ;;  %v2641_v2 = vpack.c.bf16 %v8932_v52, %v8929_v57 }
 0x604   :  { %5737 = vtanh.f32 %v2198_v46 }
 0x605   :  { %v2199_v63 = vpop.f32.mrf.mxu2  ;;  %2952 = vmatmul.bf16.gmra.mxu3 %v2641_v2  ;;  %v3694_v5 = vpop.f32.mrf.mxu0 }
 0x606   :  { %v2200_v40 = vadd.f32 %v8588_v56, %v2199_v63  ;;  %v3695_v54 = vadd.f32 %v8601_v58, %v3694_v5  ;;  %v8949_v58 = vadd.f32 %v3194_v4, %v8699_v60 }
 0x608   :  { %5739 = vtanh.f32 %v2200_v40  ;;  %v3881_v21 = vadd.f32 %v3695_v54, %v8726_v45  ;;  %v2913_v25 = vpop.f32.mrf.mxu3 }
 0x609   :  { %v5736_v1 = vpop.eup %5735  ;;  %v2914_v56 = vadd.f32 %v8945_v18, %v2913_v25 }
 0x60a   :  { %v5738_v7 = vpop.eup %5737  ;;  %v3195_v32 = vmul.f32 0.1, %v5736_v1  ;;  %v4860_v3 = vpack.c.bf16 %v3881_v21, %v3880_v11 }
 0x60b   :  { %v2453_v45 = vmul.f32 0.1, %v5738_v7  ;;  %5741 = vtanh.f32 %v2914_v56 }
 0x60c   :  { %4998 = vst [vmem:[#allocation2 + $0x150] sm:$0xff] %v4860_v3   ;;  %v8952_v19 = vadd.f32 %v3195_v32, %v8702_v59 }
 0x60d   :  { %v2202_v35 = vpop.f32.mrf.mxu2  ;;  %v3697_v50 = vpop.f32.mrf.mxu0  ;;  %v8958_v60 = vadd.f32 %v2453_v45, %v8710_v36 }
 0x60e   :  { %v5740_v39 = vpop.eup %5739  ;;  %v2203_v46 = vadd.f32 %v8945_v18, %v2202_v35  ;;  %v3393_v61 = vpack.c.bf16 %v8952_v19, %v8949_v58  ;;  %v3698_v33 = vadd.f32 %v8969_v49, %v3697_v50  ;;  %v9741_v50 = vld [vmem:[#allocation31_spill] sm:$0xff] }
 0x60f   :  { %v2454_v37 = vmul.f32 0.1, %v5740_v39 }
 0x610   :  { %v2915_v10 = vpop.f32.mrf.mxu3  ;;  %3736 = vmatmul.bf16.gmra.mxu0 %v3393_v61  ;;  %5743 = vtanh.f32 %v2203_v46  ;;  %v3882_v4 = vadd.f32 %v3698_v33, %v8752_v62 }
 0x611   :  { %v8961_v41 = vadd.f32 %v2454_v37, %v8713_v34  ;;  %v2916_v59 = vadd.f32 %v8945_v18, %v2915_v10  ;;  %v5742_v63 = vpop.eup %5741 }
 0x612   :  { %v3196_v54 = vmul.f32 0.1, %v5742_v63 }
 0x613   :  { %5745 = vtanh.f32 %v2916_v59  ;;  %v2642_v2 = vpack.c.bf16 %v8961_v41, %v8958_v60 }
 0x614   :  { %v8977_v56 = vadd.f32 %v3196_v54, %v8732_v17  ;;  %v9742_v54 = vld [vmem:[#allocation86_spill] sm:$0xff] }
 0x615   :  { %v2204_v36 = vpop.f32.mrf.mxu2  ;;  %2957 = vmatmul.bf16.gmra.mxu3 %v2642_v2  ;;  %v3699_v5 = vpop.f32.mrf.mxu0 }
 0x616   :  { %v3700_v34 = vadd.f32 %v8969_v49, %v3699_v5  ;;  %v5744_v40 = vpop.eup %5743 }
 0x617   :  { %v2455_v32 = vmul.f32 0.1, %v5744_v40 }
 0x618   :  { %v3883_v11 = vadd.f32 %v3700_v34, %v8755_v29  ;;  %v2918_v21 = vpop.f32.mrf.mxu3 }
 0x619   :  { %v5746_v25 = vpop.eup %5745  ;;  %v2919_v3 = vadd.f32 %v8945_v18, %v2918_v21  ;;  %v8985_v29 = vadd.f32 %v2455_v32, %v9741_v50 }
 0x61a   :  { %v3197_v1 = vmul.f32 0.1, %v5746_v25  ;;  %v4865_v7 = vpack.c.bf16 %v3883_v11, %v3882_v4  ;;  %v9743_v11 = vld [vmem:[#allocation5_spill] sm:$0xff] }
 0x61b   :  { %5747 = vtanh.f32 %v2919_v3  ;;  %v2643_v17 = vpack.c.bf16 %v8985_v29, %v8985_v29 }
 0x61c   :  { %v8980_v45 = vadd.f32 %v3197_v1, %v8735_v55  ;;  %4999 = vst [vmem:[#allocation2 + $0x158] sm:$0xff] %v4865_v7  }
 0x61d   :  { %v3702_v35 = vpop.f32.mrf.mxu0 }
 0x61e   :  { %v3394_v62 = vpack.c.bf16 %v8980_v45, %v8977_v56  ;;  %v3703_v55 = vadd.f32 %v8969_v49, %v3702_v35 }
 0x620   :  { %v2920_v39 = vpop.f32.mrf.mxu3  ;;  %3741 = vmatmul.bf16.gmra.mxu0 %v3394_v62  ;;  %v3884_v2 = vadd.f32 %v3703_v55, %v8776_v6 }
 0x621   :  { %v2921_v46 = vadd.f32 %v8945_v18, %v2920_v39  ;;  %v5748_v61 = vpop.eup %5747 }
 0x622   :  { %v3198_v59 = vmul.f32 0.1, %v5748_v61 }
 0x623   :  { %5749 = vtanh.f32 %v2921_v46 }
 0x624   :  { %v8996_v4 = vadd.f32 %v3198_v59, %v9742_v54 }
 0x625   :  { %2962 = vmatmul.bf16.gmra.mxu3 %v2643_v17  ;;  %v3704_v37 = vpop.f32.mrf.mxu0 }
 0x626   :  { %v3705_v10 = vadd.f32 %v8969_v49, %v3704_v37 }
 0x628   :  { %v3885_v33 = vadd.f32 %v3705_v10, %v8779_v53  ;;  %v2923_v63 = vpop.f32.mrf.mxu3 }
 0x629   :  { %v5750_v36 = vpop.eup %5749  ;;  %v2924_v40 = vadd.f32 %v8945_v18, %v2923_v63 }
 0x62a   :  { %v3199_v5 = vmul.f32 0.1, %v5750_v36  ;;  %v4870_v34 = vpack.c.bf16 %v3885_v33, %v3884_v2 }
 0x62b   :  { %5751 = vtanh.f32 %v2924_v40 }
 0x62c   :  { %v8999_v21 = vadd.f32 %v3199_v5, %v9743_v11  ;;  %5000 = vst [vmem:[#allocation2 + $0x160] sm:$0xff] %v4870_v34  }
 0x62d   :  { %v3707_v25 = vpop.f32.mrf.mxu0 }
 0x62e   :  { %v3395_v1 = vpack.c.bf16 %v8999_v21, %v8996_v4  ;;  %v3708_v7 = vadd.f32 %v8969_v49, %v3707_v25 }
 0x630   :  { %v2925_v6 = vpop.f32.mrf.mxu3  ;;  %3746 = vmatmul.bf16.gmra.mxu0 %v3395_v1  ;;  %v3886_v50 = vadd.f32 %v3708_v7, %v8800_v26 }
 0x631   :  { %v2926_v53 = vadd.f32 %v8945_v18, %v2925_v6  ;;  %v5752_v32 = vpop.eup %5751 }
 0x632   :  { %v3200_v62 = vmul.f32 0.1, %v5752_v32 }
 0x633   :  { %5753 = vtanh.f32 %v2926_v53 }
 0x634   :  { %v9010_v10 = vadd.f32 %v3200_v62, %v8785_v24 }
 0x635   :  { %v3709_v3 = vpop.f32.mrf.mxu0 }
 0x636   :  { %v3710_v35 = vadd.f32 %v8969_v49, %v3709_v3 }
 0x638   :  { %v3887_v39 = vadd.f32 %v3710_v35, %v8803_v38  ;;  %v2928_v46 = vpop.f32.mrf.mxu3 }
 0x639   :  { %v5754_v17 = vpop.eup %5753  ;;  %v2929_v37 = vadd.f32 %v8945_v18, %v2928_v46 }
 0x63a   :  { %v3201_v55 = vmul.f32 0.1, %v5754_v17  ;;  %v4875_v61 = vpack.c.bf16 %v3887_v39, %v3886_v50 }
 0x63b   :  { %5755 = vtanh.f32 %v2929_v37 }
 0x63c   :  { %v9013_v59 = vadd.f32 %v3201_v55, %v8788_v20  ;;  %5001 = vst [vmem:[#allocation2 + $0x168] sm:$0xff] %v4875_v61  }
 0x63d   :  { %v3712_v2 = vpop.f32.mrf.mxu0 }
 0x63e   :  { %v3396_v33 = vpack.c.bf16 %v9013_v59, %v9010_v10  ;;  %v3713_v63 = vadd.f32 %v8969_v49, %v3712_v2 }
 0x640   :  { %v2930_v26 = vpop.f32.mrf.mxu3  ;;  %3751 = vmatmul.bf16.gmra.mxu0 %v3396_v33  ;;  %v3888_v20 = vadd.f32 %v3713_v63, %v8824_v9 }
 0x641   :  { %v2931_v38 = vadd.f32 %v8945_v18, %v2930_v26  ;;  %v5756_v36 = vpop.eup %5755 }
 0x642   :  { %v3202_v34 = vmul.f32 0.1, %v5756_v36 }
 0x643   :  { %5757 = vtanh.f32 %v2931_v38 }
 0x644   :  { %v9024_v53 = vadd.f32 %v3202_v34, %v8809_v31 }
 0x645   :  { %v3714_v5 = vpop.f32.mrf.mxu0 }
 0x646   :  { %v3715_v24 = vadd.f32 %v8969_v49, %v3714_v5 }
 0x648   :  { %v3889_v40 = vadd.f32 %v3715_v24, %v8827_v0  ;;  %v2933_v54 = vpop.f32.mrf.mxu3 }
 0x649   :  { %v5758_v11 = vpop.eup %5757  ;;  %v2934_v6 = vadd.f32 %v8945_v18, %v2933_v54 }
 0x64a   :  { %v3203_v25 = vmul.f32 0.1, %v5758_v11  ;;  %v4880_v1 = vpack.c.bf16 %v3889_v40, %v3888_v20 }
 0x64b   :  { %5759 = vtanh.f32 %v2934_v6 }
 0x64c   :  { %v9027_v7 = vadd.f32 %v3203_v25, %v8812_v12  ;;  %5002 = vst [vmem:[#allocation2 + $0x170] sm:$0xff] %v4880_v1  }
 0x64d   :  { %v3717_v32 = vpop.f32.mrf.mxu0 }
 0x64e   :  { %v3397_v3 = vpack.c.bf16 %v9027_v7, %v9024_v53  ;;  %v3718_v35 = vadd.f32 %v8969_v49, %v3717_v32 }
 0x650   :  { %v2935_v9 = vpop.f32.mrf.mxu3  ;;  %3756 = vmatmul.bf16.gmra.mxu0 %v3397_v3  ;;  %v3890_v12 = vadd.f32 %v3718_v35, %v8848_v48 }
 0x651   :  { %v2936_v0 = vadd.f32 %v8945_v18, %v2935_v9  ;;  %v5760_v62 = vpop.eup %5759 }
 0x652   :  { %v3204_v39 = vmul.f32 0.1, %v5760_v62 }
 0x653   :  { %5761 = vtanh.f32 %v2936_v0 }
 0x654   :  { %v9038_v33 = vadd.f32 %v3204_v39, %v8833_v30 }
 0x655   :  { %v3719_v50 = vpop.f32.mrf.mxu0 }
 0x656   :  { %v3720_v31 = vadd.f32 %v8969_v49, %v3719_v50 }
 0x658   :  { %v3891_v46 = vadd.f32 %v3720_v31, %v8851_v44  ;;  %v2938_v17 = vpop.f32.mrf.mxu3 }
 0x659   :  { %v5762_v55 = vpop.eup %5761  ;;  %v2939_v2 = vadd.f32 %v8945_v18, %v2938_v17 }
 0x65a   :  { %v3205_v61 = vmul.f32 0.1, %v5762_v55  ;;  %v4885_v37 = vpack.c.bf16 %v3891_v46, %v3890_v12 }
 0x65b   :  { %5763 = vtanh.f32 %v2939_v2 }
 0x65c   :  { %v9041_v26 = vadd.f32 %v3205_v61, %v8836_v22  ;;  %5003 = vst [vmem:[#allocation2 + $0x178] sm:$0xff] %v4885_v37  }
 0x65d   :  { %v3722_v38 = vpop.f32.mrf.mxu0 }
 0x65e   :  { %v3398_v63 = vpack.c.bf16 %v9041_v26, %v9038_v33  ;;  %v3723_v36 = vadd.f32 %v8969_v49, %v3722_v38 }
 0x660   :  { %v2940_v48 = vpop.f32.mrf.mxu3  ;;  %3761 = vmatmul.bf16.gmra.mxu0 %v3398_v63  ;;  %v3892_v22 = vadd.f32 %v3723_v36, %v8872_v42 }
 0x661   :  { %v2941_v44 = vadd.f32 %v8945_v18, %v2940_v48  ;;  %v5764_v5 = vpop.eup %5763 }
 0x662   :  { %v3206_v34 = vmul.f32 0.1, %v5764_v5 }
 0x663   :  { %5765 = vtanh.f32 %v2941_v44 }
 0x664   :  { %v9052_v6 = vadd.f32 %v3206_v34, %v8857_v51 }
 0x665   :  { %v3724_v24 = vpop.f32.mrf.mxu0 }
 0x666   :  { %v3725_v30 = vadd.f32 %v8969_v49, %v3724_v24 }
 0x668   :  { %v3893_v20 = vadd.f32 %v3725_v30, %v8875_v27  ;;  %v2943_v40 = vpop.f32.mrf.mxu3 }
 0x669   :  { %v5766_v54 = vpop.eup %5765  ;;  %v2944_v1 = vadd.f32 %v8945_v18, %v2943_v40 }
 0x66a   :  { %v3207_v11 = vmul.f32 0.1, %v5766_v54  ;;  %v4890_v25 = vpack.c.bf16 %v3893_v20, %v3892_v22 }
 0x66b   :  { %5767 = vtanh.f32 %v2944_v1 }
 0x66c   :  { %v9055_v32 = vadd.f32 %v3207_v11, %v8860_v8  ;;  %5004 = vst [vmem:[#allocation2 + $0x180] sm:$0xff] %v4890_v25  }
 0x66d   :  { %v3727_v3 = vpop.f32.mrf.mxu0 }
 0x66e   :  { %v3399_v9 = vpack.c.bf16 %v9055_v32, %v9052_v6  ;;  %v3728_v0 = vadd.f32 %v8969_v49, %v3727_v3 }
 0x670   :  { %v2945_v42 = vpop.f32.mrf.mxu3  ;;  %3766 = vmatmul.bf16.gmra.mxu0 %v3399_v9  ;;  %v3894_v8 = vadd.f32 %v3728_v0, %v8896_v14 }
 0x671   :  { %v2946_v27 = vadd.f32 %v8945_v18, %v2945_v42  ;;  %v5768_v35 = vpop.eup %5767 }
 0x672   :  { %v3208_v50 = vmul.f32 0.1, %v5768_v35 }
 0x673   :  { %5769 = vtanh.f32 %v2946_v27 }
 0x674   :  { %v9066_v61 = vadd.f32 %v3208_v50, %v8881_v15 }
 0x675   :  { %v3729_v62 = vpop.f32.mrf.mxu0 }
 0x676   :  { %v3730_v51 = vadd.f32 %v8969_v49, %v3729_v62 }
 0x678   :  { %v3895_v31 = vadd.f32 %v3730_v51, %v8899_v28  ;;  %v2948_v39 = vpop.f32.mrf.mxu3 }
 0x679   :  { %v5770_v12 = vpop.eup %5769  ;;  %v2949_v55 = vadd.f32 %v8945_v18, %v2948_v39 }
 0x67a   :  { %v3209_v46 = vmul.f32 0.1, %v5770_v12  ;;  %v4895_v17 = vpack.c.bf16 %v3895_v31, %v3894_v8 }
 0x67b   :  { %5771 = vtanh.f32 %v2949_v55 }
 0x67c   :  { %v9069_v37 = vadd.f32 %v3209_v46, %v8884_v16  ;;  %5005 = vst [vmem:[#allocation2 + $0x188] sm:$0xff] %v4895_v17  }
 0x67d   :  { %v3732_v2 = vpop.f32.mrf.mxu0 }
 0x67e   :  { %v3400_v38 = vpack.c.bf16 %v9069_v37, %v9066_v61  ;;  %v3733_v63 = vadd.f32 %v8969_v49, %v3732_v2 }
 0x680   :  { %v2950_v14 = vpop.f32.mrf.mxu3  ;;  %3771 = vmatmul.bf16.gmra.mxu0 %v3400_v38  ;;  %v3896_v16 = vadd.f32 %v3733_v63, %v8920_v47 }
 0x681   :  { %v2951_v28 = vadd.f32 %v8945_v18, %v2950_v14  ;;  %v5772_v48 = vpop.eup %5771 }
 0x682   :  { %v3210_v36 = vmul.f32 0.1, %v5772_v48 }
 0x683   :  { %5773 = vtanh.f32 %v2951_v28 }
 0x684   :  { %v9080_v40 = vadd.f32 %v3210_v36, %v8905_v43 }
 0x685   :  { %v3734_v44 = vpop.f32.mrf.mxu0 }
 0x686   :  { %v3735_v15 = vadd.f32 %v8969_v49, %v3734_v44 }
 0x688   :  { %v3897_v5 = vadd.f32 %v3735_v15, %v8923_v23  ;;  %v2953_v24 = vpop.f32.mrf.mxu3 }
 0x689   :  { %v5774_v30 = vpop.eup %5773  ;;  %v2954_v20 = vadd.f32 %v8945_v18, %v2953_v24 }
 0x68a   :  { %v3211_v34 = vmul.f32 0.1, %v5774_v30  ;;  %v4900_v22 = vpack.c.bf16 %v3897_v5, %v3896_v16 }
 0x68b   :  { %5775 = vtanh.f32 %v2954_v20 }
 0x68c   :  { %v9083_v54 = vadd.f32 %v3211_v34, %v8908_v13  ;;  %5006 = vst [vmem:[#allocation2 + $0x190] sm:$0xff] %v4900_v22  }
 0x68d   :  { %v3737_v11 = vpop.f32.mrf.mxu0 }
 0x68e   :  { %v3401_v25 = vpack.c.bf16 %v9083_v54, %v9080_v40  ;;  %v3738_v1 = vadd.f32 %v8969_v49, %v3737_v11 }
 0x690   :  { %v2955_v47 = vpop.f32.mrf.mxu3  ;;  %3776 = vmatmul.bf16.gmra.mxu0 %v3401_v25  ;;  %v3898_v13 = vadd.f32 %v3738_v1, %v8949_v58 }
 0x691   :  { %v2956_v23 = vadd.f32 %v8945_v18, %v2955_v47  ;;  %v5776_v3 = vpop.eup %5775 }
 0x692   :  { %v3212_v42 = vmul.f32 0.1, %v5776_v3 }
 0x693   :  { %5777 = vtanh.f32 %v2956_v23 }
 0x694   :  { %v9094_v8 = vadd.f32 %v3212_v42, %v8929_v57 }
 0x695   :  { %v3739_v9 = vpop.f32.mrf.mxu0 }
 0x696   :  { %v3740_v43 = vadd.f32 %v8969_v49, %v3739_v9 }
 0x698   :  { %v3899_v27 = vadd.f32 %v3740_v43, %v8952_v19  ;;  %v2958_v0 = vpop.f32.mrf.mxu3 }
 0x699   :  { %v5778_v35 = vpop.eup %5777  ;;  %v2959_v50 = vadd.f32 %v8945_v18, %v2958_v0 }
 0x69a   :  { %v3213_v62 = vmul.f32 0.1, %v5778_v35  ;;  %v4905_v51 = vpack.c.bf16 %v3899_v27, %v3898_v13 }
 0x69b   :  { %5779 = vtanh.f32 %v2959_v50 }
 0x69c   :  { %v9097_v31 = vadd.f32 %v3213_v62, %v8932_v52  ;;  %5007 = vst [vmem:[#allocation2 + $0x198] sm:$0xff] %v4905_v51  }
 0x69d   :  { %v3742_v39 = vpop.f32.mrf.mxu0 }
 0x69e   :  { %v3402_v12 = vpack.c.bf16 %v9097_v31, %v9094_v8  ;;  %v3743_v46 = vadd.f32 %v8969_v49, %v3742_v39 }
 0x6a0   :  { %v2960_v58 = vpop.f32.mrf.mxu3  ;;  %3781 = vmatmul.bf16.gmra.mxu0 %v3402_v12  ;;  %v3900_v52 = vadd.f32 %v3743_v46, %v8977_v56 }
 0x6a1   :  { %v2961_v19 = vadd.f32 %v8945_v18, %v2960_v58  ;;  %v5780_v17 = vpop.eup %5779 }
 0x6a2   :  { %v3214_v2 = vmul.f32 0.1, %v5780_v17 }
 0x6a3   :  { %5781 = vtanh.f32 %v2961_v19 }
 0x6a4   :  { %v9108_v15 = vadd.f32 %v3214_v2, %v8958_v60 }
 0x6a5   :  { %v3744_v55 = vpop.f32.mrf.mxu0 }
 0x6a6   :  { %v3745_v57 = vadd.f32 %v8969_v49, %v3744_v55 }
 0x6a8   :  { %v3901_v38 = vadd.f32 %v3745_v57, %v8980_v45  ;;  %v2963_v14 = vpop.f32.mrf.mxu3 }
 0x6a9   :  { %v5782_v28 = vpop.eup %5781  ;;  %v2964_v63 = vadd.f32 %v8945_v18, %v2963_v14 }
 0x6aa   :  { %v3215_v48 = vmul.f32 0.1, %v5782_v28  ;;  %v4910_v44 = vpack.c.bf16 %v3901_v38, %v3900_v52 }
 0x6ab   :  { %5783 = vtanh.f32 %v2964_v63 }
 0x6ac   :  { %v9111_v36 = vadd.f32 %v3215_v48, %v8961_v41  ;;  %5008 = vst [vmem:[#allocation2 + $0x1a0] sm:$0xff] %v4910_v44  }
 0x6ad   :  { %v3747_v16 = vpop.f32.mrf.mxu0 }
 0x6ae   :  { %v3403_v56 = vpack.c.bf16 %v9111_v36, %v9108_v15  ;;  %v3748_v30 = vadd.f32 %v8969_v49, %v3747_v16 }
 0x6b0   :  { %v2965_v5 = vpop.f32.mrf.mxu3  ;;  %3786 = vmatmul.bf16.gmra.mxu0 %v3403_v56  ;;  %v3902_v22 = vadd.f32 %v3748_v30, %v8996_v4 }
 0x6b1   :  { %v5784_v45 = vpop.eup %5783 }
 0x6b2   :  { %v3216_v24 = vmul.f32 0.1, %v5784_v45 }
 0x6b4   :  { %v9116_v18 = vadd.f32 %v3216_v24, %v8985_v29 }
 0x6b5   :  { %v3749_v34 = vpop.f32.mrf.mxu0 }
 0x6b6   :  { %v3404_v60 = vpack.c.bf16 %v9116_v18, %v9116_v18  ;;  %v3750_v41 = vadd.f32 %v8969_v49, %v3749_v34 }
 0x6b8   :  { %v3903_v20 = vadd.f32 %v3750_v41, %v8999_v21  ;;  %3791 = vmatmul.bf16.vlgmr.msra.gmra.mxu3 %v3404_v60 }
 0x6ba   :  { %v4915_v11 = vpack.c.bf16 %v3903_v20, %v3902_v22 }
 0x6bc   :  { %5009 = vst [vmem:[#allocation2 + $0x1a8] sm:$0xff] %v4915_v11  }
 0x6bd   :  { %v3752_v25 = vpop.f32.mrf.mxu0 }
 0x6be   :  { %v3753_v47 = vadd.f32 %v8969_v49, %v3752_v25 }
 0x6c0   :  { %v3904_v1 = vadd.f32 %v3753_v47, %v9010_v10 }
 0x6c5   :  { %v3754_v29 = vpop.f32.mrf.mxu0 }
 0x6c6   :  { %v3755_v23 = vadd.f32 %v8969_v49, %v3754_v29 }
 0x6c8   :  { %v3905_v3 = vadd.f32 %v3755_v23, %v9013_v59 }
 0x6ca   :  { %v4920_v9 = vpack.c.bf16 %v3905_v3, %v3904_v1 }
 0x6cc   :  { %5010 = vst [vmem:[#allocation2 + $0x1b0] sm:$0xff] %v4920_v9  }
 0x6cd   :  { %v3757_v43 = vpop.f32.mrf.mxu0 }
 0x6ce   :  { %v3758_v4 = vadd.f32 %v8969_v49, %v3757_v43 }
 0x6d0   :  { %v3906_v13 = vadd.f32 %v3758_v4, %v9024_v53 }
 0x6d5   :  { %v3759_v42 = vpop.f32.mrf.mxu0 }
 0x6d6   :  { %v3760_v21 = vadd.f32 %v8969_v49, %v3759_v42 }
 0x6d8   :  { %v3907_v27 = vadd.f32 %v3760_v21, %v9027_v7 }
 0x6da   :  { %v4925_v0 = vpack.c.bf16 %v3907_v27, %v3906_v13 }
 0x6dc   :  { %5011 = vst [vmem:[#allocation2 + $0x1b8] sm:$0xff] %v4925_v0  }
 0x6dd   :  { %v3762_v35 = vpop.f32.mrf.mxu0 }
 0x6de   :  { %v3763_v62 = vadd.f32 %v8969_v49, %v3762_v35 }
 0x6e0   :  { %v3908_v51 = vadd.f32 %v3763_v62, %v9038_v33 }
 0x6e5   :  { %v3764_v10 = vpop.f32.mrf.mxu0 }
 0x6e6   :  { %v3765_v59 = vadd.f32 %v8969_v49, %v3764_v10 }
 0x6e8   :  { %v3909_v50 = vadd.f32 %v3765_v59, %v9041_v26 }
 0x6ea   :  { %v4930_v39 = vpack.c.bf16 %v3909_v50, %v3908_v51 }
 0x6ec   :  { %5012 = vst [vmem:[#allocation2 + $0x1c0] sm:$0xff] %v4930_v39  }
 0x6ed   :  { %v3767_v12 = vpop.f32.mrf.mxu0 }
 0x6ee   :  { %v3768_v58 = vadd.f32 %v8969_v49, %v3767_v12 }
 0x6f0   :  { %v3910_v19 = vadd.f32 %v3768_v58, %v9052_v6 }
 0x6f5   :  { %v3769_v53 = vpop.f32.mrf.mxu0 }
 0x6f6   :  { %v3770_v7 = vadd.f32 %v8969_v49, %v3769_v53 }
 0x6f8   :  { %v3911_v46 = vadd.f32 %v3770_v7, %v9055_v32 }
 0x6fa   :  { %v4935_v17 = vpack.c.bf16 %v3911_v46, %v3910_v19 }
 0x6fc   :  { %5013 = vst [vmem:[#allocation2 + $0x1c8] sm:$0xff] %v4935_v17  }
 0x6fd   :  { %v3772_v55 = vpop.f32.mrf.mxu0 }
 0x6fe   :  { %v3773_v57 = vadd.f32 %v8969_v49, %v3772_v55 }
 0x700   :  { %v3912_v2 = vadd.f32 %v3773_v57, %v9066_v61 }
 0x705   :  { %v3774_v33 = vpop.f32.mrf.mxu0 }
 0x706   :  { %v3775_v26 = vadd.f32 %v8969_v49, %v3774_v33 }
 0x708   :  { %v3913_v52 = vadd.f32 %v3775_v26, %v9069_v37 }
 0x70a   :  { %v4940_v38 = vpack.c.bf16 %v3913_v52, %v3912_v2 }
 0x70c   :  { %5014 = vst [vmem:[#allocation2 + $0x1d0] sm:$0xff] %v4940_v38  }
 0x70d   :  { %v3777_v14 = vpop.f32.mrf.mxu0 }
 0x70e   :  { %v3778_v28 = vadd.f32 %v8969_v49, %v3777_v14 }
 0x710   :  { %v3914_v63 = vadd.f32 %v3778_v28, %v9080_v40 }
 0x715   :  { %v3779_v6 = vpop.f32.mrf.mxu0 }
 0x716   :  { %v3780_v32 = vadd.f32 %v8969_v49, %v3779_v6 }
 0x718   :  { %v3915_v48 = vadd.f32 %v3780_v32, %v9083_v54 }
 0x71a   :  { %v4945_v44 = vpack.c.bf16 %v3915_v48, %v3914_v63 }
 0x71c   :  { %5015 = vst [vmem:[#allocation2 + $0x1d8] sm:$0xff] %v4945_v44  }
 0x71d   :  { %v3782_v16 = vpop.f32.mrf.mxu0 }
 0x71e   :  { %v3783_v56 = vadd.f32 %v8969_v49, %v3782_v16 }
 0x720   :  { %v3916_v5 = vadd.f32 %v3783_v56, %v9094_v8 }
 0x725   :  { %v3784_v61 = vpop.f32.mrf.mxu0 }
 0x726   :  { %v3785_v37 = vadd.f32 %v8969_v49, %v3784_v61 }
 0x728   :  { %v3917_v45 = vadd.f32 %v3785_v37, %v9097_v31 }
 0x72a   :  { %v4950_v24 = vpack.c.bf16 %v3917_v45, %v3916_v5 }
 0x72c   :  { %5016 = vst [vmem:[#allocation2 + $0x1e0] sm:$0xff] %v4950_v24  }
 0x72d   :  { %v3787_v30 = vpop.f32.mrf.mxu0 }
 0x72e   :  { %v3788_v34 = vadd.f32 %v8969_v49, %v3787_v30 }
 0x730   :  { %v3918_v60 = vadd.f32 %v3788_v34, %v9108_v15 }
 0x735   :  { %v3789_v40 = vpop.f32.mrf.mxu0 }
 0x736   :  { %v3790_v54 = vadd.f32 %v8969_v49, %v3789_v40 }
 0x738   :  { %v3919_v41 = vadd.f32 %v3790_v54, %v9111_v36 }
 0x73a   :  { %v4955_v22 = vpack.c.bf16 %v3919_v41, %v3918_v60 }
 0x73b   :  { %v3792_v20 = vpop.f32.mrf.mxu3 }
 0x73c   :  { %5017 = vst [vmem:[#allocation2 + $0x1e8] sm:$0xff] %v4955_v22   ;;  %v3793_v11 = vadd.f32 %v8969_v49, %v3792_v20 }
 0x73e   :  { %v3920_v8 = vadd.f32 %v3793_v11, %v9116_v18 }
 0x740   :  { %v4045_v31 = vpack.c.bf16 %v3920_v8, %v3920_v8 }
 0x742   :  { %4170 = vst [vmem:[#allocation2 + $0x1f0] sm:$0xf] %v4045_v31 }
 0x743   :  { %v3794_v15 = vpop.f32.mrf.mxu3  ;;  %4183 = dma.vmem_to_hbm [thread:$0]  %s4176_s16, 8000, %s4178_s5, [#allocation3], %s5826_s19, %s5826_s19, %s5827_s20  }
 0x744   :  { %5823 = dma.done.wait [#allocation3], 8000  }
 0x745   :  { %5824 = vsyncadd [#allocation3], 4294959296 }
 0x746   :  { %4188 = vsyncpa [#allocation3], 1 }

</bundles_post_ra>
